<compile_context>
chip_gen: v6e
topology: v6e:2x2x1
jax: 0.10.0
libtpu: 0.0.40
codegen_flags: <defaults>
</compile_context>

<pallas_src>
import functools

import jax
import jax.numpy as jnp
from jax.experimental import pallas as pl
from jax.experimental.pallas import tpu as pltpu

D_MODEL = 64
N_HEAD = 4
HEAD_DIM = D_MODEL // N_HEAD
D_FF = 2 * D_MODEL
N_TOKENS = 203
N_TOKENS_PAD = 256                    # lane-dense padded vocab / logits
CONTEXT_LEN = 64
EMB_ROWS = N_TOKENS_PAD + CONTEXT_LEN  # token rows ++ positional rows (320)
N_LAYERS = 2
LN_EPS = 1e-5
NEG_BIG = -1e9                        # bias on padded logit columns -> exp()==0


def _vmem():
    # Whole array resident in VMEM (everything is tiny), no grid tiling.
    return pl.BlockSpec(memory_space=pltpu.MemorySpace.VMEM)


def _layer_norm(x, w, b):
    mean = jnp.mean(x, axis=-1, keepdims=True)
    var = jnp.mean(jnp.square(x - mean), axis=-1, keepdims=True)
    inv = jax.lax.rsqrt(var + LN_EPS)
    return (x - mean) * inv * w + b


def _softmax_last(x, approx):
    m = jnp.max(x, axis=-1, keepdims=True)
    e = jnp.exp(x - m)
    s = jnp.sum(e, axis=-1, keepdims=True)
    if approx:
        return e * pl.reciprocal(s, approx=True)   # EUP slot, ~free
    return e / s


def fused_forward_kernel(sel_ref, embpos_ref, wqkv_ref, wo_ref, w1_ref, w2_ref,
                         lsm_ref, headw_ref, hsm_ref, out_ref, *, B, S):
    N = B * S

    # ---- embedding + positional lookup as ONE two-hot MXU matmul ------------
    # sel[:,0] = token id (<203), sel[:,1] = 256 + position (>=256): no collision.
    sel = sel_ref[...]                                            # (N, 2) i32
    col = jax.lax.broadcasted_iota(jnp.int32, (N, EMB_ROWS), 1)
    hot = ((col == sel[:, 0:1]) | (col == sel[:, 1:2])).astype(jnp.bfloat16)
    x = jnp.dot(hot, embpos_ref[...],
                preferred_element_type=jnp.float32)               # (N, D) f32

    for l in range(N_LAYERS):                                     # static unroll
        sm = lsm_ref[l]                                           # (8, 192) f32
        xb = x.astype(jnp.bfloat16)

        # --- self attention: fused QKV projection (scale pre-folded) --------
        qkv = jnp.dot(xb, wqkv_ref[l], preferred_element_type=jnp.float32)
        qkv = (qkv + sm[0:1, :]).astype(jnp.bfloat16)             # (N, 192)

        # Per-head loop, concat-free: head outputs merged by accumulating
        # oh @ wo_head (wo pre-split per head wrapper-side) == concat(oh) @ wo.
        attn = None
        for h in range(N_HEAD):
            qh = qkv[:, h * HEAD_DIM:(h + 1) * HEAD_DIM].reshape(B, S, HEAD_DIM)
            kh = qkv[:, D_MODEL + h * HEAD_DIM:
                        D_MODEL + (h + 1) * HEAD_DIM].reshape(B, S, HEAD_DIM)
            vh = qkv[:, 2 * D_MODEL + h * HEAD_DIM:
                        2 * D_MODEL + (h + 1) * HEAD_DIM].reshape(B, S, HEAD_DIM)
            sc = jnp.einsum('bqd,bkd->bqk', qh, kh,
                            preferred_element_type=jnp.float32)   # (B,S,S)
            p = _softmax_last(sc, approx=True).astype(jnp.bfloat16)
            oh = jnp.einsum('bqk,bkd->bqd', p, vh,
                            preferred_element_type=jnp.float32)   # (B,S,hd)
            proj = jnp.dot(oh.reshape(N, HEAD_DIM).astype(jnp.bfloat16),
                           wo_ref[l * N_HEAD + h],
                           preferred_element_type=jnp.float32)    # (N, D)
            attn = proj if attn is None else attn + proj
        attn = attn + sm[1:2, 0:D_MODEL]                          # + bo

        # TODO(synk): dropout omitted (inference / eval-mode semantics).
        x = _layer_norm(x + attn, sm[2:3, 0:D_MODEL], sm[3:4, 0:D_MODEL])

        # --- feed forward -----------------------------------------------------
        xb = x.astype(jnp.bfloat16)
        h1 = jnp.dot(xb, w1_ref[l], preferred_element_type=jnp.float32)
        h1 = jnp.maximum(h1 + sm[4:5, 0:D_FF], 0.0)
        h2 = jnp.dot(h1.astype(jnp.bfloat16), w2_ref[l],
                     preferred_element_type=jnp.float32) + sm[5:6, 0:D_MODEL]
        x = _layer_norm(x + h2, sm[6:7, 0:D_MODEL], sm[7:8, 0:D_MODEL])

    # ---- classifier head on the last token only -----------------------------
    last = x.reshape(B, S, D_MODEL)[:, S - 1, :].astype(jnp.bfloat16)   # (B, D)
    fc1w = headw_ref[0:D_MODEL, :]                        # (64, 256), cols>=64 zero
    fc2w = headw_ref[D_MODEL:D_MODEL + N_TOKENS_PAD, :]   # (256, 256), rows>=64 zero
    hid = jnp.dot(last, fc1w, preferred_element_type=jnp.float32) + hsm_ref[0:1, :]
    hid = jnp.maximum(hid, 0.0)
    logits = jnp.dot(hid.astype(jnp.bfloat16), fc2w,
                     preferred_element_type=jnp.float32) + hsm_ref[1:2, :]
    # padded logit columns carry a -1e9 bias -> exp == 0, normalization intact
    out_ref[...] = _softmax_last(logits, approx=False)    # (B, 256)


@jax.jit
def forward(tokens, params):
    B, S = tokens.shape
    N = B * S
    pos_ids = jnp.broadcast_to(jnp.arange(S, dtype=jnp.int32)[None, :], (B, S))
    sel = jnp.stack([tokens.astype(jnp.int32), N_TOKENS_PAD + pos_ids],
                    axis=-1).reshape(N, 2)

    args = (sel, params['emb_pos'], params['wqkv'], params['wo'],
            params['w1'], params['w2'], params['lsm'],
            params['headw'], params['hsm'])

    # Advisory cost estimate for the XLA scheduler.
    flops = 2 * N * EMB_ROWS * D_MODEL
    flops += N_LAYERS * (2 * N * D_MODEL * 3 * D_MODEL        # fused qkv
                         + 4 * B * N_HEAD * S * S * HEAD_DIM  # scores + pv
                         + 2 * N * D_MODEL * D_MODEL          # out proj (per-head sum)
                         + 4 * N * D_MODEL * D_FF)            # ffw
    flops += 2 * B * D_MODEL * N_TOKENS_PAD + 2 * B * N_TOKENS_PAD * N_TOKENS_PAD
    transcend = N_LAYERS * B * N_HEAD * S * S + B * N_TOKENS_PAD
    bytes_accessed = sum(int(a.size) * a.dtype.itemsize for a in args)
    bytes_accessed += B * N_TOKENS_PAD * 4

    probs_padded = pl.pallas_call(
        functools.partial(fused_forward_kernel, B=B, S=S),
        out_shape=jax.ShapeDtypeStruct((B, N_TOKENS_PAD), jnp.float32),
        in_specs=[_vmem()] * len(args),
        out_specs=_vmem(),
        cost_estimate=pl.CostEstimate(flops=int(flops),
                                      transcendentals=int(transcend),
                                      bytes_accessed=int(bytes_accessed)),
    )(*args)
    return probs_padded[:, :N_TOKENS]


def init_params(key):
    cnt = [0]

    def nrm(shape, scale=0.02):
        cnt[0] += 1
        k = jax.random.fold_in(key, cnt[0])
        return scale * jax.random.normal(k, shape, dtype=jnp.float32)

    bf16 = jnp.bfloat16
    attn_scale = 1.0 / (HEAD_DIM ** 0.5)

    # token table (padded 203 -> 256 rows) ++ positional rows -> one (320, 64)
    emb = nrm((N_TOKENS, D_MODEL), scale=1.0)
    pos = nrm((CONTEXT_LEN, D_MODEL), scale=1.0)
    emb_pos = (jnp.zeros((EMB_ROWS, D_MODEL), jnp.float32)
               .at[:N_TOKENS].set(emb)
               .at[N_TOKENS_PAD:].set(pos))

    wqkv_l, wo_l, w1_l, w2_l, lsm_l = [], [], [], [], []
    for _ in range(N_LAYERS):
        wq = nrm((D_MODEL, D_MODEL)) * attn_scale          # 1/sqrt(hd) folded in
        bq = nrm((D_MODEL,)) * attn_scale
        wk, bk = nrm((D_MODEL, D_MODEL)), nrm((D_MODEL,))
        wv, bv = nrm((D_MODEL, D_MODEL)), nrm((D_MODEL,))
        wo, bo = nrm((D_MODEL, D_MODEL)), nrm((D_MODEL,))
        w1, b1 = nrm((D_MODEL, D_FF)), nrm((D_FF,))
        w2, b2 = nrm((D_FF, D_MODEL)), nrm((D_MODEL,))

        wqkv_l.append(jnp.concatenate([wq, wk, wv], axis=1))      # (64, 192)
        wo_l.append(wo.reshape(N_HEAD, HEAD_DIM, D_MODEL))        # per-head rows
        w1_l.append(w1)
        w2_l.append(w2)

        # packed per-layer small params: rows = [bqkv, bo, ln1w, ln1b, b1, b2, ln2w, ln2b]
        sm = jnp.zeros((8, 3 * D_MODEL), jnp.float32)
        sm = sm.at[0, :].set(jnp.concatenate([bq, bk, bv]))
        sm = sm.at[1, :D_MODEL].set(bo)
        sm = sm.at[2, :D_MODEL].set(1.0)                          # ln1 weight
        sm = sm.at[4, :D_FF].set(b1)
        sm = sm.at[5, :D_MODEL].set(b2)
        sm = sm.at[6, :D_MODEL].set(1.0)                          # ln2 weight
        lsm_l.append(sm)

    # classifier, packed: rows 0..63 = fc1w (cols zero-padded to 256),
    # rows 64..319 = fc2w (rows zero-padded 64->256, cols zero-padded 203->256)
    fc1w, fc1b = nrm((D_MODEL, D_MODEL)), nrm((D_MODEL,))
    fc2w, fc2b = nrm((D_MODEL, N_TOKENS)), nrm((N_TOKENS,))
    headw = (jnp.zeros((D_MODEL + N_TOKENS_PAD, N_TOKENS_PAD), jnp.float32)
             .at[:D_MODEL, :D_MODEL].set(fc1w)
             .at[D_MODEL:2 * D_MODEL, :N_TOKENS].set(fc2w))
    hsm = (jnp.zeros((2, N_TOKENS_PAD), jnp.float32)
           .at[0, :D_MODEL].set(fc1b)
           .at[1, :].set(NEG_BIG)
           .at[1, :N_TOKENS].set(fc2b))

    return dict(
        emb_pos=emb_pos.astype(bf16),                              # (320, 64)
        wqkv=jnp.stack(wqkv_l).astype(bf16),                       # (2, 64, 192)
        wo=jnp.stack(wo_l).reshape(N_LAYERS * N_HEAD,
                                   HEAD_DIM, D_MODEL).astype(bf16),  # (8, 16, 64)
        w1=jnp.stack(w1_l).astype(bf16),                           # (2, 64, 128)
        w2=jnp.stack(w2_l).astype(bf16),                           # (2, 128, 64)
        lsm=jnp.stack(lsm_l),                                      # (2, 8, 192) f32
        headw=headw.astype(bf16),                                  # (320, 256)
        hsm=hsm,                                                   # (2, 256) f32
    )


if __name__ == "__main__":
    key = jax.random.PRNGKey(0)
    params = init_params(key)

    B, S = 2, 8  # seq <= context_length (64)
    tokens = jax.random.randint(jax.random.fold_in(key, 9999),
                                (B, S), 0, N_TOKENS, dtype=jnp.int32)

    out = forward(tokens, params)
    out = jax.block_until_ready(out)

    assert out.shape == (B, N_TOKENS), out.shape
    assert bool(jnp.all(jnp.isfinite(out)))
    row_sums = jnp.sum(out, axis=-1)
    assert bool(jnp.all(jnp.abs(row_sums - 1.0) < 1e-3)), row_sums
    print("KERNEL_OK")
</pallas_src>

<mosaic_0001>
module attributes {stable_mosaic.version = 11 : i64} {
  func.func @fused_forward_kernel(%arg0: memref<16x2xi32, #tpu.memory_space<vmem>>, %arg1: memref<320x64xbf16, #tpu.memory_space<vmem>>, %arg2: memref<2x64x192xbf16, #tpu.memory_space<vmem>>, %arg3: memref<8x16x64xbf16, #tpu.memory_space<vmem>>, %arg4: memref<2x64x128xbf16, #tpu.memory_space<vmem>>, %arg5: memref<2x128x64xbf16, #tpu.memory_space<vmem>>, %arg6: memref<2x8x192xf32, #tpu.memory_space<vmem>>, %arg7: memref<320x256xbf16, #tpu.memory_space<vmem>>, %arg8: memref<2x256xf32, #tpu.memory_space<vmem>>, %arg9: memref<2x256xf32, #tpu.memory_space<vmem>>) attributes {dimension_semantics = [], scalar_prefetch = 0 : i64, scratch_operands = 0 : i64, tpu.core_type = #tpu.core_type<tc>} {
    %c0 = arith.constant 0 : index
    %c0_0 = arith.constant 0 : index
    %0 = vector.load %arg0[%c0, %c0_0] : memref<16x2xi32, #tpu.memory_space<vmem>>, vector<16x2xi32>
    %1 = tpu.iota {dimensions = array<i32: 1>} : vector<16x320xi32>
    %2 = vector.extract_strided_slice %0 {offsets = [0, 0], sizes = [16, 1], strides = [1, 1]} : vector<16x2xi32> to vector<16x1xi32>
    %3 = vector.broadcast %2 : vector<16x1xi32> to vector<16x320xi32>
    %4 = arith.cmpi eq, %1, %3 : vector<16x320xi32>
    %5 = vector.extract_strided_slice %0 {offsets = [0, 1], sizes = [16, 1], strides = [1, 1]} : vector<16x2xi32> to vector<16x1xi32>
    %6 = vector.broadcast %5 : vector<16x1xi32> to vector<16x320xi32>
    %7 = arith.cmpi eq, %1, %6 : vector<16x320xi32>
    %8 = arith.ori %4, %7 : vector<16x320xi1>
    %9 = arith.extui %8 : vector<16x320xi1> to vector<16x320xi32>
    %10 = arith.sitofp %9 : vector<16x320xi32> to vector<16x320xf32>
    %11 = arith.truncf %10 : vector<16x320xf32> to vector<16x320xbf16>
    %c0_1 = arith.constant 0 : index
    %c0_2 = arith.constant 0 : index
    %12 = vector.load %arg1[%c0_1, %c0_2] : memref<320x64xbf16, #tpu.memory_space<vmem>>, vector<320x64xbf16>
    %cst = arith.constant dense<0.000000e+00> : vector<16x64xf32>
    %13 = tpu.matmul %11, %12, %cst {dimension_numbers = #tpu.dot_dimension_numbers<[1], [0], [0], [1], [0, 0, 1, 1], [], []>} : vector<16x320xbf16>, vector<320x64xbf16>, vector<16x64xf32> -> vector<16x64xf32>
    %c0_3 = arith.constant 0 : index
    %c0_4 = arith.constant 0 : index
    %c0_5 = arith.constant 0 : index
    %14 = vector.load %arg6[%c0_3, %c0_4, %c0_5] : memref<2x8x192xf32, #tpu.memory_space<vmem>>, vector<1x8x192xf32>
    %15 = vector.shape_cast %14 : vector<1x8x192xf32> to vector<8x192xf32>
    %16 = arith.truncf %13 : vector<16x64xf32> to vector<16x64xbf16>
    %c0_6 = arith.constant 0 : index
    %c0_7 = arith.constant 0 : index
    %c0_8 = arith.constant 0 : index
    %17 = vector.load %arg2[%c0_6, %c0_7, %c0_8] : memref<2x64x192xbf16, #tpu.memory_space<vmem>>, vector<1x64x192xbf16>
    %18 = vector.shape_cast %17 : vector<1x64x192xbf16> to vector<64x192xbf16>
    %cst_9 = arith.constant dense<0.000000e+00> : vector<16x192xf32>
    %19 = tpu.matmul %16, %18, %cst_9 {dimension_numbers = #tpu.dot_dimension_numbers<[1], [0], [0], [1], [0, 0, 1, 1], [], []>} : vector<16x64xbf16>, vector<64x192xbf16>, vector<16x192xf32> -> vector<16x192xf32>
    %20 = vector.extract_strided_slice %15 {offsets = [0, 0], sizes = [1, 192], strides = [1, 1]} : vector<8x192xf32> to vector<1x192xf32>
    %21 = vector.broadcast %20 : vector<1x192xf32> to vector<16x192xf32>
    %22 = arith.addf %19, %21 : vector<16x192xf32>
    %23 = arith.truncf %22 : vector<16x192xf32> to vector<16x192xbf16>
    %24 = vector.extract_strided_slice %23 {offsets = [0, 0], sizes = [16, 16], strides = [1, 1]} : vector<16x192xbf16> to vector<16x16xbf16>
    %25 = vector.shape_cast %24 : vector<16x16xbf16> to vector<2x8x16xbf16>
    %26 = vector.extract_strided_slice %23 {offsets = [0, 64], sizes = [16, 16], strides = [1, 1]} : vector<16x192xbf16> to vector<16x16xbf16>
    %27 = vector.shape_cast %26 : vector<16x16xbf16> to vector<2x8x16xbf16>
    %28 = vector.extract_strided_slice %23 {offsets = [0, 128], sizes = [16, 16], strides = [1, 1]} : vector<16x192xbf16> to vector<16x16xbf16>
    %29 = vector.shape_cast %28 : vector<16x16xbf16> to vector<2x8x16xbf16>
    "tpu.trace_start"() <{level = 10 : i32, message = "bqd,bkd->bqk"}> : () -> ()
    %cst_10 = arith.constant dense<0.000000e+00> : vector<2x8x8xf32>
    %30 = tpu.matmul %25, %27, %cst_10 {dimension_numbers = #tpu.dot_dimension_numbers<[2], [2], [1], [1], [0, 0, 0, 1, 1, 1], [0], [0]>} : vector<2x8x16xbf16>, vector<2x8x16xbf16>, vector<2x8x8xf32> -> vector<2x8x8xf32>
    "tpu.trace_stop"() : () -> ()
    %cst_11 = arith.constant dense<0xFF800000> : vector<2x8xf32>
    %31 = vector.multi_reduction <maximumf>, %30, %cst_11 [2] : vector<2x8x8xf32> to vector<2x8xf32>
    %32 = vector.shape_cast %31 : vector<2x8xf32> to vector<2x8x1xf32>
    %33 = vector.broadcast %32 : vector<2x8x1xf32> to vector<2x8x8xf32>
    %34 = arith.subf %30, %33 : vector<2x8x8xf32>
    %35 = math.exp %34 : vector<2x8x8xf32>
    %cst_12 = arith.constant dense<0.000000e+00> : vector<2x8xf32>
    %36 = vector.multi_reduction <add>, %35, %cst_12 [2] : vector<2x8x8xf32> to vector<2x8xf32>
    %37 = vector.shape_cast %36 : vector<2x8xf32> to vector<2x8x1xf32>
    %38 = tpu.reciprocal %37 {approx = true} : vector<2x8x1xf32> -> vector<2x8x1xf32>
    %39 = vector.broadcast %38 : vector<2x8x1xf32> to vector<2x8x8xf32>
    %40 = arith.mulf %35, %39 : vector<2x8x8xf32>
    %41 = arith.truncf %40 : vector<2x8x8xf32> to vector<2x8x8xbf16>
    "tpu.trace_start"() <{level = 10 : i32, message = "bqk,bkd->bqd"}> : () -> ()
    %cst_13 = arith.constant dense<0.000000e+00> : vector<2x8x16xf32>
    %42 = tpu.matmul %41, %29, %cst_13 {dimension_numbers = #tpu.dot_dimension_numbers<[2], [1], [1], [2], [0, 0, 0, 1, 1, 2], [0], [0]>} : vector<2x8x8xbf16>, vector<2x8x16xbf16>, vector<2x8x16xf32> -> vector<2x8x16xf32>
    "tpu.trace_stop"() : () -> ()
    %43 = vector.shape_cast %42 : vector<2x8x16xf32> to vector<16x16xf32>
    %44 = arith.truncf %43 : vector<16x16xf32> to vector<16x16xbf16>
    %c0_14 = arith.constant 0 : index
    %c0_15 = arith.constant 0 : index
    %c0_16 = arith.constant 0 : index
    %45 = vector.load %arg3[%c0_14, %c0_15, %c0_16] : memref<8x16x64xbf16, #tpu.memory_space<vmem>>, vector<1x16x64xbf16>
    %46 = vector.shape_cast %45 : vector<1x16x64xbf16> to vector<16x64xbf16>
    %cst_17 = arith.constant dense<0.000000e+00> : vector<16x64xf32>
    %47 = tpu.matmul %44, %46, %cst_17 {dimension_numbers = #tpu.dot_dimension_numbers<[1], [0], [0], [1], [0, 0, 1, 1], [], []>} : vector<16x16xbf16>, vector<16x64xbf16>, vector<16x64xf32> -> vector<16x64xf32>
    %48 = vector.extract_strided_slice %23 {offsets = [0, 16], sizes = [16, 16], strides = [1, 1]} : vector<16x192xbf16> to vector<16x16xbf16>
    %49 = vector.shape_cast %48 : vector<16x16xbf16> to vector<2x8x16xbf16>
    %50 = vector.extract_strided_slice %23 {offsets = [0, 80], sizes = [16, 16], strides = [1, 1]} : vector<16x192xbf16> to vector<16x16xbf16>
    %51 = vector.shape_cast %50 : vector<16x16xbf16> to vector<2x8x16xbf16>
    %52 = vector.extract_strided_slice %23 {offsets = [0, 144], sizes = [16, 16], strides = [1, 1]} : vector<16x192xbf16> to vector<16x16xbf16>
    %53 = vector.shape_cast %52 : vector<16x16xbf16> to vector<2x8x16xbf16>
    "tpu.trace_start"() <{level = 10 : i32, message = "bqd,bkd->bqk"}> : () -> ()
    %cst_18 = arith.constant dense<0.000000e+00> : vector<2x8x8xf32>
    %54 = tpu.matmul %49, %51, %cst_18 {dimension_numbers = #tpu.dot_dimension_numbers<[2], [2], [1], [1], [0, 0, 0, 1, 1, 1], [0], [0]>} : vector<2x8x16xbf16>, vector<2x8x16xbf16>, vector<2x8x8xf32> -> vector<2x8x8xf32>
    "tpu.trace_stop"() : () -> ()
    %cst_19 = arith.constant dense<0xFF800000> : vector<2x8xf32>
    %55 = vector.multi_reduction <maximumf>, %54, %cst_19 [2] : vector<2x8x8xf32> to vector<2x8xf32>
    %56 = vector.shape_cast %55 : vector<2x8xf32> to vector<2x8x1xf32>
    %57 = vector.broadcast %56 : vector<2x8x1xf32> to vector<2x8x8xf32>
    %58 = arith.subf %54, %57 : vector<2x8x8xf32>
    %59 = math.exp %58 : vector<2x8x8xf32>
    %cst_20 = arith.constant dense<0.000000e+00> : vector<2x8xf32>
    %60 = vector.multi_reduction <add>, %59, %cst_20 [2] : vector<2x8x8xf32> to vector<2x8xf32>
    %61 = vector.shape_cast %60 : vector<2x8xf32> to vector<2x8x1xf32>
    %62 = tpu.reciprocal %61 {approx = true} : vector<2x8x1xf32> -> vector<2x8x1xf32>
    %63 = vector.broadcast %62 : vector<2x8x1xf32> to vector<2x8x8xf32>
    %64 = arith.mulf %59, %63 : vector<2x8x8xf32>
    %65 = arith.truncf %64 : vector<2x8x8xf32> to vector<2x8x8xbf16>
    "tpu.trace_start"() <{level = 10 : i32, message = "bqk,bkd->bqd"}> : () -> ()
    %cst_21 = arith.constant dense<0.000000e+00> : vector<2x8x16xf32>
    %66 = tpu.matmul %65, %53, %cst_21 {dimension_numbers = #tpu.dot_dimension_numbers<[2], [1], [1], [2], [0, 0, 0, 1, 1, 2], [0], [0]>} : vector<2x8x8xbf16>, vector<2x8x16xbf16>, vector<2x8x16xf32> -> vector<2x8x16xf32>
    "tpu.trace_stop"() : () -> ()
    %67 = vector.shape_cast %66 : vector<2x8x16xf32> to vector<16x16xf32>
    %68 = arith.truncf %67 : vector<16x16xf32> to vector<16x16xbf16>
    %c1 = arith.constant 1 : index
    %c0_22 = arith.constant 0 : index
    %c0_23 = arith.constant 0 : index
    %69 = vector.load %arg3[%c1, %c0_22, %c0_23] : memref<8x16x64xbf16, #tpu.memory_space<vmem>>, vector<1x16x64xbf16>
    %70 = vector.shape_cast %69 : vector<1x16x64xbf16> to vector<16x64xbf16>
    %cst_24 = arith.constant dense<0.000000e+00> : vector<16x64xf32>
    %71 = tpu.matmul %68, %70, %cst_24 {dimension_numbers = #tpu.dot_dimension_numbers<[1], [0], [0], [1], [0, 0, 1, 1], [], []>} : vector<16x16xbf16>, vector<16x64xbf16>, vector<16x64xf32> -> vector<16x64xf32>
    %72 = arith.addf %47, %71 : vector<16x64xf32>
    %73 = vector.extract_strided_slice %23 {offsets = [0, 32], sizes = [16, 16], strides = [1, 1]} : vector<16x192xbf16> to vector<16x16xbf16>
    %74 = vector.shape_cast %73 : vector<16x16xbf16> to vector<2x8x16xbf16>
    %75 = vector.extract_strided_slice %23 {offsets = [0, 96], sizes = [16, 16], strides = [1, 1]} : vector<16x192xbf16> to vector<16x16xbf16>
    %76 = vector.shape_cast %75 : vector<16x16xbf16> to vector<2x8x16xbf16>
    %77 = vector.extract_strided_slice %23 {offsets = [0, 160], sizes = [16, 16], strides = [1, 1]} : vector<16x192xbf16> to vector<16x16xbf16>
    %78 = vector.shape_cast %77 : vector<16x16xbf16> to vector<2x8x16xbf16>
    "tpu.trace_start"() <{level = 10 : i32, message = "bqd,bkd->bqk"}> : () -> ()
    %cst_25 = arith.constant dense<0.000000e+00> : vector<2x8x8xf32>
    %79 = tpu.matmul %74, %76, %cst_25 {dimension_numbers = #tpu.dot_dimension_numbers<[2], [2], [1], [1], [0, 0, 0, 1, 1, 1], [0], [0]>} : vector<2x8x16xbf16>, vector<2x8x16xbf16>, vector<2x8x8xf32> -> vector<2x8x8xf32>
    "tpu.trace_stop"() : () -> ()
    %cst_26 = arith.constant dense<0xFF800000> : vector<2x8xf32>
    %80 = vector.multi_reduction <maximumf>, %79, %cst_26 [2] : vector<2x8x8xf32> to vector<2x8xf32>
    %81 = vector.shape_cast %80 : vector<2x8xf32> to vector<2x8x1xf32>
    %82 = vector.broadcast %81 : vector<2x8x1xf32> to vector<2x8x8xf32>
    %83 = arith.subf %79, %82 : vector<2x8x8xf32>
    %84 = math.exp %83 : vector<2x8x8xf32>
    %cst_27 = arith.constant dense<0.000000e+00> : vector<2x8xf32>
    %85 = vector.multi_reduction <add>, %84, %cst_27 [2] : vector<2x8x8xf32> to vector<2x8xf32>
    %86 = vector.shape_cast %85 : vector<2x8xf32> to vector<2x8x1xf32>
    %87 = tpu.reciprocal %86 {approx = true} : vector<2x8x1xf32> -> vector<2x8x1xf32>
    %88 = vector.broadcast %87 : vector<2x8x1xf32> to vector<2x8x8xf32>
    %89 = arith.mulf %84, %88 : vector<2x8x8xf32>
    %90 = arith.truncf %89 : vector<2x8x8xf32> to vector<2x8x8xbf16>
    "tpu.trace_start"() <{level = 10 : i32, message = "bqk,bkd->bqd"}> : () -> ()
    %cst_28 = arith.constant dense<0.000000e+00> : vector<2x8x16xf32>
    %91 = tpu.matmul %90, %78, %cst_28 {dimension_numbers = #tpu.dot_dimension_numbers<[2], [1], [1], [2], [0, 0, 0, 1, 1, 2], [0], [0]>} : vector<2x8x8xbf16>, vector<2x8x16xbf16>, vector<2x8x16xf32> -> vector<2x8x16xf32>
    "tpu.trace_stop"() : () -> ()
    %92 = vector.shape_cast %91 : vector<2x8x16xf32> to vector<16x16xf32>
    %93 = arith.truncf %92 : vector<16x16xf32> to vector<16x16xbf16>
    %c2 = arith.constant 2 : index
    %c0_29 = arith.constant 0 : index
    %c0_30 = arith.constant 0 : index
    %94 = vector.load %arg3[%c2, %c0_29, %c0_30] : memref<8x16x64xbf16, #tpu.memory_space<vmem>>, vector<1x16x64xbf16>
    %95 = vector.shape_cast %94 : vector<1x16x64xbf16> to vector<16x64xbf16>
    %cst_31 = arith.constant dense<0.000000e+00> : vector<16x64xf32>
    %96 = tpu.matmul %93, %95, %cst_31 {dimension_numbers = #tpu.dot_dimension_numbers<[1], [0], [0], [1], [0, 0, 1, 1], [], []>} : vector<16x16xbf16>, vector<16x64xbf16>, vector<16x64xf32> -> vector<16x64xf32>
    %97 = arith.addf %72, %96 : vector<16x64xf32>
    %98 = vector.extract_strided_slice %23 {offsets = [0, 48], sizes = [16, 16], strides = [1, 1]} : vector<16x192xbf16> to vector<16x16xbf16>
    %99 = vector.shape_cast %98 : vector<16x16xbf16> to vector<2x8x16xbf16>
    %100 = vector.extract_strided_slice %23 {offsets = [0, 112], sizes = [16, 16], strides = [1, 1]} : vector<16x192xbf16> to vector<16x16xbf16>
    %101 = vector.shape_cast %100 : vector<16x16xbf16> to vector<2x8x16xbf16>
    %102 = vector.extract_strided_slice %23 {offsets = [0, 176], sizes = [16, 16], strides = [1, 1]} : vector<16x192xbf16> to vector<16x16xbf16>
    %103 = vector.shape_cast %102 : vector<16x16xbf16> to vector<2x8x16xbf16>
    "tpu.trace_start"() <{level = 10 : i32, message = "bqd,bkd->bqk"}> : () -> ()
    %cst_32 = arith.constant dense<0.000000e+00> : vector<2x8x8xf32>
    %104 = tpu.matmul %99, %101, %cst_32 {dimension_numbers = #tpu.dot_dimension_numbers<[2], [2], [1], [1], [0, 0, 0, 1, 1, 1], [0], [0]>} : vector<2x8x16xbf16>, vector<2x8x16xbf16>, vector<2x8x8xf32> -> vector<2x8x8xf32>
    "tpu.trace_stop"() : () -> ()
    %cst_33 = arith.constant dense<0xFF800000> : vector<2x8xf32>
    %105 = vector.multi_reduction <maximumf>, %104, %cst_33 [2] : vector<2x8x8xf32> to vector<2x8xf32>
    %106 = vector.shape_cast %105 : vector<2x8xf32> to vector<2x8x1xf32>
    %107 = vector.broadcast %106 : vector<2x8x1xf32> to vector<2x8x8xf32>
    %108 = arith.subf %104, %107 : vector<2x8x8xf32>
    %109 = math.exp %108 : vector<2x8x8xf32>
    %cst_34 = arith.constant dense<0.000000e+00> : vector<2x8xf32>
    %110 = vector.multi_reduction <add>, %109, %cst_34 [2] : vector<2x8x8xf32> to vector<2x8xf32>
    %111 = vector.shape_cast %110 : vector<2x8xf32> to vector<2x8x1xf32>
    %112 = tpu.reciprocal %111 {approx = true} : vector<2x8x1xf32> -> vector<2x8x1xf32>
    %113 = vector.broadcast %112 : vector<2x8x1xf32> to vector<2x8x8xf32>
    %114 = arith.mulf %109, %113 : vector<2x8x8xf32>
    %115 = arith.truncf %114 : vector<2x8x8xf32> to vector<2x8x8xbf16>
    "tpu.trace_start"() <{level = 10 : i32, message = "bqk,bkd->bqd"}> : () -> ()
    %cst_35 = arith.constant dense<0.000000e+00> : vector<2x8x16xf32>
    %116 = tpu.matmul %115, %103, %cst_35 {dimension_numbers = #tpu.dot_dimension_numbers<[2], [1], [1], [2], [0, 0, 0, 1, 1, 2], [0], [0]>} : vector<2x8x8xbf16>, vector<2x8x16xbf16>, vector<2x8x16xf32> -> vector<2x8x16xf32>
    "tpu.trace_stop"() : () -> ()
    %117 = vector.shape_cast %116 : vector<2x8x16xf32> to vector<16x16xf32>
    %118 = arith.truncf %117 : vector<16x16xf32> to vector<16x16xbf16>
    %c3 = arith.constant 3 : index
    %c0_36 = arith.constant 0 : index
    %c0_37 = arith.constant 0 : index
    %119 = vector.load %arg3[%c3, %c0_36, %c0_37] : memref<8x16x64xbf16, #tpu.memory_space<vmem>>, vector<1x16x64xbf16>
    %120 = vector.shape_cast %119 : vector<1x16x64xbf16> to vector<16x64xbf16>
    %cst_38 = arith.constant dense<0.000000e+00> : vector<16x64xf32>
    %121 = tpu.matmul %118, %120, %cst_38 {dimension_numbers = #tpu.dot_dimension_numbers<[1], [0], [0], [1], [0, 0, 1, 1], [], []>} : vector<16x16xbf16>, vector<16x64xbf16>, vector<16x64xf32> -> vector<16x64xf32>
    %122 = arith.addf %97, %121 : vector<16x64xf32>
    %123 = vector.extract_strided_slice %15 {offsets = [1, 0], sizes = [1, 64], strides = [1, 1]} : vector<8x192xf32> to vector<1x64xf32>
    %124 = vector.broadcast %123 : vector<1x64xf32> to vector<16x64xf32>
    %125 = arith.addf %122, %124 : vector<16x64xf32>
    %126 = arith.addf %13, %125 : vector<16x64xf32>
    %127 = vector.extract_strided_slice %15 {offsets = [2, 0], sizes = [1, 64], strides = [1, 1]} : vector<8x192xf32> to vector<1x64xf32>
    %128 = vector.extract_strided_slice %15 {offsets = [3, 0], sizes = [1, 64], strides = [1, 1]} : vector<8x192xf32> to vector<1x64xf32>
    %cst_39 = arith.constant dense<0.000000e+00> : vector<16xf32>
    %129 = vector.multi_reduction <add>, %126, %cst_39 [1] : vector<16x64xf32> to vector<16xf32>
    %130 = vector.shape_cast %129 : vector<16xf32> to vector<16x1xf32>
    %cst_40 = arith.constant 6.400000e+01 : f32
    %131 = vector.broadcast %cst_40 : f32 to vector<16x1xf32>
    %132 = arith.divf %130, %131 : vector<16x1xf32>
    %133 = vector.broadcast %132 : vector<16x1xf32> to vector<16x64xf32>
    %134 = arith.subf %126, %133 : vector<16x64xf32>
    %135 = arith.mulf %134, %134 : vector<16x64xf32>
    %cst_41 = arith.constant dense<0.000000e+00> : vector<16xf32>
    %136 = vector.multi_reduction <add>, %135, %cst_41 [1] : vector<16x64xf32> to vector<16xf32>
    %137 = vector.shape_cast %136 : vector<16xf32> to vector<16x1xf32>
    %cst_42 = arith.constant 6.400000e+01 : f32
    %138 = vector.broadcast %cst_42 : f32 to vector<16x1xf32>
    %139 = arith.divf %137, %138 : vector<16x1xf32>
    %cst_43 = arith.constant 9.99999974E-6 : f32
    %140 = vector.broadcast %cst_43 : f32 to vector<16x1xf32>
    %141 = arith.addf %139, %140 : vector<16x1xf32>
    %142 = math.rsqrt %141 : vector<16x1xf32>
    %143 = vector.broadcast %132 : vector<16x1xf32> to vector<16x64xf32>
    %144 = arith.subf %126, %143 : vector<16x64xf32>
    %145 = vector.broadcast %142 : vector<16x1xf32> to vector<16x64xf32>
    %146 = arith.mulf %144, %145 : vector<16x64xf32>
    %147 = vector.broadcast %127 : vector<1x64xf32> to vector<16x64xf32>
    %148 = arith.mulf %146, %147 : vector<16x64xf32>
    %149 = vector.broadcast %128 : vector<1x64xf32> to vector<16x64xf32>
    %150 = arith.addf %148, %149 : vector<16x64xf32>
    %151 = arith.truncf %150 : vector<16x64xf32> to vector<16x64xbf16>
    %c0_44 = arith.constant 0 : index
    %c0_45 = arith.constant 0 : index
    %c0_46 = arith.constant 0 : index
    %152 = vector.load %arg4[%c0_44, %c0_45, %c0_46] : memref<2x64x128xbf16, #tpu.memory_space<vmem>>, vector<1x64x128xbf16>
    %153 = vector.shape_cast %152 : vector<1x64x128xbf16> to vector<64x128xbf16>
    %cst_47 = arith.constant dense<0.000000e+00> : vector<16x128xf32>
    %154 = tpu.matmul %151, %153, %cst_47 {dimension_numbers = #tpu.dot_dimension_numbers<[1], [0], [0], [1], [0, 0, 1, 1], [], []>} : vector<16x64xbf16>, vector<64x128xbf16>, vector<16x128xf32> -> vector<16x128xf32>
    %155 = vector.extract_strided_slice %15 {offsets = [4, 0], sizes = [1, 128], strides = [1, 1]} : vector<8x192xf32> to vector<1x128xf32>
    %156 = vector.broadcast %155 : vector<1x128xf32> to vector<16x128xf32>
    %157 = arith.addf %154, %156 : vector<16x128xf32>
    %cst_48 = arith.constant 0.000000e+00 : f32
    %158 = vector.broadcast %cst_48 : f32 to vector<16x128xf32>
    %159 = arith.maximumf %157, %158 : vector<16x128xf32>
    %160 = arith.truncf %159 : vector<16x128xf32> to vector<16x128xbf16>
    %c0_49 = arith.constant 0 : index
    %c0_50 = arith.constant 0 : index
    %c0_51 = arith.constant 0 : index
    %161 = vector.load %arg5[%c0_49, %c0_50, %c0_51] : memref<2x128x64xbf16, #tpu.memory_space<vmem>>, vector<1x128x64xbf16>
    %162 = vector.shape_cast %161 : vector<1x128x64xbf16> to vector<128x64xbf16>
    %cst_52 = arith.constant dense<0.000000e+00> : vector<16x64xf32>
    %163 = tpu.matmul %160, %162, %cst_52 {dimension_numbers = #tpu.dot_dimension_numbers<[1], [0], [0], [1], [0, 0, 1, 1], [], []>} : vector<16x128xbf16>, vector<128x64xbf16>, vector<16x64xf32> -> vector<16x64xf32>
    %164 = vector.extract_strided_slice %15 {offsets = [5, 0], sizes = [1, 64], strides = [1, 1]} : vector<8x192xf32> to vector<1x64xf32>
    %165 = vector.broadcast %164 : vector<1x64xf32> to vector<16x64xf32>
    %166 = arith.addf %163, %165 : vector<16x64xf32>
    %167 = arith.addf %150, %166 : vector<16x64xf32>
    %168 = vector.extract_strided_slice %15 {offsets = [6, 0], sizes = [1, 64], strides = [1, 1]} : vector<8x192xf32> to vector<1x64xf32>
    %169 = vector.extract_strided_slice %15 {offsets = [7, 0], sizes = [1, 64], strides = [1, 1]} : vector<8x192xf32> to vector<1x64xf32>
    %cst_53 = arith.constant dense<0.000000e+00> : vector<16xf32>
    %170 = vector.multi_reduction <add>, %167, %cst_53 [1] : vector<16x64xf32> to vector<16xf32>
    %171 = vector.shape_cast %170 : vector<16xf32> to vector<16x1xf32>
    %cst_54 = arith.constant 6.400000e+01 : f32
    %172 = vector.broadcast %cst_54 : f32 to vector<16x1xf32>
    %173 = arith.divf %171, %172 : vector<16x1xf32>
    %174 = vector.broadcast %173 : vector<16x1xf32> to vector<16x64xf32>
    %175 = arith.subf %167, %174 : vector<16x64xf32>
    %176 = arith.mulf %175, %175 : vector<16x64xf32>
    %cst_55 = arith.constant dense<0.000000e+00> : vector<16xf32>
    %177 = vector.multi_reduction <add>, %176, %cst_55 [1] : vector<16x64xf32> to vector<16xf32>
    %178 = vector.shape_cast %177 : vector<16xf32> to vector<16x1xf32>
    %cst_56 = arith.constant 6.400000e+01 : f32
    %179 = vector.broadcast %cst_56 : f32 to vector<16x1xf32>
    %180 = arith.divf %178, %179 : vector<16x1xf32>
    %cst_57 = arith.constant 9.99999974E-6 : f32
    %181 = vector.broadcast %cst_57 : f32 to vector<16x1xf32>
    %182 = arith.addf %180, %181 : vector<16x1xf32>
    %183 = math.rsqrt %182 : vector<16x1xf32>
    %184 = vector.broadcast %173 : vector<16x1xf32> to vector<16x64xf32>
    %185 = arith.subf %167, %184 : vector<16x64xf32>
    %186 = vector.broadcast %183 : vector<16x1xf32> to vector<16x64xf32>
    %187 = arith.mulf %185, %186 : vector<16x64xf32>
    %188 = vector.broadcast %168 : vector<1x64xf32> to vector<16x64xf32>
    %189 = arith.mulf %187, %188 : vector<16x64xf32>
    %190 = vector.broadcast %169 : vector<1x64xf32> to vector<16x64xf32>
    %191 = arith.addf %189, %190 : vector<16x64xf32>
    %c1_58 = arith.constant 1 : index
    %c0_59 = arith.constant 0 : index
    %c0_60 = arith.constant 0 : index
    %192 = vector.load %arg6[%c1_58, %c0_59, %c0_60] : memref<2x8x192xf32, #tpu.memory_space<vmem>>, vector<1x8x192xf32>
    %193 = vector.shape_cast %192 : vector<1x8x192xf32> to vector<8x192xf32>
    %194 = arith.truncf %191 : vector<16x64xf32> to vector<16x64xbf16>
    %c1_61 = arith.constant 1 : index
    %c0_62 = arith.constant 0 : index
    %c0_63 = arith.constant 0 : index
    %195 = vector.load %arg2[%c1_61, %c0_62, %c0_63] : memref<2x64x192xbf16, #tpu.memory_space<vmem>>, vector<1x64x192xbf16>
    %196 = vector.shape_cast %195 : vector<1x64x192xbf16> to vector<64x192xbf16>
    %cst_64 = arith.constant dense<0.000000e+00> : vector<16x192xf32>
    %197 = tpu.matmul %194, %196, %cst_64 {dimension_numbers = #tpu.dot_dimension_numbers<[1], [0], [0], [1], [0, 0, 1, 1], [], []>} : vector<16x64xbf16>, vector<64x192xbf16>, vector<16x192xf32> -> vector<16x192xf32>
    %198 = vector.extract_strided_slice %193 {offsets = [0, 0], sizes = [1, 192], strides = [1, 1]} : vector<8x192xf32> to vector<1x192xf32>
    %199 = vector.broadcast %198 : vector<1x192xf32> to vector<16x192xf32>
    %200 = arith.addf %197, %199 : vector<16x192xf32>
    %201 = arith.truncf %200 : vector<16x192xf32> to vector<16x192xbf16>
    %202 = vector.extract_strided_slice %201 {offsets = [0, 0], sizes = [16, 16], strides = [1, 1]} : vector<16x192xbf16> to vector<16x16xbf16>
    %203 = vector.shape_cast %202 : vector<16x16xbf16> to vector<2x8x16xbf16>
    %204 = vector.extract_strided_slice %201 {offsets = [0, 64], sizes = [16, 16], strides = [1, 1]} : vector<16x192xbf16> to vector<16x16xbf16>
    %205 = vector.shape_cast %204 : vector<16x16xbf16> to vector<2x8x16xbf16>
    %206 = vector.extract_strided_slice %201 {offsets = [0, 128], sizes = [16, 16], strides = [1, 1]} : vector<16x192xbf16> to vector<16x16xbf16>
    %207 = vector.shape_cast %206 : vector<16x16xbf16> to vector<2x8x16xbf16>
    "tpu.trace_start"() <{level = 10 : i32, message = "bqd,bkd->bqk"}> : () -> ()
    %cst_65 = arith.constant dense<0.000000e+00> : vector<2x8x8xf32>
    %208 = tpu.matmul %203, %205, %cst_65 {dimension_numbers = #tpu.dot_dimension_numbers<[2], [2], [1], [1], [0, 0, 0, 1, 1, 1], [0], [0]>} : vector<2x8x16xbf16>, vector<2x8x16xbf16>, vector<2x8x8xf32> -> vector<2x8x8xf32>
    "tpu.trace_stop"() : () -> ()
    %cst_66 = arith.constant dense<0xFF800000> : vector<2x8xf32>
    %209 = vector.multi_reduction <maximumf>, %208, %cst_66 [2] : vector<2x8x8xf32> to vector<2x8xf32>
    %210 = vector.shape_cast %209 : vector<2x8xf32> to vector<2x8x1xf32>
    %211 = vector.broadcast %210 : vector<2x8x1xf32> to vector<2x8x8xf32>
    %212 = arith.subf %208, %211 : vector<2x8x8xf32>
    %213 = math.exp %212 : vector<2x8x8xf32>
    %cst_67 = arith.constant dense<0.000000e+00> : vector<2x8xf32>
    %214 = vector.multi_reduction <add>, %213, %cst_67 [2] : vector<2x8x8xf32> to vector<2x8xf32>
    %215 = vector.shape_cast %214 : vector<2x8xf32> to vector<2x8x1xf32>
    %216 = tpu.reciprocal %215 {approx = true} : vector<2x8x1xf32> -> vector<2x8x1xf32>
    %217 = vector.broadcast %216 : vector<2x8x1xf32> to vector<2x8x8xf32>
    %218 = arith.mulf %213, %217 : vector<2x8x8xf32>
    %219 = arith.truncf %218 : vector<2x8x8xf32> to vector<2x8x8xbf16>
    "tpu.trace_start"() <{level = 10 : i32, message = "bqk,bkd->bqd"}> : () -> ()
    %cst_68 = arith.constant dense<0.000000e+00> : vector<2x8x16xf32>
    %220 = tpu.matmul %219, %207, %cst_68 {dimension_numbers = #tpu.dot_dimension_numbers<[2], [1], [1], [2], [0, 0, 0, 1, 1, 2], [0], [0]>} : vector<2x8x8xbf16>, vector<2x8x16xbf16>, vector<2x8x16xf32> -> vector<2x8x16xf32>
    "tpu.trace_stop"() : () -> ()
    %221 = vector.shape_cast %220 : vector<2x8x16xf32> to vector<16x16xf32>
    %222 = arith.truncf %221 : vector<16x16xf32> to vector<16x16xbf16>
    %c4 = arith.constant 4 : index
    %c0_69 = arith.constant 0 : index
    %c0_70 = arith.constant 0 : index
    %223 = vector.load %arg3[%c4, %c0_69, %c0_70] : memref<8x16x64xbf16, #tpu.memory_space<vmem>>, vector<1x16x64xbf16>
    %224 = vector.shape_cast %223 : vector<1x16x64xbf16> to vector<16x64xbf16>
    %cst_71 = arith.constant dense<0.000000e+00> : vector<16x64xf32>
    %225 = tpu.matmul %222, %224, %cst_71 {dimension_numbers = #tpu.dot_dimension_numbers<[1], [0], [0], [1], [0, 0, 1, 1], [], []>} : vector<16x16xbf16>, vector<16x64xbf16>, vector<16x64xf32> -> vector<16x64xf32>
    %226 = vector.extract_strided_slice %201 {offsets = [0, 16], sizes = [16, 16], strides = [1, 1]} : vector<16x192xbf16> to vector<16x16xbf16>
    %227 = vector.shape_cast %226 : vector<16x16xbf16> to vector<2x8x16xbf16>
    %228 = vector.extract_strided_slice %201 {offsets = [0, 80], sizes = [16, 16], strides = [1, 1]} : vector<16x192xbf16> to vector<16x16xbf16>
    %229 = vector.shape_cast %228 : vector<16x16xbf16> to vector<2x8x16xbf16>
    %230 = vector.extract_strided_slice %201 {offsets = [0, 144], sizes = [16, 16], strides = [1, 1]} : vector<16x192xbf16> to vector<16x16xbf16>
    %231 = vector.shape_cast %230 : vector<16x16xbf16> to vector<2x8x16xbf16>
    "tpu.trace_start"() <{level = 10 : i32, message = "bqd,bkd->bqk"}> : () -> ()
    %cst_72 = arith.constant dense<0.000000e+00> : vector<2x8x8xf32>
    %232 = tpu.matmul %227, %229, %cst_72 {dimension_numbers = #tpu.dot_dimension_numbers<[2], [2], [1], [1], [0, 0, 0, 1, 1, 1], [0], [0]>} : vector<2x8x16xbf16>, vector<2x8x16xbf16>, vector<2x8x8xf32> -> vector<2x8x8xf32>
    "tpu.trace_stop"() : () -> ()
    %cst_73 = arith.constant dense<0xFF800000> : vector<2x8xf32>
    %233 = vector.multi_reduction <maximumf>, %232, %cst_73 [2] : vector<2x8x8xf32> to vector<2x8xf32>
    %234 = vector.shape_cast %233 : vector<2x8xf32> to vector<2x8x1xf32>
    %235 = vector.broadcast %234 : vector<2x8x1xf32> to vector<2x8x8xf32>
    %236 = arith.subf %232, %235 : vector<2x8x8xf32>
    %237 = math.exp %236 : vector<2x8x8xf32>
    %cst_74 = arith.constant dense<0.000000e+00> : vector<2x8xf32>
    %238 = vector.multi_reduction <add>, %237, %cst_74 [2] : vector<2x8x8xf32> to vector<2x8xf32>
    %239 = vector.shape_cast %238 : vector<2x8xf32> to vector<2x8x1xf32>
    %240 = tpu.reciprocal %239 {approx = true} : vector<2x8x1xf32> -> vector<2x8x1xf32>
    %241 = vector.broadcast %240 : vector<2x8x1xf32> to vector<2x8x8xf32>
    %242 = arith.mulf %237, %241 : vector<2x8x8xf32>
    %243 = arith.truncf %242 : vector<2x8x8xf32> to vector<2x8x8xbf16>
    "tpu.trace_start"() <{level = 10 : i32, message = "bqk,bkd->bqd"}> : () -> ()
    %cst_75 = arith.constant dense<0.000000e+00> : vector<2x8x16xf32>
    %244 = tpu.matmul %243, %231, %cst_75 {dimension_numbers = #tpu.dot_dimension_numbers<[2], [1], [1], [2], [0, 0, 0, 1, 1, 2], [0], [0]>} : vector<2x8x8xbf16>, vector<2x8x16xbf16>, vector<2x8x16xf32> -> vector<2x8x16xf32>
    "tpu.trace_stop"() : () -> ()
    %245 = vector.shape_cast %244 : vector<2x8x16xf32> to vector<16x16xf32>
    %246 = arith.truncf %245 : vector<16x16xf32> to vector<16x16xbf16>
    %c5 = arith.constant 5 : index
    %c0_76 = arith.constant 0 : index
    %c0_77 = arith.constant 0 : index
    %247 = vector.load %arg3[%c5, %c0_76, %c0_77] : memref<8x16x64xbf16, #tpu.memory_space<vmem>>, vector<1x16x64xbf16>
    %248 = vector.shape_cast %247 : vector<1x16x64xbf16> to vector<16x64xbf16>
    %cst_78 = arith.constant dense<0.000000e+00> : vector<16x64xf32>
    %249 = tpu.matmul %246, %248, %cst_78 {dimension_numbers = #tpu.dot_dimension_numbers<[1], [0], [0], [1], [0, 0, 1, 1], [], []>} : vector<16x16xbf16>, vector<16x64xbf16>, vector<16x64xf32> -> vector<16x64xf32>
    %250 = arith.addf %225, %249 : vector<16x64xf32>
    %251 = vector.extract_strided_slice %201 {offsets = [0, 32], sizes = [16, 16], strides = [1, 1]} : vector<16x192xbf16> to vector<16x16xbf16>
    %252 = vector.shape_cast %251 : vector<16x16xbf16> to vector<2x8x16xbf16>
    %253 = vector.extract_strided_slice %201 {offsets = [0, 96], sizes = [16, 16], strides = [1, 1]} : vector<16x192xbf16> to vector<16x16xbf16>
    %254 = vector.shape_cast %253 : vector<16x16xbf16> to vector<2x8x16xbf16>
    %255 = vector.extract_strided_slice %201 {offsets = [0, 160], sizes = [16, 16], strides = [1, 1]} : vector<16x192xbf16> to vector<16x16xbf16>
    %256 = vector.shape_cast %255 : vector<16x16xbf16> to vector<2x8x16xbf16>
    "tpu.trace_start"() <{level = 10 : i32, message = "bqd,bkd->bqk"}> : () -> ()
    %cst_79 = arith.constant dense<0.000000e+00> : vector<2x8x8xf32>
    %257 = tpu.matmul %252, %254, %cst_79 {dimension_numbers = #tpu.dot_dimension_numbers<[2], [2], [1], [1], [0, 0, 0, 1, 1, 1], [0], [0]>} : vector<2x8x16xbf16>, vector<2x8x16xbf16>, vector<2x8x8xf32> -> vector<2x8x8xf32>
    "tpu.trace_stop"() : () -> ()
    %cst_80 = arith.constant dense<0xFF800000> : vector<2x8xf32>
    %258 = vector.multi_reduction <maximumf>, %257, %cst_80 [2] : vector<2x8x8xf32> to vector<2x8xf32>
    %259 = vector.shape_cast %258 : vector<2x8xf32> to vector<2x8x1xf32>
    %260 = vector.broadcast %259 : vector<2x8x1xf32> to vector<2x8x8xf32>
    %261 = arith.subf %257, %260 : vector<2x8x8xf32>
    %262 = math.exp %261 : vector<2x8x8xf32>
    %cst_81 = arith.constant dense<0.000000e+00> : vector<2x8xf32>
    %263 = vector.multi_reduction <add>, %262, %cst_81 [2] : vector<2x8x8xf32> to vector<2x8xf32>
    %264 = vector.shape_cast %263 : vector<2x8xf32> to vector<2x8x1xf32>
    %265 = tpu.reciprocal %264 {approx = true} : vector<2x8x1xf32> -> vector<2x8x1xf32>
    %266 = vector.broadcast %265 : vector<2x8x1xf32> to vector<2x8x8xf32>
    %267 = arith.mulf %262, %266 : vector<2x8x8xf32>
    %268 = arith.truncf %267 : vector<2x8x8xf32> to vector<2x8x8xbf16>
    "tpu.trace_start"() <{level = 10 : i32, message = "bqk,bkd->bqd"}> : () -> ()
    %cst_82 = arith.constant dense<0.000000e+00> : vector<2x8x16xf32>
    %269 = tpu.matmul %268, %256, %cst_82 {dimension_numbers = #tpu.dot_dimension_numbers<[2], [1], [1], [2], [0, 0, 0, 1, 1, 2], [0], [0]>} : vector<2x8x8xbf16>, vector<2x8x16xbf16>, vector<2x8x16xf32> -> vector<2x8x16xf32>
    "tpu.trace_stop"() : () -> ()
    %270 = vector.shape_cast %269 : vector<2x8x16xf32> to vector<16x16xf32>
    %271 = arith.truncf %270 : vector<16x16xf32> to vector<16x16xbf16>
    %c6 = arith.constant 6 : index
    %c0_83 = arith.constant 0 : index
    %c0_84 = arith.constant 0 : index
    %272 = vector.load %arg3[%c6, %c0_83, %c0_84] : memref<8x16x64xbf16, #tpu.memory_space<vmem>>, vector<1x16x64xbf16>
    %273 = vector.shape_cast %272 : vector<1x16x64xbf16> to vector<16x64xbf16>
    %cst_85 = arith.constant dense<0.000000e+00> : vector<16x64xf32>
    %274 = tpu.matmul %271, %273, %cst_85 {dimension_numbers = #tpu.dot_dimension_numbers<[1], [0], [0], [1], [0, 0, 1, 1], [], []>} : vector<16x16xbf16>, vector<16x64xbf16>, vector<16x64xf32> -> vector<16x64xf32>
    %275 = arith.addf %250, %274 : vector<16x64xf32>
    %276 = vector.extract_strided_slice %201 {offsets = [0, 48], sizes = [16, 16], strides = [1, 1]} : vector<16x192xbf16> to vector<16x16xbf16>
    %277 = vector.shape_cast %276 : vector<16x16xbf16> to vector<2x8x16xbf16>
    %278 = vector.extract_strided_slice %201 {offsets = [0, 112], sizes = [16, 16], strides = [1, 1]} : vector<16x192xbf16> to vector<16x16xbf16>
    %279 = vector.shape_cast %278 : vector<16x16xbf16> to vector<2x8x16xbf16>
    %280 = vector.extract_strided_slice %201 {offsets = [0, 176], sizes = [16, 16], strides = [1, 1]} : vector<16x192xbf16> to vector<16x16xbf16>
    %281 = vector.shape_cast %280 : vector<16x16xbf16> to vector<2x8x16xbf16>
    "tpu.trace_start"() <{level = 10 : i32, message = "bqd,bkd->bqk"}> : () -> ()
    %cst_86 = arith.constant dense<0.000000e+00> : vector<2x8x8xf32>
    %282 = tpu.matmul %277, %279, %cst_86 {dimension_numbers = #tpu.dot_dimension_numbers<[2], [2], [1], [1], [0, 0, 0, 1, 1, 1], [0], [0]>} : vector<2x8x16xbf16>, vector<2x8x16xbf16>, vector<2x8x8xf32> -> vector<2x8x8xf32>
    "tpu.trace_stop"() : () -> ()
    %cst_87 = arith.constant dense<0xFF800000> : vector<2x8xf32>
    %283 = vector.multi_reduction <maximumf>, %282, %cst_87 [2] : vector<2x8x8xf32> to vector<2x8xf32>
    %284 = vector.shape_cast %283 : vector<2x8xf32> to vector<2x8x1xf32>
    %285 = vector.broadcast %284 : vector<2x8x1xf32> to vector<2x8x8xf32>
    %286 = arith.subf %282, %285 : vector<2x8x8xf32>
    %287 = math.exp %286 : vector<2x8x8xf32>
    %cst_88 = arith.constant dense<0.000000e+00> : vector<2x8xf32>
    %288 = vector.multi_reduction <add>, %287, %cst_88 [2] : vector<2x8x8xf32> to vector<2x8xf32>
    %289 = vector.shape_cast %288 : vector<2x8xf32> to vector<2x8x1xf32>
    %290 = tpu.reciprocal %289 {approx = true} : vector<2x8x1xf32> -> vector<2x8x1xf32>
    %291 = vector.broadcast %290 : vector<2x8x1xf32> to vector<2x8x8xf32>
    %292 = arith.mulf %287, %291 : vector<2x8x8xf32>
    %293 = arith.truncf %292 : vector<2x8x8xf32> to vector<2x8x8xbf16>
    "tpu.trace_start"() <{level = 10 : i32, message = "bqk,bkd->bqd"}> : () -> ()
    %cst_89 = arith.constant dense<0.000000e+00> : vector<2x8x16xf32>
    %294 = tpu.matmul %293, %281, %cst_89 {dimension_numbers = #tpu.dot_dimension_numbers<[2], [1], [1], [2], [0, 0, 0, 1, 1, 2], [0], [0]>} : vector<2x8x8xbf16>, vector<2x8x16xbf16>, vector<2x8x16xf32> -> vector<2x8x16xf32>
    "tpu.trace_stop"() : () -> ()
    %295 = vector.shape_cast %294 : vector<2x8x16xf32> to vector<16x16xf32>
    %296 = arith.truncf %295 : vector<16x16xf32> to vector<16x16xbf16>
    %c7 = arith.constant 7 : index
    %c0_90 = arith.constant 0 : index
    %c0_91 = arith.constant 0 : index
    %297 = vector.load %arg3[%c7, %c0_90, %c0_91] : memref<8x16x64xbf16, #tpu.memory_space<vmem>>, vector<1x16x64xbf16>
    %298 = vector.shape_cast %297 : vector<1x16x64xbf16> to vector<16x64xbf16>
    %cst_92 = arith.constant dense<0.000000e+00> : vector<16x64xf32>
    %299 = tpu.matmul %296, %298, %cst_92 {dimension_numbers = #tpu.dot_dimension_numbers<[1], [0], [0], [1], [0, 0, 1, 1], [], []>} : vector<16x16xbf16>, vector<16x64xbf16>, vector<16x64xf32> -> vector<16x64xf32>
    %300 = arith.addf %275, %299 : vector<16x64xf32>
    %301 = vector.extract_strided_slice %193 {offsets = [1, 0], sizes = [1, 64], strides = [1, 1]} : vector<8x192xf32> to vector<1x64xf32>
    %302 = vector.broadcast %301 : vector<1x64xf32> to vector<16x64xf32>
    %303 = arith.addf %300, %302 : vector<16x64xf32>
    %304 = arith.addf %191, %303 : vector<16x64xf32>
    %305 = vector.extract_strided_slice %193 {offsets = [2, 0], sizes = [1, 64], strides = [1, 1]} : vector<8x192xf32> to vector<1x64xf32>
    %306 = vector.extract_strided_slice %193 {offsets = [3, 0], sizes = [1, 64], strides = [1, 1]} : vector<8x192xf32> to vector<1x64xf32>
    %cst_93 = arith.constant dense<0.000000e+00> : vector<16xf32>
    %307 = vector.multi_reduction <add>, %304, %cst_93 [1] : vector<16x64xf32> to vector<16xf32>
    %308 = vector.shape_cast %307 : vector<16xf32> to vector<16x1xf32>
    %cst_94 = arith.constant 6.400000e+01 : f32
    %309 = vector.broadcast %cst_94 : f32 to vector<16x1xf32>
    %310 = arith.divf %308, %309 : vector<16x1xf32>
    %311 = vector.broadcast %310 : vector<16x1xf32> to vector<16x64xf32>
    %312 = arith.subf %304, %311 : vector<16x64xf32>
    %313 = arith.mulf %312, %312 : vector<16x64xf32>
    %cst_95 = arith.constant dense<0.000000e+00> : vector<16xf32>
    %314 = vector.multi_reduction <add>, %313, %cst_95 [1] : vector<16x64xf32> to vector<16xf32>
    %315 = vector.shape_cast %314 : vector<16xf32> to vector<16x1xf32>
    %cst_96 = arith.constant 6.400000e+01 : f32
    %316 = vector.broadcast %cst_96 : f32 to vector<16x1xf32>
    %317 = arith.divf %315, %316 : vector<16x1xf32>
    %cst_97 = arith.constant 9.99999974E-6 : f32
    %318 = vector.broadcast %cst_97 : f32 to vector<16x1xf32>
    %319 = arith.addf %317, %318 : vector<16x1xf32>
    %320 = math.rsqrt %319 : vector<16x1xf32>
    %321 = vector.broadcast %310 : vector<16x1xf32> to vector<16x64xf32>
    %322 = arith.subf %304, %321 : vector<16x64xf32>
    %323 = vector.broadcast %320 : vector<16x1xf32> to vector<16x64xf32>
    %324 = arith.mulf %322, %323 : vector<16x64xf32>
    %325 = vector.broadcast %305 : vector<1x64xf32> to vector<16x64xf32>
    %326 = arith.mulf %324, %325 : vector<16x64xf32>
    %327 = vector.broadcast %306 : vector<1x64xf32> to vector<16x64xf32>
    %328 = arith.addf %326, %327 : vector<16x64xf32>
    %329 = arith.truncf %328 : vector<16x64xf32> to vector<16x64xbf16>
    %c1_98 = arith.constant 1 : index
    %c0_99 = arith.constant 0 : index
    %c0_100 = arith.constant 0 : index
    %330 = vector.load %arg4[%c1_98, %c0_99, %c0_100] : memref<2x64x128xbf16, #tpu.memory_space<vmem>>, vector<1x64x128xbf16>
    %331 = vector.shape_cast %330 : vector<1x64x128xbf16> to vector<64x128xbf16>
    %cst_101 = arith.constant dense<0.000000e+00> : vector<16x128xf32>
    %332 = tpu.matmul %329, %331, %cst_101 {dimension_numbers = #tpu.dot_dimension_numbers<[1], [0], [0], [1], [0, 0, 1, 1], [], []>} : vector<16x64xbf16>, vector<64x128xbf16>, vector<16x128xf32> -> vector<16x128xf32>
    %333 = vector.extract_strided_slice %193 {offsets = [4, 0], sizes = [1, 128], strides = [1, 1]} : vector<8x192xf32> to vector<1x128xf32>
    %334 = vector.broadcast %333 : vector<1x128xf32> to vector<16x128xf32>
    %335 = arith.addf %332, %334 : vector<16x128xf32>
    %cst_102 = arith.constant 0.000000e+00 : f32
    %336 = vector.broadcast %cst_102 : f32 to vector<16x128xf32>
    %337 = arith.maximumf %335, %336 : vector<16x128xf32>
    %338 = arith.truncf %337 : vector<16x128xf32> to vector<16x128xbf16>
    %c1_103 = arith.constant 1 : index
    %c0_104 = arith.constant 0 : index
    %c0_105 = arith.constant 0 : index
    %339 = vector.load %arg5[%c1_103, %c0_104, %c0_105] : memref<2x128x64xbf16, #tpu.memory_space<vmem>>, vector<1x128x64xbf16>
    %340 = vector.shape_cast %339 : vector<1x128x64xbf16> to vector<128x64xbf16>
    %cst_106 = arith.constant dense<0.000000e+00> : vector<16x64xf32>
    %341 = tpu.matmul %338, %340, %cst_106 {dimension_numbers = #tpu.dot_dimension_numbers<[1], [0], [0], [1], [0, 0, 1, 1], [], []>} : vector<16x128xbf16>, vector<128x64xbf16>, vector<16x64xf32> -> vector<16x64xf32>
    %342 = vector.extract_strided_slice %193 {offsets = [5, 0], sizes = [1, 64], strides = [1, 1]} : vector<8x192xf32> to vector<1x64xf32>
    %343 = vector.broadcast %342 : vector<1x64xf32> to vector<16x64xf32>
    %344 = arith.addf %341, %343 : vector<16x64xf32>
    %345 = arith.addf %328, %344 : vector<16x64xf32>
    %346 = vector.extract_strided_slice %193 {offsets = [6, 0], sizes = [1, 64], strides = [1, 1]} : vector<8x192xf32> to vector<1x64xf32>
    %347 = vector.extract_strided_slice %193 {offsets = [7, 0], sizes = [1, 64], strides = [1, 1]} : vector<8x192xf32> to vector<1x64xf32>
    %cst_107 = arith.constant dense<0.000000e+00> : vector<16xf32>
    %348 = vector.multi_reduction <add>, %345, %cst_107 [1] : vector<16x64xf32> to vector<16xf32>
    %349 = vector.shape_cast %348 : vector<16xf32> to vector<16x1xf32>
    %cst_108 = arith.constant 6.400000e+01 : f32
    %350 = vector.broadcast %cst_108 : f32 to vector<16x1xf32>
    %351 = arith.divf %349, %350 : vector<16x1xf32>
    %352 = vector.broadcast %351 : vector<16x1xf32> to vector<16x64xf32>
    %353 = arith.subf %345, %352 : vector<16x64xf32>
    %354 = arith.mulf %353, %353 : vector<16x64xf32>
    %cst_109 = arith.constant dense<0.000000e+00> : vector<16xf32>
    %355 = vector.multi_reduction <add>, %354, %cst_109 [1] : vector<16x64xf32> to vector<16xf32>
    %356 = vector.shape_cast %355 : vector<16xf32> to vector<16x1xf32>
    %cst_110 = arith.constant 6.400000e+01 : f32
    %357 = vector.broadcast %cst_110 : f32 to vector<16x1xf32>
    %358 = arith.divf %356, %357 : vector<16x1xf32>
    %cst_111 = arith.constant 9.99999974E-6 : f32
    %359 = vector.broadcast %cst_111 : f32 to vector<16x1xf32>
    %360 = arith.addf %358, %359 : vector<16x1xf32>
    %361 = math.rsqrt %360 : vector<16x1xf32>
    %362 = vector.broadcast %351 : vector<16x1xf32> to vector<16x64xf32>
    %363 = arith.subf %345, %362 : vector<16x64xf32>
    %364 = vector.broadcast %361 : vector<16x1xf32> to vector<16x64xf32>
    %365 = arith.mulf %363, %364 : vector<16x64xf32>
    %366 = vector.broadcast %346 : vector<1x64xf32> to vector<16x64xf32>
    %367 = arith.mulf %365, %366 : vector<16x64xf32>
    %368 = vector.broadcast %347 : vector<1x64xf32> to vector<16x64xf32>
    %369 = arith.addf %367, %368 : vector<16x64xf32>
    %370 = vector.shape_cast %369 : vector<16x64xf32> to vector<2x8x64xf32>
    %371 = vector.extract_strided_slice %370 {offsets = [0, 7, 0], sizes = [2, 1, 64], strides = [1, 1, 1]} : vector<2x8x64xf32> to vector<2x1x64xf32>
    %372 = vector.shape_cast %371 : vector<2x1x64xf32> to vector<2x64xf32>
    %373 = arith.truncf %372 : vector<2x64xf32> to vector<2x64xbf16>
    %c0_112 = arith.constant 0 : index
    %c0_113 = arith.constant 0 : index
    %374 = vector.load %arg7[%c0_112, %c0_113] : memref<320x256xbf16, #tpu.memory_space<vmem>>, vector<64x256xbf16>
    %c64 = arith.constant 64 : index
    %c0_114 = arith.constant 0 : index
    %375 = vector.load %arg7[%c64, %c0_114] : memref<320x256xbf16, #tpu.memory_space<vmem>>, vector<256x256xbf16>
    %cst_115 = arith.constant dense<0.000000e+00> : vector<2x256xf32>
    %376 = tpu.matmul %373, %374, %cst_115 {dimension_numbers = #tpu.dot_dimension_numbers<[1], [0], [0], [1], [0, 0, 1, 1], [], []>} : vector<2x64xbf16>, vector<64x256xbf16>, vector<2x256xf32> -> vector<2x256xf32>
    %c0_116 = arith.constant 0 : index
    %c0_117 = arith.constant 0 : index
    %377 = vector.load %arg8[%c0_116, %c0_117] : memref<2x256xf32, #tpu.memory_space<vmem>>, vector<1x256xf32>
    %378 = vector.broadcast %377 : vector<1x256xf32> to vector<2x256xf32>
    %379 = arith.addf %376, %378 : vector<2x256xf32>
    %cst_118 = arith.constant 0.000000e+00 : f32
    %380 = vector.broadcast %cst_118 : f32 to vector<2x256xf32>
    %381 = arith.maximumf %379, %380 : vector<2x256xf32>
    %382 = arith.truncf %381 : vector<2x256xf32> to vector<2x256xbf16>
    %cst_119 = arith.constant dense<0.000000e+00> : vector<2x256xf32>
    %383 = tpu.matmul %382, %375, %cst_119 {dimension_numbers = #tpu.dot_dimension_numbers<[1], [0], [0], [1], [0, 0, 1, 1], [], []>} : vector<2x256xbf16>, vector<256x256xbf16>, vector<2x256xf32> -> vector<2x256xf32>
    %c1_120 = arith.constant 1 : index
    %c0_121 = arith.constant 0 : index
    %384 = vector.load %arg8[%c1_120, %c0_121] : memref<2x256xf32, #tpu.memory_space<vmem>>, vector<1x256xf32>
    %385 = vector.broadcast %384 : vector<1x256xf32> to vector<2x256xf32>
    %386 = arith.addf %383, %385 : vector<2x256xf32>
    %cst_122 = arith.constant dense<0xFF800000> : vector<2xf32>
    %387 = vector.multi_reduction <maximumf>, %386, %cst_122 [1] : vector<2x256xf32> to vector<2xf32>
    %388 = vector.shape_cast %387 : vector<2xf32> to vector<2x1xf32>
    %389 = vector.broadcast %388 : vector<2x1xf32> to vector<2x256xf32>
    %390 = arith.subf %386, %389 : vector<2x256xf32>
    %391 = math.exp %390 : vector<2x256xf32>
    %cst_123 = arith.constant dense<0.000000e+00> : vector<2xf32>
    %392 = vector.multi_reduction <add>, %391, %cst_123 [1] : vector<2x256xf32> to vector<2xf32>
    %393 = vector.shape_cast %392 : vector<2xf32> to vector<2x1xf32>
    %394 = vector.broadcast %393 : vector<2x1xf32> to vector<2x256xf32>
    %395 = arith.divf %391, %394 : vector<2x256xf32>
    %c0_124 = arith.constant 0 : index
    %c0_125 = arith.constant 0 : index
    %396 = vector.load %arg9[%c0_124, %c0_125] : memref<2x256xf32, #tpu.memory_space<vmem>>, vector<2x256xf32>
    tpu.vector_store %arg9[%c0_124, %c0_125], %395 {strides = array<i32>} : memref<2x256xf32, #tpu.memory_space<vmem>>, vector<2x256xf32>,
    return
  }
}

</mosaic_0001>

<bundles_post_ra>
// kernel: forward.1
= control target key start
LH: loop header
LB: loop body
LE: loop exit
PB: predicated region body
PF: predicated region fallthrough
CT: control target
= control target key end

     0   :  { %14 = vsyncpa [#allocation3], 0  ;;  %s5628_s0 = inlined_call_operand.vmem [shape: s32[16,2], index: 0, kind: input, shape index: {}]   ;;  %s5629_s1 = inlined_call_operand.vmem [shape: bf16[320,64], index: 1, kind: input, shape index: {}]   ;;  %s5630_s2 = inlined_call_operand.vmem [shape: bf16[2,64,192], index: 2, kind: input, shape index: {}]   ;;  %s5631_s3 = inlined_call_operand.hbm [shape: bf16[8,16,64], index: 3, kind: input, shape index: {}]   ;;  %s5632_s4 = inlined_call_operand.hbm [shape: bf16[2,64,128], index: 4, kind: input, shape index: {}]   ;;  %s5633_s5 = inlined_call_operand.vmem [shape: bf16[2,128,64], index: 5, kind: input, shape index: {}]   ;;  %s5634_s6 = inlined_call_operand.vmem [shape: f32[2,8,192], index: 6, kind: input, shape index: {}]   ;;  %s5635_s7 = inlined_call_operand.vmem [shape: bf16[320,256], index: 7, kind: input, shape index: {}]   ;;  %s5636_s8 = inlined_call_operand.vmem [shape: f32[2,256], index: 8, kind: input, shape index: {}]   ;;  %s5637_s9 = inlined_call_operand.hbm [shape: f32[2,256], index: 9, kind: output, shape index: {}]  }
   0x1   :  { %15 = vsyncpa [#allocation6], 0 }
   0x2   :  { %16 = vsyncpa [#allocation4], 0  ;;  %s4722_s30 = smov [#allocation2]  }
   0x3   :  { %s28_s10 = sshll.u32 %s4722_s30, 4  ;;  %s29_s10 = int_to_ptr.vmem [resolvable:$true] %s28_s10 }
   0x4   :  { %s4664_s11 = scalar_lea.vmem %s29_s10, 1024  ;;  %p4669_p1 = scmp.lt.s32.totalorder %s29_s10, %s29_s10 }
   0x5   :  { %p4665_p0 = scmp.ne.s32.totalorder %s29_s10, %s4664_s11  ;;  %p4670_p2 = scmp.lt.s32.totalorder %s4664_s11, %s4664_s11 }
   0x7   :  { %p4671_p3 = por %p4670_p2, %p4669_p1 }
   0x9   :  { %p4672_p4 = pnand %p4671_p3, %p4665_p0 }
   0xb   :  { %4675 = shalt.err (!%p4672_p4)
}
   0xc   :  { %s4723_s12 = smov 64   ;;  %s4724_s13 = smov 4  }
   0xd   :  { %34 = dma.hbm_to_vmem [thread:$0]  %s5631_s3, 1024, %s29_s10, [#allocation3], %s4723_s12, %s4723_s12, %s4724_s13  }
   0xe   :  { %s4725_s16 = smov [#allocation5]  }
   0xf   :  { %s40_s17 = sshll.u32 %s4725_s16, 4  ;;  %s41_s17 = int_to_ptr.vmem [resolvable:$true] %s40_s17 }
  0x10   :  { %s4684_s18 = scalar_lea.vmem %s41_s17, 1024  ;;  %p4689_p6 = scmp.lt.s32.totalorder %s41_s17, %s41_s17 }
  0x11   :  { %p4685_p5 = scmp.ne.s32.totalorder %s41_s17, %s4684_s18  ;;  %p4690_p7 = scmp.lt.s32.totalorder %s4684_s18, %s4684_s18 }
  0x13   :  { %p4691_p8 = por %p4690_p7, %p4689_p6 }
  0x15   :  { %p4692_p9 = pnand %p4691_p8, %p4685_p5 }
  0x17   :  { %4695 = shalt.err (!%p4692_p9)
}
  0x18   :  { %46 = dma.hbm_to_vmem [thread:$0]  %s5632_s4, 1024, %s41_s17, [#allocation6], %s4723_s12, %s4723_s12, %s4724_s13  }
  0x19   :  { %4716 = dma.done.wait [#allocation3], 1024  }
  0x1a   :  { %4717 = vsyncadd [#allocation3], 4294966272 }
  0x1b   :  { %4718 = dma.done.wait [#allocation6], 1024  }
  0x1c   :  { %4719 = vsyncadd [#allocation6], 4294966272  ;;  %v4726_v0 = vmov 1   ;;  %v4727_v1 = vmov 0   ;;  %v4728_v2 = vmov 0.0   ;;  %v62_v3 = vld [vmem:[%s5628_s0] sm:$0xff]  ;;  %v64_v21 = vlaneseq }
  0x1d   :  { %4431 = vset.pattern.permute.xlu1 %v4726_v0  ;;  %4430 = vset.pattern.permute.xlu0 %v4727_v1  ;;  %v63_v4 = vld [vmem:[%s5628_s0 + $0x8] sm:$0xff]  ;;  %v4433_v5 = vld [vmem:[%s5629_s1 + $0x78] sm:$0xff]   ;;  %v4435_v7 = vld [vmem:[%s5629_s1 + $0x70] sm:$0xff]   ;;  %vm4729_vm0 = vmmov 0   ;;  %v4730_v29 = vmov 1.0|1.0  }
  0x1e   :  { %4110 = vmatprep.subr.bf16.mxu0 %v4728_v2  ;;  %81 = vperm.xlu1 %4431, %v62_v3   ;;  %v4434_v6 = vld [vmem:[%s5629_s1 + $0x38] sm:$0xff]   ;;  %v4436_v8 = vld [vmem:[%s5629_s1 + $0x30] sm:$0xff]   ;;  %v4437_v9 = vld [vmem:[%s5629_s1 + $0x68] sm:$0xff]   ;;  %v65_v22 = vand.u32 127, %v64_v21  ;;  %v4914_v58 = vshrl.u32 %v64_v21, 7  ;;  %s4731_s15 = smov 48  }
  0x1f   :  { %69 = vperm.xlu0 %4430, %v62_v3   ;;  %3963 = vmatprep.subr.bf16.mxu1 %v4433_v5  ;;  %v4438_v10 = vld [vmem:[%s5629_s1 + $0x28] sm:$0xff]   ;;  %v4439_v11 = vld [vmem:[%s5629_s1 + $0x60] sm:$0xff]   ;;  %v4441_v13 = vld [vmem:[%s5629_s1 + $0x58] sm:$0xff]   ;;  %s4732_s16 = smov 112   ;;  %s4733_s17 = smov 32  }
  0x20   :  { %3964 = vmatpush3.bf16.msra.mxu1 %v4434_v6  ;;  %v4440_v12 = vld [vmem:[%s5629_s1 + $0x20] sm:$0xff]   ;;  %v4442_v14 = vld [vmem:[%s5629_s1 + $0x18] sm:$0xff]   ;;  %v4443_v15 = vld [vmem:[%s5629_s1 + $0x50] sm:$0xff]   ;;  %4112 = vmatprep.mubr.msk.bf16.mxu0 %vm4729_vm0, %v4728_v2  ;;  %v66_v23 = vadd.s32 128, %v65_v22  ;;  %v67_v31 = vadd.s32 256, %v65_v22  ;;  %v4917_v59 = vsub.s32 0, %v4914_v58 }
  0x21   :  { %3965 = vmatprep.subr.bf16.mxu1 %v4435_v7  ;;  %v4444_v16 = vld [vmem:[%s5629_s1 + $0x10] sm:$0xff]   ;;  %v4445_v17 = vld [vmem:[%s5629_s1 + $0x48] sm:$0xff]   ;;  %v4447_v19 = vld [vmem:[%s5629_s1 + $0x40] sm:$0xff]   ;;  %s4734_s18 = smov 96   ;;  %s4735_s19 = smov 16  }
  0x22   :  { %84 = vperm.xlu1 %4431, %v63_v4   ;;  %v4446_v18 = vld [vmem:[%s5629_s1 + $0x8] sm:$0xff]   ;;  %v4448_v20 = vld [vmem:[%s5629_s1] sm:$0xff]   ;;  %v4449_v28 = vld [vmem:[%s5629_s1 + $0x98] sm:$0xff]   ;;  %s4736_s20 = smov 80  }
  0x23   :  { %72 = vperm.xlu0 %4430, %v63_v4   ;;  %v4450_v30 = vld [vmem:[%s5629_s1 + $0x90] sm:$0xff]   ;;  %v4451_v32 = vld [vmem:[%s5629_s1 + $0x88] sm:$0xff]   ;;  %v4452_v33 = vld [vmem:[%s5629_s1 + $0x80] sm:$0xff]  }
  0x24   :  { %3966 = vmatpush3.bf16.msra.mxu1 %v4436_v8  ;;  %v4453_v37 = vld [vmem:[%s5630_s2 + $0x30] ss:$8 sps:$4 sm:$0xff]   ;;  %v4455_v38 = vld [vmem:[%s5630_s2 + $0x34] ss:$8 sps:$4 sm:$0xff]   ;;  %v4458_v39 = vld [vmem:[%s5630_s2 + $0x24] ss:$8 sps:$4 sm:$0xff]  }
  0x25   :  { %3967 = vmatprep.subr.bf16.mxu1 %v4437_v9  ;;  %v4456_v40 = vld [vmem:[%s5630_s2 + $0x20] ss:$8 sps:$4 sm:$0xff]   ;;  %v4461_v41 = vld [vmem:[%s5630_s2 + $0x14] ss:$8 sps:$4 sm:$0xff]   ;;  %v4459_v42 = vld [vmem:[%s5630_s2 + $0x10] ss:$8 sps:$4 sm:$0xff]  }
  0x26   :  { %v4464_v43 = vld [vmem:[%s5630_s2 + $0x4] ss:$8 sps:$4 sm:$0xff]   ;;  %v4462_v44 = vld [vmem:[%s5630_s2] ss:$8 sps:$4 sm:$0xff]  }
  0x27   :  { %4432 = vset.pattern.permute.xlu0 %v4726_v0  ;;  %v4922_v60 = vld [vmem:[%s5634_s6] sm:$0xff]  ;;  %v360_v7 = vld [vmem:[%s5634_s6 + $0x8] sm:$0xff] }
  0x28   :  { %3968 = vmatpush3.bf16.msra.mxu1 %v4438_v10  ;;  %v373_v61 = vrot.slane %v4922_v60, %v4917_v59  ;;  %v377_v8 = vrot.slane %v360_v7, %v4917_v59 }
  0x29   :  { %3969 = vmatprep.subr.bf16.mxu1 %v4439_v11 }
  0x2c   :  { %3970 = vmatpush3.bf16.msra.mxu1 %v4440_v12 }
  0x2d   :  { %3971 = vmatprep.subr.bf16.mxu1 %v4441_v13 }
  0x30   :  { %3972 = vmatpush3.bf16.msra.mxu1 %v4442_v14 }
  0x31   :  { %3973 = vmatprep.subr.bf16.mxu1 %v4443_v15 }
  0x34   :  { %3974 = vmatpush3.bf16.msra.mxu1 %v4444_v16 }
  0x35   :  { %3975 = vmatprep.subr.bf16.mxu1 %v4445_v17 }
  0x38   :  { %3976 = vmatpush3.bf16.msra.mxu1 %v4446_v18 }
  0x39   :  { %3977 = vmatprep.subr.bf16.mxu1 %v4447_v19 }
  0x3c   :  { %3978 = vmatpush3.bf16.msra.mxu1 %v4448_v20 }
  0x3d   :  { %4098 = vmatprep.subr.bf16.mxu1 %v4728_v2 }
  0x99   :  { %v82_v24 = vpop.permute.xlu1 %81 }
  0x9a   :  { %v70_v25 = vpop.permute.xlu0 %69  ;;  %vm87_vm2 = vcmp.eq.s32.totalorder %v66_v23, %v82_v24  ;;  %vm86_vm3 = vcmp.eq.s32.totalorder %v65_v22, %v82_v24 }
  0x9b   :  { %vm75_vm1 = vcmp.eq.s32.totalorder %v66_v23, %v70_v25  ;;  %vm74_vm4 = vcmp.eq.s32.totalorder %v65_v22, %v70_v25 }
  0x9c   :  { %vm93_vm5 = vmor %vm75_vm1, %vm87_vm2  ;;  %vm88_vm2 = vcmp.eq.s32.totalorder %v67_v31, %v82_v24 }
  0x9d   :  { %v85_v26 = vpop.permute.xlu1 %84  ;;  %vm92_vm10 = vmor %vm74_vm4, %vm86_vm3  ;;  %vm76_vm3 = vcmp.eq.s32.totalorder %v67_v31, %v70_v25 }
  0x9e   :  { %v73_v27 = vpop.permute.xlu0 %72  ;;  %vm89_vm6 = vcmp.eq.s32.totalorder %v65_v22, %v85_v26  ;;  %vm90_vm9 = vcmp.eq.s32.totalorder %v66_v23, %v85_v26  ;;  %vm91_vm15 = vcmp.eq.s32.totalorder %v67_v31, %v85_v26 }
  0x9f   :  { %vm77_vm7 = vcmp.eq.s32.totalorder %v65_v22, %v73_v27  ;;  %vm78_vm8 = vcmp.eq.s32.totalorder %v66_v23, %v73_v27  ;;  %vm79_vm1 = vcmp.eq.s32.totalorder %v67_v31, %v73_v27 }
  0xa0   :  { %vm96_vm11 = vmor %vm78_vm8, %vm90_vm9  ;;  %vm601_vm8 = vcmask 1043456   ;;  %vm573_vm9 = vcmask 64512  }
  0xa1   :  { %vm3781_vm12 = vmpackc.low %vm96_vm11, %vm93_vm5 }
  0xa2   :  { %3782 = vmatprep.mubr.msk.bf16.mxu1 %vm3781_vm12, %v4730_v29  ;;  %vm95_vm13 = vmor %vm77_vm7, %vm89_vm6  ;;  %vm273_vm6 = vcmask 523264   ;;  %vm478_vm7 = vcmask 130048  }
  0xa3   :  { %vm3783_vm14 = vmpackc.low %vm95_vm13, %vm92_vm10  ;;  %vm3707_vm10 = vcmask 1041408  }
  0xa4   :  { %3784 = vmatmul.mubr.msk.bf16.vlgmr.msra.gmra.mxu1 %vm3783_vm14, %v4730_v29  ;;  %vm97_vm4 = vmor %vm79_vm1, %vm91_vm15 }
  0xa5   :  { %4099 = vmatpush3.bf16.msra.mxu1 %v4449_v28  ;;  %4106 = vmatprep.mubr.msk.bf16.mxu1 %vm4729_vm0, %v4728_v2  ;;  %vm94_vm5 = vmor %vm76_vm3, %vm88_vm2  ;;  %v3760_v34 = vsel %vm97_vm4, 1.0, %v4728_v2 }
  0xa6   :  { %4100 = vmatprep.subr.bf16.mxu1 %v4728_v2  ;;  %v3757_v35 = vsel %vm94_vm5, 1.0, %v4728_v2 }
  0xa7   :  { %v112_v36 = vpack.c.bf16 %v3760_v34, %v3757_v35 }
  0xa9   :  { %4101 = vmatpush3.bf16.msra.mxu1 %v4450_v30 }
  0xaa   :  { %4102 = vmatprep.subr.bf16.mxu1 %v4728_v2 }
  0xad   :  { %4103 = vmatpush3.bf16.msra.mxu1 %v4451_v32 }
  0xae   :  { %4104 = vmatprep.subr.bf16.mxu1 %v4728_v2 }
  0xb1   :  { %4105 = vmatpush3.bf16.msra.mxu1 %v4452_v33 }
  0xb2   :  { %429 = vmatprep.subr.bf16.mxu1 %v4455_v38 }
  0xb4   :  { %4107 = vmatmul.mubr.msk.bf16.vlgmr.msra.gmra.mxu1 %vm273_vm6, %v112_v36 }
  0xb5   :  { %453 = vmatprep.mubr.bf16.mxu1 %v4727_v1  ;;  %430 = vmatpush1.bf16.msra.mxu1 %v4453_v37 }
  0xb6   :  { %431 = vmatprep.subr.bf16.mxu1 %v4458_v39 }
  0xb9   :  { %432 = vmatpush1.bf16.msra.mxu1 %v4456_v40 }
  0xba   :  { %433 = vmatprep.subr.bf16.mxu1 %v4461_v41 }
  0xbd   :  { %434 = vmatpush1.bf16.msra.mxu1 %v4459_v42 }
  0xbe   :  { %435 = vmatprep.subr.bf16.mxu1 %v4464_v43 }
  0xc1   :  { %436 = vmatpush1.bf16.msra.mxu1 %v4462_v44 }
  0xc2   :  { %4116 = vmatprep.subr.bf16.mxu1 %v4728_v2 }
 0x164   :  { %v3979_v45 = vpop.f32.mrf.mxu1 }
 0x166   :  { %v3980_v46 = vpop.f32.mrf.mxu1 }
 0x167   :  { %v3981_v51 = vadd.f32 %v3980_v46, %v3979_v45 }
 0x168   :  { %v3982_v47 = vpop.f32.mrf.mxu1 }
 0x16a   :  { %v3983_v48 = vpop.f32.mrf.mxu1 }
 0x16b   :  { %v3984_v52 = vadd.f32 %v3983_v48, %v3982_v47 }
 0x174   :  { %v352_v49 = vpop.f32.mrf.mxu1 }
 0x175   :  { %v4904_v54 = vadd.f32 %v3981_v51, %v352_v49 }
 0x176   :  { %v4108_v50 = vpop.f32.mrf.mxu1 }
 0x178   :  { %v355_v53 = vpop.f32.mrf.mxu1 }
 0x179   :  { %v4906_v55 = vadd.f32 %v3984_v52, %v355_v53 }
 0x17a   :  { %v4109_v56 = vpop.f32.mrf.mxu1 }
 0x17b   :  { %v361_v57 = vpack.c.bf16 %v4906_v55, %v4904_v54 }
 0x17d   :  { %3794 = vmatmul.mubr.msk.bf16.vlgmr.msra.gmra.mxu1 %vm273_vm6, %v361_v57 }
 0x17e   :  { %4118 = vmatprep.mubr.msk.bf16.mxu1 %vm4729_vm0, %v4728_v2 }
 0x23d   :  { %v455_v62 = vpop.f32.mrf.mxu1 }
 0x23e   :  { %v456_v63 = vadd.f32 %v455_v62, %v373_v61 }
 0x23f   :  { %v457_v0 = vpop.f32.mrf.mxu1 }
 0x240   :  { %v4926_v3 = vpack.c.bf16 %v456_v63, %v456_v63  ;;  %v458_v10 = vadd.f32 %v457_v0, %v377_v8 }
 0x241   :  { %v459_v4 = vpop.f32.mrf.mxu1 }
 0x242   :  { %v460_v5 = vadd.f32 %v459_v4, %v373_v61  ;;  %476 = vrot.lane.b32.xlu0 %v4926_v3, %s4723_s12  ;;  %v4940_v14 = vpack.c.bf16 %v458_v10, %v458_v10 }
 0x243   :  { %v461_v12 = vpop.f32.mrf.mxu1 }
 0x244   :  { %v4930_v6 = vpack.c.bf16 %v460_v5, %v460_v5  ;;  %v462_v15 = vadd.f32 %v461_v12, %v377_v8  ;;  %v603_v18 = vsel %vm601_vm8, %v4940_v14, 0 }
 0x246   :  { %525 = vrot.lane.b32.xlu1 %v4930_v6, %s4723_s12  ;;  %v4944_v17 = vpack.c.bf16 %v462_v15, %v462_v15 }
 0x248   :  { %v649_v19 = vsel %vm601_vm8, %v4944_v17, 0 }
 0x2b4   :  { %v477_v9 = vpop.permute.xlu0 %476 }
 0x2b5   :  { %v483_v11 = vsel %vm478_vm7, %v477_v9, 0 }
 0x2b6   :  { %4111 = vmatpush3.bf16.xpose.msra.mxu0 %v483_v11 }
 0x2b7   :  { %4122 = vmatprep.subr.bf16.mxu0 %v4728_v2 }
 0x2b8   :  { %v526_v13 = vpop.permute.xlu1 %525 }
 0x2b9   :  { %v531_v16 = vsel %vm478_vm7, %v526_v13, 0 }
 0x2ba   :  { %4117 = vmatpush3.bf16.xpose.msra.mxu1 %v531_v16 }
 0x2bb   :  { %4128 = vmatprep.subr.bf16.mxu1 %v4728_v2 }
 0x2bd   :  { %4113 = vmatmul.mubr.msk.bf16.vlgmr.msra.gmra.mxu0 %vm478_vm7, %v4926_v3 }
 0x2be   :  { %4123 = vmatpush3.bf16.msra.mxu0 %v603_v18  ;;  %4124 = vmatprep.mubr.msk.bf16.mxu0 %vm4729_vm0, %v4728_v2 }
 0x2bf   :  { %4134 = vmatprep.subr.bf16.mxu0 %v4728_v2 }
 0x2c1   :  { %4119 = vmatmul.mubr.msk.bf16.vlgmr.msra.gmra.mxu1 %vm478_vm7, %v4930_v6 }
 0x2c2   :  { %4129 = vmatpush3.bf16.msra.mxu1 %v649_v19  ;;  %4130 = vmatprep.mubr.msk.bf16.mxu1 %vm4729_vm0, %v4728_v2 }
 0x2c3   :  { %4140 = vmatprep.subr.bf16.mxu1 %v4728_v2 }
 0x37d   :  { %v519_v20 = vpop.f32.mrf.mxu0 }
 0x37e   :  { %v574_v21 = vsel %vm573_vm9, %v519_v20, -inf }
 0x37f   :  { %575 = vmax.xlane.f32.xlu0 %v574_v21  ;;  %v4114_v22 = vpop.f32.mrf.mxu0 }
 0x381   :  { %v522_v23 = vpop.f32.mrf.mxu0  ;;  %v567_v24 = vpop.f32.mrf.mxu1 }
 0x382   :  { %v577_v25 = vsel %vm573_vm9, %v567_v24, -inf }
 0x383   :  { %578 = vmax.xlane.f32.xlu1 %v577_v25  ;;  %v4115_v26 = vpop.f32.mrf.mxu0  ;;  %v4120_v27 = vpop.f32.mrf.mxu1 }
 0x385   :  { %v570_v28 = vpop.f32.mrf.mxu1 }
 0x387   :  { %v4121_v29 = vpop.f32.mrf.mxu1 }
 0x394   :  { %696 = vrot.lane.b32.xlu1 %v4926_v3, %s4731_s15 }
 0x398   :  { %694 = vrot.lane.b32.xlu1 %v4926_v3, %s4732_s16 }
 0x39c   :  { %744 = vrot.lane.b32.xlu1 %v4930_v6, %s4732_s16 }
 0x408   :  { %v576_v30 = vpop.xlane.xlu0 %575 }
 0x409   :  { %v580_v31 = vsub.f32 %v519_v20, %v576_v30 }
 0x40b   :  { %v582_v32 = vmul.f32 1.442695, %v580_v31 }
 0x40c   :  { %v579_v33 = vpop.xlane.xlu1 %578 }
 0x40d   :  { %4569 = vpow2.f32 %v582_v32  ;;  %v581_v34 = vsub.f32 %v567_v24, %v579_v33 }
 0x40f   :  { %v584_v35 = vmul.f32 1.442695, %v581_v34 }
 0x410   :  { %v697_v44 = vpop.permute.xlu1 %696 }
 0x411   :  { %4571 = vpow2.f32 %v584_v35  ;;  %v702_v47 = vsel %vm478_vm7, %v697_v44, 0 }
 0x414   :  { %v695_v52 = vpop.permute.xlu1 %694 }
 0x418   :  { %v745_v53 = vpop.permute.xlu1 %744 }
 0x41a   :  { %v4570_v36 = vpop.eup %4569 }
 0x41b   :  { %v586_v37 = vsel %vm573_vm9, %v4570_v36, 0.0 }
 0x41c   :  { %587 = vadd.xlane.f32.xlu0 %v586_v37 }
 0x41e   :  { %v4572_v38 = vpop.eup %4571 }
 0x41f   :  { %v589_v39 = vsel %vm573_vm9, %v4572_v38, 0.0 }
 0x420   :  { %590 = vadd.xlane.f32.xlu0 %v589_v39 }
 0x436   :  { %746 = vrot.lane.b32.xlu0 %v4930_v6, %s4731_s15 }
 0x4a5   :  { %v588_v40 = vpop.xlane.xlu0 %587 }
 0x4a6   :  { %4573 = vrcp.f32 %v588_v40 }
 0x4a9   :  { %v591_v41 = vpop.xlane.xlu0 %590 }
 0x4aa   :  { %4575 = vrcp.f32 %v591_v41  ;;  %v4465_v41 = vld [vmem:[#allocation2] sm:$0xff]  }
 0x4ad   :  { %v747_v49 = vpop.permute.xlu0 %746 }
 0x4ae   :  { %v752_v51 = vsel %vm478_vm7, %v747_v49, 0 }
 0x4b3   :  { %v4574_v42 = vpop.eup %4573 }
 0x4b4   :  { %v594_v43 = vmul.f32 %v4574_v42, %v4570_v36 }
 0x4b6   :  { %v596_v45 = vpack.c.bf16 %v594_v43, %v594_v43 }
 0x4b7   :  { %v4576_v46 = vpop.eup %4575 }
 0x4b8   :  { %4125 = vmatmul.mubr.msk.bf16.vlgmr.msra.gmra.mxu0 %vm573_vm9, %v596_v45  ;;  %v595_v48 = vmul.f32 %v4576_v46, %v4572_v38 }
 0x4b9   :  { %4135 = vmatpush3.bf16.xpose.msra.mxu0 %v702_v47  ;;  %4136 = vmatprep.mubr.msk.bf16.mxu0 %vm4729_vm0, %v4728_v2  ;;  %v4466_v47 = vld [vmem:[#allocation2 + $0x8] sm:$0xff]  }
 0x4ba   :  { %v597_v50 = vpack.c.bf16 %v595_v48, %v595_v48  ;;  %4146 = vmatprep.subr.bf16.mxu0 %v4728_v2 }
 0x4bc   :  { %4131 = vmatmul.mubr.msk.bf16.vlgmr.msra.gmra.mxu1 %vm573_vm9, %v597_v50 }
 0x4bd   :  { %4141 = vmatpush3.bf16.xpose.msra.mxu1 %v752_v51  ;;  %4142 = vmatprep.mubr.msk.bf16.mxu1 %vm4729_vm0, %v4728_v2 }
 0x4be   :  { %4152 = vmatprep.subr.bf16.mxu1 %v4728_v2 }
 0x4c0   :  { %4137 = vmatmul.mubr.msk.bf16.vlgmr.msra.gmra.mxu0 %vm478_vm7, %v695_v52 }
 0x4c1   :  { %4148 = vmatprep.mubr.msk.bf16.mxu0 %vm4729_vm0, %v4728_v2 }
 0x4c4   :  { %4143 = vmatmul.mubr.msk.bf16.vlgmr.msra.gmra.mxu1 %vm478_vm7, %v745_v53 }
 0x4c5   :  { %4154 = vmatprep.mubr.msk.bf16.mxu1 %vm4729_vm0, %v4728_v2 }
 0x578   :  { %v4988_v56 = vpop.f32.mrf.mxu0 }
 0x57a   :  { %v4126_v57 = vpop.f32.mrf.mxu0 }
 0x57c   :  { %v642_v61 = vpop.f32.mrf.mxu0  ;;  %v4990_v62 = vpop.f32.mrf.mxu1 }
 0x57d   :  { %v691_v63 = vpack.c.bf16 %v4990_v62, %v4988_v56 }
 0x57e   :  { %v4127_v0 = vpop.f32.mrf.mxu0  ;;  %v4132_v4 = vpop.f32.mrf.mxu1 }
 0x580   :  { %v688_v5 = vpop.f32.mrf.mxu1  ;;  %v738_v7 = vpop.f32.mrf.mxu0 }
 0x581   :  { %v794_v8 = vsel %vm573_vm9, %v738_v7, -inf }
 0x582   :  { %v4133_v9 = vpop.f32.mrf.mxu1  ;;  %795 = vmax.xlane.f32.xlu0 %v794_v8  ;;  %v4138_v10 = vpop.f32.mrf.mxu0 }
 0x584   :  { %v741_v11 = vpop.f32.mrf.mxu0  ;;  %v788_v12 = vpop.f32.mrf.mxu1 }
 0x585   :  { %v797_v13 = vsel %vm573_vm9, %v788_v12, -inf }
 0x586   :  { %798 = vmax.xlane.f32.xlu1 %v797_v13  ;;  %v4139_v15 = vpop.f32.mrf.mxu0  ;;  %v4144_v16 = vpop.f32.mrf.mxu1 }
 0x588   :  { %v791_v18 = vpop.f32.mrf.mxu1 }
 0x58a   :  { %v4145_v19 = vpop.f32.mrf.mxu1 }
 0x597   :  { %818 = vrot.lane.b32.xlu1 %v4940_v14, %s4732_s16 }
 0x59b   :  { %1020 = vrot.lane.b32.xlu1 %v4926_v3, %s4733_s17 }
 0x59f   :  { %1070 = vrot.lane.b32.xlu1 %v4930_v6, %s4733_s17 }
 0x5a3   :  { %1068 = vrot.lane.b32.xlu1 %v4930_v6, %s4734_s18 }
 0x60b   :  { %v796_v20 = vpop.xlane.xlu0 %795 }
 0x60c   :  { %v800_v21 = vsub.f32 %v738_v7, %v796_v20 }
 0x60e   :  { %v802_v22 = vmul.f32 1.442695, %v800_v21 }
 0x60f   :  { %v799_v23 = vpop.xlane.xlu1 %798 }
 0x610   :  { %4577 = vpow2.f32 %v802_v22  ;;  %v801_v24 = vsub.f32 %v788_v12, %v799_v23 }
 0x612   :  { %v804_v25 = vmul.f32 1.442695, %v801_v24 }
 0x613   :  { %v819_v26 = vpop.permute.xlu1 %818 }
 0x614   :  { %4579 = vpow2.f32 %v804_v25  ;;  %v824_v27 = vsel %vm601_vm8, %v819_v26, 0 }
 0x615   :  { %4147 = vmatpush3.bf16.msra.mxu0 %v824_v27 }
 0x616   :  { %4158 = vmatprep.subr.bf16.mxu0 %v4728_v2 }
 0x617   :  { %v1021_v43 = vpop.permute.xlu1 %1020 }
 0x618   :  { %v1026_v57 = vsel %vm478_vm7, %v1021_v43, 0 }
 0x61b   :  { %v1071_v44 = vpop.permute.xlu1 %1070 }
 0x61c   :  { %v1076_v45 = vsel %vm478_vm7, %v1071_v44, 0 }
 0x61d   :  { %v4578_v28 = vpop.eup %4577 }
 0x61e   :  { %v806_v29 = vsel %vm573_vm9, %v4578_v28, 0.0 }
 0x61f   :  { %807 = vadd.xlane.f32.xlu0 %v806_v29  ;;  %v1069_v46 = vpop.permute.xlu1 %1068 }
 0x621   :  { %v4580_v30 = vpop.eup %4579 }
 0x622   :  { %v809_v31 = vsel %vm573_vm9, %v4580_v30, 0.0 }
 0x623   :  { %810 = vadd.xlane.f32.xlu0 %v809_v31 }
 0x639   :  { %866 = vrot.lane.b32.xlu0 %v4944_v17, %s4732_s16 }
 0x63d   :  { %1018 = vrot.lane.b32.xlu0 %v4926_v3, %s4734_s18 }
 0x6a8   :  { %v808_v32 = vpop.xlane.xlu0 %807 }
 0x6a9   :  { %4581 = vrcp.f32 %v808_v32 }
 0x6ac   :  { %v811_v33 = vpop.xlane.xlu0 %810 }
 0x6ad   :  { %4583 = vrcp.f32 %v811_v33 }
 0x6b0   :  { %v867_v34 = vpop.permute.xlu0 %866 }
 0x6b1   :  { %v872_v35 = vsel %vm601_vm8, %v867_v34, 0 }
 0x6b2   :  { %4153 = vmatpush3.bf16.msra.mxu1 %v872_v35 }
 0x6b3   :  { %4164 = vmatprep.subr.bf16.mxu1 %v4728_v2 }
 0x6b4   :  { %v1019_v0 = vpop.permute.xlu0 %1018 }
 0x6b6   :  { %v4582_v36 = vpop.eup %4581 }
 0x6b7   :  { %v814_v37 = vmul.f32 %v4582_v36, %v4578_v28 }
 0x6b9   :  { %v816_v38 = vpack.c.bf16 %v814_v37, %v814_v37 }
 0x6ba   :  { %v4584_v39 = vpop.eup %4583 }
 0x6bb   :  { %4149 = vmatmul.mubr.msk.bf16.vlgmr.msra.gmra.mxu0 %vm573_vm9, %v816_v38  ;;  %v815_v40 = vmul.f32 %v4584_v39, %v4580_v30 }
 0x6bc   :  { %4160 = vmatprep.mubr.msk.bf16.mxu0 %vm4729_vm0, %v4728_v2  ;;  %4159 = vmatpush3.bf16.msra.mxu0 %v4466_v47  ;;  %v4467_v47 = vld [vmem:[#allocation2 + $0x10] sm:$0xff]  }
 0x6bd   :  { %v817_v42 = vpack.c.bf16 %v815_v40, %v815_v40  ;;  %4170 = vmatprep.subr.bf16.mxu0 %v4728_v2 }
 0x6bf   :  { %4155 = vmatmul.mubr.msk.bf16.vlgmr.msra.gmra.mxu1 %vm573_vm9, %v817_v42 }
 0x6c0   :  { %4165 = vmatpush3.bf16.msra.mxu1 %v4465_v41  ;;  %4166 = vmatprep.mubr.msk.bf16.mxu1 %vm4729_vm0, %v4728_v2 }
 0x6c1   :  { %4176 = vmatprep.subr.bf16.mxu1 %v4728_v2 }
 0x6c7   :  { %4167 = vmatmul.mubr.msk.bf16.vlgmr.msra.gmra.mxu1 %vm478_vm7, %v691_v63 }
 0x6c8   :  { %4177 = vmatpush3.bf16.xpose.msra.mxu1 %v1076_v45  ;;  %4178 = vmatprep.mubr.msk.bf16.mxu1 %vm4729_vm0, %v4728_v2 }
 0x6c9   :  { %4188 = vmatprep.subr.bf16.mxu1 %v4728_v2 }
 0x6cf   :  { %4179 = vmatmul.mubr.msk.bf16.vlgmr.msra.gmra.mxu1 %vm478_vm7, %v1069_v46 }
 0x6d0   :  { %4190 = vmatprep.mubr.msk.bf16.mxu1 %vm4729_vm0, %v4728_v2 }
 0x77b   :  { %v860_v48 = vpop.f32.mrf.mxu0 }
 0x77d   :  { %v4150_v49 = vpop.f32.mrf.mxu0 }
 0x77f   :  { %v863_v50 = vpop.f32.mrf.mxu0  ;;  %v908_v51 = vpop.f32.mrf.mxu1 }
 0x780   :  { %v914_v52 = vpack.c.bf16 %v908_v51, %v860_v48 }
 0x781   :  { %v4151_v53 = vpop.f32.mrf.mxu0  ;;  %v4156_v56 = vpop.f32.mrf.mxu1 }
 0x782   :  { %4161 = vmatmul.mubr.msk.bf16.vlgmr.msra.gmra.mxu0 %vm478_vm7, %v914_v52 }
 0x783   :  { %4171 = vmatpush3.bf16.xpose.msra.mxu0 %v1026_v57  ;;  %v911_v61 = vpop.f32.mrf.mxu1  ;;  %4172 = vmatprep.mubr.msk.bf16.mxu0 %vm4729_vm0, %v4728_v2 }
 0x784   :  { %4182 = vmatprep.subr.bf16.mxu0 %v4728_v2 }
 0x785   :  { %v4157_v62 = vpop.f32.mrf.mxu1 }
 0x787   :  { %v5038_v63 = vpop.f32.mrf.mxu1 }
 0x789   :  { %v4168_v4 = vpop.f32.mrf.mxu1 }
 0x78a   :  { %4173 = vmatmul.mubr.msk.bf16.vlgmr.msra.gmra.mxu0 %vm478_vm7, %v1019_v0 }
 0x78b   :  { %v5041_v5 = vpop.f32.mrf.mxu1  ;;  %4184 = vmatprep.mubr.msk.bf16.mxu0 %vm4729_vm0, %v4728_v2 }
 0x78d   :  { %v4169_v7 = vpop.f32.mrf.mxu1 }
 0x78f   :  { %v1112_v8 = vpop.f32.mrf.mxu1 }
 0x790   :  { %v1121_v9 = vsel %vm573_vm9, %v1112_v8, -inf }
 0x791   :  { %1122 = vmax.xlane.f32.xlu1 %v1121_v9  ;;  %v4180_v10 = vpop.f32.mrf.mxu1 }
 0x793   :  { %v1115_v11 = vpop.f32.mrf.mxu1 }
 0x795   :  { %v4181_v12 = vpop.f32.mrf.mxu1 }
 0x7a2   :  { %1142 = vrot.lane.b32.xlu1 %v4940_v14, %s4734_s18 }
 0x7a6   :  { %1296 = vrot.lane.b32.xlu1 %v4926_v3, %s4735_s19 }
 0x7aa   :  { %1346 = vrot.lane.b32.xlu1 %v4930_v6, %s4735_s19 }
 0x7ae   :  { %1344 = vrot.lane.b32.xlu1 %v4930_v6, %s4736_s20 }
 0x81a   :  { %v1123_v13 = vpop.xlane.xlu1 %1122 }
 0x81b   :  { %v1125_v18 = vsub.f32 %v1112_v8, %v1123_v13 }
 0x81d   :  { %v1128_v19 = vmul.f32 1.442695, %v1125_v18 }
 0x81e   :  { %v1143_v15 = vpop.permute.xlu1 %1142 }
 0x81f   :  { %v1148_v16 = vsel %vm601_vm8, %v1143_v15, 0  ;;  %4585 = vpow2.f32 %v1128_v19 }
 0x820   :  { %4183 = vmatpush3.bf16.msra.mxu0 %v1148_v16 }
 0x821   :  { %4194 = vmatprep.subr.bf16.mxu0 %v4728_v2 }
 0x822   :  { %v1297_v41 = vpop.permute.xlu1 %1296 }
 0x823   :  { %v1302_v43 = vsel %vm478_vm7, %v1297_v41, 0 }
 0x826   :  { %v1347_v53 = vpop.permute.xlu1 %1346 }
 0x827   :  { %v1352_v7 = vsel %vm478_vm7, %v1347_v53, 0  ;;  %v5116_v53 = vsub.s32 1, %v4914_v58 }
 0x82a   :  { %v1345_v11 = vpop.permute.xlu1 %1344 }
 0x82c   :  { %v4586_v6 = vpop.eup %4585 }
 0x82d   :  { %v1133_v28 = vsel %vm573_vm9, %v4586_v6, 0.0 }
 0x842   :  { %v5056_v20 = vpop.f32.mrf.mxu0 }
 0x843   :  { %v1012_v19 = vadd.f32 %v5038_v63, %v5056_v20 }
 0x844   :  { %v4162_v21 = vpop.f32.mrf.mxu0 }
 0x846   :  { %v5058_v22 = vpop.f32.mrf.mxu0 }
 0x848   :  { %v4163_v23 = vpop.f32.mrf.mxu0 }
 0x84a   :  { %v1062_v24 = vpop.f32.mrf.mxu0 }
 0x84b   :  { %v1118_v25 = vsel %vm573_vm9, %v1062_v24, -inf }
 0x84c   :  { %1119 = vmax.xlane.f32.xlu0 %v1118_v25  ;;  %v4174_v26 = vpop.f32.mrf.mxu0  ;;  %v1015_v25 = vadd.f32 %v5041_v5, %v5058_v22 }
 0x84e   :  { %v1065_v27 = vpop.f32.mrf.mxu0 }
 0x850   :  { %1134 = vadd.xlane.f32.xlu0 %v1133_v28  ;;  %v4175_v29 = vpop.f32.mrf.mxu0 }
 0x8d5   :  { %v1120_v30 = vpop.xlane.xlu0 %1119 }
 0x8d6   :  { %v1124_v31 = vsub.f32 %v1062_v24, %v1120_v30 }
 0x8d8   :  { %v1126_v32 = vmul.f32 1.442695, %v1124_v31 }
 0x8d9   :  { %v1135_v35 = vpop.xlane.xlu0 %1134 }
 0x8da   :  { %4587 = vpow2.f32 %v1126_v32 }
 0x8db   :  { %4589 = vrcp.f32 %v1135_v35 }
 0x8e7   :  { %v4588_v33 = vpop.eup %4587 }
 0x8e8   :  { %v1130_v34 = vsel %vm573_vm9, %v4588_v33, 0.0  ;;  %v4590_v36 = vpop.eup %4589 }
 0x8e9   :  { %1131 = vadd.xlane.f32.xlu0 %v1130_v34  ;;  %v1139_v38 = vmul.f32 %v4590_v36, %v4586_v6 }
 0x8eb   :  { %v1141_v42 = vpack.c.bf16 %v1139_v38, %v1139_v38 }
 0x8ff   :  { %1190 = vrot.lane.b32.xlu0 %v4944_v17, %s4734_s18 }
 0x903   :  { %1294 = vrot.lane.b32.xlu0 %v4926_v3, %s4736_s20 }
 0x972   :  { %v1132_v37 = vpop.xlane.xlu0 %1131 }
 0x973   :  { %4591 = vrcp.f32 %v1132_v37 }
 0x976   :  { %v1191_v39 = vpop.permute.xlu0 %1190 }
 0x977   :  { %v1196_v40 = vsel %vm601_vm8, %v1191_v39, 0  ;;  %v4468_v39 = vld [vmem:[#allocation2 + $0x18] sm:$0xff]  }
 0x978   :  { %4189 = vmatpush3.bf16.msra.mxu1 %v1196_v40 }
 0x979   :  { %4200 = vmatprep.subr.bf16.mxu1 %v4728_v2 }
 0x97a   :  { %v1295_v45 = vpop.permute.xlu0 %1294 }
 0x97b   :  { %4191 = vmatmul.mubr.msk.bf16.vlgmr.msra.gmra.mxu1 %vm573_vm9, %v1141_v42 }
 0x97c   :  { %4201 = vmatpush3.bf16.xpose.msra.mxu1 %v1302_v43  ;;  %4202 = vmatprep.mubr.msk.bf16.mxu1 %vm4729_vm0, %v4728_v2 }
 0x97d   :  { %4212 = vmatprep.subr.bf16.mxu1 %v4728_v2 }
 0x980   :  { %v4592_v3 = vpop.eup %4591 }
 0x981   :  { %v1138_v44 = vmul.f32 %v4592_v3, %v4588_v33 }
 0x983   :  { %4203 = vmatmul.mubr.msk.bf16.vlgmr.msra.gmra.mxu1 %vm478_vm7, %v1295_v45  ;;  %v1140_v46 = vpack.c.bf16 %v1138_v44, %v1138_v44 }
 0x984   :  { %4214 = vmatprep.mubr.msk.bf16.mxu1 %vm4729_vm0, %v4728_v2 }
 0x985   :  { %4185 = vmatmul.mubr.msk.bf16.vlgmr.msra.gmra.mxu0 %vm573_vm9, %v1140_v46 }
 0x986   :  { %4196 = vmatprep.mubr.msk.bf16.mxu0 %vm4729_vm0, %v4728_v2  ;;  %4195 = vmatpush3.bf16.msra.mxu0 %v4467_v47 }
 0x987   :  { %4206 = vmatprep.subr.bf16.mxu0 %v4728_v2 }
 0xa3b   :  { %v1232_v48 = vpop.f32.mrf.mxu1 }
 0xa3d   :  { %v4192_v49 = vpop.f32.mrf.mxu1 }
 0xa3f   :  { %v1235_v50 = vpop.f32.mrf.mxu1 }
 0xa41   :  { %v4193_v51 = vpop.f32.mrf.mxu1 }
 0xa43   :  { %v1338_v52 = vpop.f32.mrf.mxu1 }
 0xa44   :  { %v1394_v56 = vsel %vm573_vm9, %v1338_v52, -inf }
 0xa45   :  { %1395 = vmax.xlane.f32.xlu0 %v1394_v56  ;;  %v1184_v57 = vpop.f32.mrf.mxu0  ;;  %v4204_v61 = vpop.f32.mrf.mxu1  ;;  %v1573_v56 = vrot.slane %v4922_v60, %v5116_v53 }
 0xa46   :  { %v1238_v62 = vpack.c.bf16 %v1232_v48, %v1184_v57 }
 0xa47   :  { %v4186_v0 = vpop.f32.mrf.mxu0  ;;  %v1341_v4 = vpop.f32.mrf.mxu1 }
 0xa48   :  { %4197 = vmatmul.mubr.msk.bf16.vlgmr.msra.gmra.mxu0 %vm478_vm7, %v1238_v62 }
 0xa49   :  { %4207 = vmatpush3.bf16.xpose.msra.mxu0 %v1352_v7  ;;  %v1187_v8 = vpop.f32.mrf.mxu0  ;;  %v4205_v9 = vpop.f32.mrf.mxu1  ;;  %4208 = vmatprep.mubr.msk.bf16.mxu0 %vm4729_vm0, %v4728_v2 }
 0xa4a   :  { %4218 = vmatprep.subr.bf16.mxu0 %v4728_v2 }
 0xa4b   :  { %v4187_v10 = vpop.f32.mrf.mxu0 }
 0xa50   :  { %4209 = vmatmul.mubr.msk.bf16.vlgmr.msra.gmra.mxu0 %vm478_vm7, %v1345_v11 }
 0xa51   :  { %4220 = vmatprep.mubr.msk.bf16.mxu0 %vm4729_vm0, %v4728_v2 }
 0xace   :  { %v1396_v12 = vpop.xlane.xlu0 %1395 }
 0xacf   :  { %v1400_v13 = vsub.f32 %v1338_v52, %v1396_v12 }
 0xad1   :  { %v1402_v15 = vmul.f32 1.442695, %v1400_v13 }
 0xad3   :  { %4593 = vpow2.f32 %v1402_v15 }
 0xae0   :  { %v4594_v16 = vpop.eup %4593 }
 0xae1   :  { %v1406_v18 = vsel %vm573_vm9, %v4594_v16, 0.0 }
 0xae2   :  { %1407 = vadd.xlane.f32.xlu0 %v1406_v18 }
 0xb08   :  { %v1285_v21 = vpop.f32.mrf.mxu0 }
 0xb09   :  { %v1292_v23 = vadd.f32 %v1285_v21, %v1012_v19 }
 0xb0a   :  { %v4198_v24 = vpop.f32.mrf.mxu0 }
 0xb0c   :  { %v1288_v6 = vpop.f32.mrf.mxu0 }
 0xb0d   :  { %v1293_v26 = vadd.f32 %v1288_v6, %v1015_v25 }
 0xb0e   :  { %v4199_v27 = vpop.f32.mrf.mxu0 }
 0xb0f   :  { %v4471_v27 = vld [vmem:[#allocation5 + $0x8] sm:$0xff]  }
 0xb10   :  { %v1388_v28 = vpop.f32.mrf.mxu0 }
 0xb11   :  { %v1397_v29 = vsel %vm573_vm9, %v1388_v28, -inf }
 0xb12   :  { %1398 = vmax.xlane.f32.xlu1 %v1397_v29  ;;  %v4210_v30 = vpop.f32.mrf.mxu0  ;;  %v4473_v29 = vld [vmem:[%s5633_s5 + $0x38] sm:$0xff]  }
 0xb13   :  { %v4474_v30 = vld [vmem:[%s5633_s5 + $0x30] sm:$0xff]  }
 0xb14   :  { %v1391_v31 = vpop.f32.mrf.mxu0 }
 0xb15   :  { %v4475_v31 = vld [vmem:[%s5633_s5 + $0x28] sm:$0xff]  }
 0xb16   :  { %v4211_v32 = vpop.f32.mrf.mxu0 }
 0xb17   :  { %v4476_v32 = vld [vmem:[%s5633_s5 + $0x20] sm:$0xff]  }
 0xb23   :  { %1418 = vrot.lane.b32.xlu1 %v4940_v14, %s4736_s20 }
 0xb6b   :  { %v1408_v63 = vpop.xlane.xlu0 %1407 }
 0xb6c   :  { %4595 = vrcp.f32 %v1408_v63  ;;  %v4477_v63 = vld [vmem:[%s5633_s5 + $0x18] sm:$0xff]  }
 0xb79   :  { %v4596_v20 = vpop.eup %4595 }
 0xb7a   :  { %v1414_v5 = vmul.f32 %v4596_v20, %v4594_v16 }
 0xb7c   :  { %v1416_v37 = vpack.c.bf16 %v1414_v5, %v1414_v5 }
 0xb9b   :  { %v1399_v33 = vpop.xlane.xlu1 %1398 }
 0xb9c   :  { %v1401_v34 = vsub.f32 %v1388_v28, %v1399_v33  ;;  %v4472_v28 = vld [vmem:[#allocation5] sm:$0xff]  }
 0xb9e   :  { %v1404_v35 = vmul.f32 1.442695, %v1401_v34 }
 0xb9f   :  { %v1419_v22 = vpop.permute.xlu1 %1418 }
 0xba0   :  { %4597 = vpow2.f32 %v1404_v35  ;;  %v1424_v36 = vsel %vm601_vm8, %v1419_v22, 0 }
 0xba1   :  { %4213 = vmatpush3.bf16.msra.mxu1 %v1424_v36  ;;  %v1607_v36 = vsub.s32 2, %v4914_v58 }
 0xba2   :  { %4224 = vmatprep.subr.bf16.mxu1 %v4728_v2 }
 0xba4   :  { %4215 = vmatmul.mubr.msk.bf16.vlgmr.msra.gmra.mxu1 %vm573_vm9, %v1416_v37 }
 0xba5   :  { %4226 = vmatprep.mubr.msk.bf16.mxu1 %vm4729_vm0, %v4728_v2  ;;  %4225 = vmatpush3.bf16.msra.mxu1 %v4468_v39  ;;  %v1613_v39 = vsub.s32 3, %v4914_v58 }
 0xba6   :  { %4242 = vmatprep.subr.bf16.mxu1 %v4728_v2 }
 0xbad   :  { %v4598_v14 = vpop.eup %4597 }
 0xbae   :  { %v1409_v38 = vsel %vm573_vm9, %v4598_v14, 0.0 }
 0xbaf   :  { %1410 = vadd.xlane.f32.xlu0 %v1409_v38  ;;  %v1608_v38 = vrot.slane %v4922_v60, %v1607_v36 }
 0xbc5   :  { %1466 = vrot.lane.b32.xlu0 %v4944_v17, %s4736_s20 }
 0xc38   :  { %v1411_v40 = vpop.xlane.xlu0 %1410 }
 0xc39   :  { %4599 = vrcp.f32 %v1411_v40 }
 0xc3c   :  { %v1467_v41 = vpop.permute.xlu0 %1466 }
 0xc3d   :  { %v1472_v42 = vsel %vm601_vm8, %v1467_v41, 0 }
 0xc3e   :  { %4219 = vmatpush3.bf16.msra.mxu0 %v1472_v42 }
 0xc3f   :  { %4230 = vmatprep.subr.bf16.mxu0 %v4728_v2 }
 0xc46   :  { %v4600_v43 = vpop.eup %4599 }
 0xc47   :  { %v1415_v3 = vmul.f32 %v4600_v43, %v4598_v14  ;;  %v1614_v43 = vrot.slane %v4922_v60, %v1613_v39 }
 0xc49   :  { %v1417_v44 = vpack.c.bf16 %v1415_v3, %v1415_v3 }
 0xc4b   :  { %4221 = vmatmul.mubr.msk.bf16.vlgmr.msra.gmra.mxu0 %vm573_vm9, %v1417_v44 }
 0xc4c   :  { %4238 = vmatprep.mubr.msk.bf16.mxu0 %vm4729_vm0, %v4728_v2 }
 0xc64   :  { %v1460_v17 = vpop.f32.mrf.mxu1 }
 0xc66   :  { %v4216_v45 = vpop.f32.mrf.mxu1 }
 0xc68   :  { %v1463_v46 = vpop.f32.mrf.mxu1 }
 0xc69   :  { %v4478_v46 = vld [vmem:[%s5633_s5 + $0x10] sm:$0xff]  }
 0xc6a   :  { %v4217_v47 = vpop.f32.mrf.mxu1 }
 0xc6b   :  { %v4479_v47 = vld [vmem:[%s5633_s5 + $0x8] sm:$0xff]  }
 0xd0b   :  { %v1508_v48 = vpop.f32.mrf.mxu0 }
 0xd0c   :  { %v1514_v49 = vpack.c.bf16 %v1508_v48, %v1460_v17  ;;  %v4480_v48 = vld [vmem:[%s5633_s5] sm:$0xff]  }
 0xd0d   :  { %v4222_v50 = vpop.f32.mrf.mxu0 }
 0xd0e   :  { %4227 = vmatmul.mubr.msk.bf16.vlgmr.msra.gmra.mxu1 %vm478_vm7, %v1514_v49  ;;  %v1628_v49 = vsub.s32 4, %v4914_v58 }
 0xd0f   :  { %v1511_v51 = vpop.f32.mrf.mxu0  ;;  %4258 = vmatprep.mubr.msk.bf16.mxu1 %vm4729_vm0, %v4728_v2  ;;  %4243 = vmatpush3.bf16.msra.mxu1 %v4473_v29 }
 0xd10   :  { %4244 = vmatprep.subr.bf16.mxu1 %v4728_v2  ;;  %v1629_v50 = vrot.slane %v4922_v60, %v1628_v49 }
 0xd11   :  { %v4223_v52 = vpop.f32.mrf.mxu0 }
 0xd13   :  { %4245 = vmatpush3.bf16.msra.mxu1 %v4474_v30  ;;  %v4483_v30 = vld [vmem:[%s5630_s2 + $0x74] ss:$8 sps:$4 sm:$0xff]  }
 0xd14   :  { %4246 = vmatprep.subr.bf16.mxu1 %v4728_v2 }
 0xd17   :  { %4247 = vmatpush3.bf16.msra.mxu1 %v4475_v31  ;;  %v4481_v31 = vld [vmem:[%s5630_s2 + $0x70] ss:$8 sps:$4 sm:$0xff]  }
 0xd18   :  { %4248 = vmatprep.subr.bf16.mxu1 %v4728_v2 }
 0xd1b   :  { %4249 = vmatpush3.bf16.msra.mxu1 %v4476_v32  ;;  %v4486_v32 = vld [vmem:[%s5630_s2 + $0x64] ss:$8 sps:$4 sm:$0xff]  }
 0xd1c   :  { %4250 = vmatprep.subr.bf16.mxu1 %v4728_v2 }
 0xd1f   :  { %4251 = vmatpush3.bf16.msra.mxu1 %v4477_v63  ;;  %v4484_v63 = vld [vmem:[%s5630_s2 + $0x60] ss:$8 sps:$4 sm:$0xff]  }
 0xd20   :  { %4252 = vmatprep.subr.bf16.mxu1 %v4728_v2 }
 0xd23   :  { %4253 = vmatpush3.bf16.msra.mxu1 %v4478_v46 }
 0xd24   :  { %4254 = vmatprep.subr.bf16.mxu1 %v4728_v2 }
 0xd27   :  { %4255 = vmatpush3.bf16.msra.mxu1 %v4479_v47 }
 0xd28   :  { %4256 = vmatprep.subr.bf16.mxu1 %v4728_v2 }
 0xd2b   :  { %4257 = vmatpush3.bf16.msra.mxu1 %v4480_v48 }
 0xd2c   :  { %4268 = vmatprep.subr.bf16.mxu1 %v4728_v2 }
 0xdce   :  { %v1561_v57 = vpop.f32.mrf.mxu1 }
 0xdcf   :  { %v1568_v61 = vadd.f32 %v1561_v57, %v1292_v23 }
 0xdd0   :  { %v4228_v62 = vpop.f32.mrf.mxu1 }
 0xdd1   :  { %v1574_v0 = vadd.f32 %v1573_v56, %v1568_v61 }
 0xdd2   :  { %v1564_v4 = vpop.f32.mrf.mxu1 }
 0xdd3   :  { %v1569_v7 = vadd.f32 %v1564_v4, %v1293_v26  ;;  %v1576_v8 = vadd.f32 %v1574_v0, %v4904_v54  ;;  %v4469_v26 = vld [vmem:[#allocation5 + $0x18] sm:$0xff]  }
 0xdd4   :  { %v4229_v9 = vpop.f32.mrf.mxu1  ;;  %4231 = vmatpush3.bf16.msra.mxu0 %v4469_v26 }
 0xdd5   :  { %v1575_v10 = vadd.f32 %v1573_v56, %v1569_v7  ;;  %v1578_v11 = vsel %vm273_vm6, %v1576_v8, 0.0  ;;  %4232 = vmatprep.subr.bf16.mxu0 %v4728_v2 }
 0xdd6   :  { %1579 = vadd.xlane.f32.xlu1 %v1578_v11 }
 0xdd7   :  { %v1577_v12 = vadd.f32 %v1575_v10, %v4906_v55  ;;  %v4470_v55 = vld [vmem:[#allocation5 + $0x10] sm:$0xff]  }
 0xdd8   :  { %4233 = vmatpush3.bf16.msra.mxu0 %v4470_v55 }
 0xdd9   :  { %v1581_v13 = vsel %vm273_vm6, %v1577_v12, 0.0  ;;  %4234 = vmatprep.subr.bf16.mxu0 %v4728_v2 }
 0xdda   :  { %1582 = vadd.xlane.f32.xlu0 %v1581_v13 }
 0xddc   :  { %4235 = vmatpush3.bf16.msra.mxu0 %v4471_v27 }
 0xddd   :  { %4236 = vmatprep.subr.bf16.mxu0 %v4728_v2 }
 0xde0   :  { %4237 = vmatpush3.bf16.msra.mxu0 %v4472_v28 }
 0xde1   :  { %1922 = vmatprep.subr.bf16.mxu0 %v4483_v30 }
 0xe5f   :  { %v1580_v15 = vpop.xlane.xlu1 %1579 }
 0xe60   :  { %v1585_v16 = vmul.f32 0.015625, %v1580_v15 }
 0xe62   :  { %v1587_v18 = vsub.f32 %v1576_v8, %v1585_v16  ;;  %v1719_v8 = vsub.s32 5, %v4914_v58 }
 0xe63   :  { %v1583_v19 = vpop.xlane.xlu0 %1582 }
 0xe64   :  { %v1586_v21 = vmul.f32 0.015625, %v1583_v19  ;;  %v1589_v23 = vmul.f32 %v1587_v18, %v1587_v18  ;;  %v1720_v9 = vrot.slane %v4922_v60, %v1719_v8 }
 0xe66   :  { %v1588_v24 = vsub.f32 %v1577_v12, %v1586_v21  ;;  %v1591_v25 = vsel %vm273_vm6, %v1589_v23, 0.0 }
 0xe67   :  { %1592 = vadd.xlane.f32.xlu1 %v1591_v25 }
 0xe68   :  { %v1590_v54 = vmul.f32 %v1588_v24, %v1588_v24 }
 0xe6a   :  { %v1594_v6 = vsel %vm273_vm6, %v1590_v54, 0.0 }
 0xe6b   :  { %1595 = vadd.xlane.f32.xlu0 %v1594_v6 }
 0xef0   :  { %v1593_v20 = vpop.xlane.xlu1 %1592 }
 0xef1   :  { %v1597_v33 = vmul.f32 0.015625, %v1593_v20  ;;  %v4489_v20 = vld [vmem:[%s5630_s2 + $0x54] ss:$8 sps:$4 sm:$0xff]  }
 0xef3   :  { %v1599_v34 = vadd.f32 1e-05, %v1597_v33  ;;  %v4487_v33 = vld [vmem:[%s5630_s2 + $0x50] ss:$8 sps:$4 sm:$0xff]  }
 0xef4   :  { %v1596_v35 = vpop.xlane.xlu0 %1595 }
 0xef5   :  { %4601 = vrsqrt.f32 %v1599_v34  ;;  %v1598_v5 = vmul.f32 0.015625, %v1596_v35  ;;  %v4492_v34 = vld [vmem:[%s5630_s2 + $0x44] ss:$8 sps:$4 sm:$0xff]   ;;  %v4490_v35 = vld [vmem:[%s5630_s2 + $0x40] ss:$8 sps:$4 sm:$0xff]  }
 0xef7   :  { %v1600_v22 = vadd.f32 1e-05, %v1598_v5 }
 0xef9   :  { %4603 = vrsqrt.f32 %v1600_v22 }
 0xf02   :  { %v4602_v37 = vpop.eup %4601 }
 0xf03   :  { %v1603_v14 = vmul.f32 %v4602_v37, %v1587_v18 }
 0xf05   :  { %v1609_v42 = vmul.f32 %v1608_v38, %v1603_v14 }
 0xf06   :  { %v4604_v40 = vpop.eup %4603 }
 0xf07   :  { %v1604_v41 = vmul.f32 %v4604_v40, %v1588_v24  ;;  %v1615_v44 = vadd.f32 %v1614_v43, %v1609_v42 }
 0xf09   :  { %v1610_v3 = vmul.f32 %v1608_v38, %v1604_v41  ;;  %v1840_v41 = vsub.s32 6, %v4914_v58 }
 0xf0b   :  { %v1616_v17 = vadd.f32 %v1614_v43, %v1610_v3  ;;  %v4655_v3 = vld [vmem:[%s5634_s6] sm:$0xff] }
 0xf0d   :  { %v1617_v45 = vpack.c.bf16 %v1616_v17, %v1615_v44 }
 0xf0f   :  { %4239 = vmatmul.mubr.msk.bf16.vlgmr.msra.gmra.mxu0 %vm273_vm6, %v1617_v45 }
 0xf10   :  { %1946 = vmatprep.mubr.bf16.mxu0 %v4727_v1  ;;  %1923 = vmatpush1.bf16.msra.mxu0 %v4481_v31 }
 0xf11   :  { %1924 = vmatprep.subr.bf16.mxu0 %v4486_v32 }
 0xf14   :  { %1925 = vmatpush1.bf16.msra.mxu0 %v4484_v63 }
 0xf15   :  { %1926 = vmatprep.subr.bf16.mxu0 %v4489_v20 }
 0xf18   :  { %1927 = vmatpush1.bf16.msra.mxu0 %v4487_v33 }
 0xf19   :  { %1928 = vmatprep.subr.bf16.mxu0 %v4492_v34 }
 0xf1c   :  { %1929 = vmatpush1.bf16.msra.mxu0 %v4490_v35 }
 0xf1d   :  { %4262 = vmatprep.subr.bf16.mxu0 %v4728_v2 }
 0xfcf   :  { %v1691_v51 = vpop.f32.mrf.mxu0 }
 0xfd0   :  { %v1692_v56 = vadd.f32 %v1691_v51, %v1629_v50 }
 0xfd1   :  { %v4240_v52 = vpop.f32.mrf.mxu0 }
 0xfd2   :  { %v1698_v0 = vmax.f32 %v1692_v56, 0.0 }
 0xfd3   :  { %v1694_v57 = vpop.f32.mrf.mxu0 }
 0xfd4   :  { %v1695_v61 = vadd.f32 %v1694_v57, %v1629_v50  ;;  %v5231_v57 = vld [vmem:[%s5634_s6 + $0x10] sm:$0xff] }
 0xfd5   :  { %v4241_v62 = vpop.f32.mrf.mxu0 }
 0xfd6   :  { %v1699_v4 = vmax.f32 %v1695_v61, 0.0  ;;  %v1866_v61 = vrot.slane %v5231_v57, %v4917_v59 }
 0xfd8   :  { %v1700_v7 = vpack.c.bf16 %v1699_v4, %v1698_v0 }
 0xfda   :  { %4259 = vmatmul.mubr.bf16.vlgmr.msra.gmra.mxu1 %v1700_v7 }
 0xfdb   :  { %4270 = vmatprep.mubr.msk.bf16.mxu1 %vm4729_vm0, %v4728_v2 }
0x109a   :  { %v1803_v10 = vpop.f32.mrf.mxu1 }
0x109b   :  { %v1804_v11 = vadd.f32 %v1803_v10, %v1720_v9 }
0x109c   :  { %v4260_v12 = vpop.f32.mrf.mxu1 }
0x109d   :  { %v1810_v13 = vadd.f32 %v1804_v11, %v1615_v44  ;;  %v1841_v44 = vrot.slane %v4655_v3, %v1840_v41  ;;  %v3837_v12 = vld [vmem:[%s5634_s6 + $0x18] sm:$0xff] }
0x109e   :  { %v1806_v15 = vpop.f32.mrf.mxu1 }
0x109f   :  { %v1807_v16 = vadd.f32 %v1806_v15, %v1720_v9  ;;  %v1812_v18 = vsel %vm273_vm6, %v1810_v13, 0.0 }
0x10a0   :  { %1813 = vadd.xlane.f32.xlu1 %v1812_v18  ;;  %v4261_v19 = vpop.f32.mrf.mxu1 }
0x10a1   :  { %v1811_v21 = vadd.f32 %v1807_v16, %v1616_v17  ;;  %v1846_v17 = vsub.s32 7, %v4914_v58  ;;  %v4521_v58 = vld [vmem:[%s5635_s7 + $0xb0] ss:$8 sps:$4 sm:$0xff]  }
0x10a3   :  { %v1815_v23 = vsel %vm273_vm6, %v1811_v21, 0.0  ;;  %v1847_v48 = vrot.slane %v4655_v3, %v1846_v17 }
0x10a4   :  { %1816 = vadd.xlane.f32.xlu0 %v1815_v23 }
0x1129   :  { %v1814_v24 = vpop.xlane.xlu1 %1813 }
0x112a   :  { %v1818_v25 = vmul.f32 0.015625, %v1814_v24 }
0x112c   :  { %v1820_v54 = vsub.f32 %v1810_v13, %v1818_v25  ;;  %v1870_v13 = vrot.slane %v3837_v12, %v4917_v59 }
0x112d   :  { %v1817_v6 = vpop.xlane.xlu0 %1816 }
0x112e   :  { %v1819_v26 = vmul.f32 0.015625, %v1817_v6  ;;  %v1822_v60 = vmul.f32 %v1820_v54, %v1820_v54 }
0x1130   :  { %v1821_v55 = vsub.f32 %v1811_v21, %v1819_v26  ;;  %v1824_v27 = vsel %vm273_vm6, %v1822_v60, 0.0 }
0x1131   :  { %1825 = vadd.xlane.f32.xlu1 %v1824_v27 }
0x1132   :  { %v1823_v28 = vmul.f32 %v1821_v55, %v1821_v55 }
0x1134   :  { %v1827_v29 = vsel %vm273_vm6, %v1823_v28, 0.0 }
0x1135   :  { %1828 = vadd.xlane.f32.xlu0 %v1827_v29 }
0x11ba   :  { %v1826_v5 = vpop.xlane.xlu1 %1825 }
0x11bb   :  { %v1830_v22 = vmul.f32 0.015625, %v1826_v5 }
0x11bd   :  { %v1832_v37 = vadd.f32 1e-05, %v1830_v22 }
0x11be   :  { %v1829_v14 = vpop.xlane.xlu0 %1828 }
0x11bf   :  { %4605 = vrsqrt.f32 %v1832_v37  ;;  %v1831_v38 = vmul.f32 0.015625, %v1829_v14 }
0x11c1   :  { %v1833_v40 = vadd.f32 1e-05, %v1831_v38 }
0x11c3   :  { %4607 = vrsqrt.f32 %v1833_v40 }
0x11cc   :  { %v4606_v42 = vpop.eup %4605 }
0x11cd   :  { %v1836_v43 = vmul.f32 %v4606_v42, %v1820_v54 }
0x11cf   :  { %v1842_v47 = vmul.f32 %v1841_v44, %v1836_v43 }
0x11d0   :  { %v4608_v45 = vpop.eup %4607 }
0x11d1   :  { %v1837_v46 = vmul.f32 %v4608_v45, %v1821_v55  ;;  %v5219_v51 = vadd.f32 %v1847_v48, %v1842_v47 }
0x11d3   :  { %v1843_v50 = vmul.f32 %v1841_v44, %v1837_v46 }
0x11d5   :  { %v5221_v52 = vadd.f32 %v1847_v48, %v1843_v50 }
0x11d7   :  { %v1853_v56 = vpack.c.bf16 %v5221_v52, %v5219_v51 }
0x11d9   :  { %3854 = vmatmul.mubr.msk.bf16.vlgmr.msra.gmra.mxu0 %vm273_vm6, %v1853_v56 }
0x11da   :  { %4264 = vmatprep.mubr.msk.bf16.mxu0 %vm4729_vm0, %v4728_v2 }
0x1299   :  { %v1948_v62 = vpop.f32.mrf.mxu0 }
0x129a   :  { %v1949_v0 = vadd.f32 %v1948_v62, %v1866_v61 }
0x129b   :  { %v1950_v4 = vpop.f32.mrf.mxu0 }
0x129c   :  { %v5235_v7 = vpack.c.bf16 %v1949_v0, %v1949_v0  ;;  %v1951_v16 = vadd.f32 %v1950_v4, %v1870_v13 }
0x129d   :  { %v1952_v9 = vpop.f32.mrf.mxu0 }
0x129e   :  { %v1953_v10 = vadd.f32 %v1952_v9, %v1866_v61  ;;  %1969 = vrot.lane.b32.xlu1 %v5235_v7, %s4723_s12  ;;  %v5249_v23 = vpack.c.bf16 %v1951_v16, %v1951_v16 }
0x129f   :  { %v1954_v19 = vpop.f32.mrf.mxu0 }
0x12a0   :  { %v5239_v11 = vpack.c.bf16 %v1953_v10, %v1953_v10  ;;  %v1955_v24 = vadd.f32 %v1954_v19, %v1870_v13  ;;  %v2093_v6 = vsel %vm601_vm8, %v5249_v23, 0 }
0x12a2   :  { %2017 = vrot.lane.b32.xlu0 %v5239_v11, %s4723_s12  ;;  %v5253_v54 = vpack.c.bf16 %v1955_v24, %v1955_v24 }
0x12a4   :  { %v2139_v26 = vsel %vm601_vm8, %v5253_v54, 0 }
0x1310   :  { %v1970_v15 = vpop.permute.xlu1 %1969 }
0x1311   :  { %v1975_v18 = vsel %vm478_vm7, %v1970_v15, 0 }
0x1312   :  { %4263 = vmatpush3.bf16.xpose.msra.mxu0 %v1975_v18 }
0x1313   :  { %4274 = vmatprep.subr.bf16.mxu0 %v4728_v2 }
0x1314   :  { %v2018_v21 = vpop.permute.xlu0 %2017 }
0x1315   :  { %v2023_v25 = vsel %vm478_vm7, %v2018_v21, 0 }
0x1316   :  { %4269 = vmatpush3.bf16.xpose.msra.mxu1 %v2023_v25 }
0x1317   :  { %4280 = vmatprep.subr.bf16.mxu1 %v4728_v2 }
0x1319   :  { %4265 = vmatmul.mubr.msk.bf16.vlgmr.msra.gmra.mxu0 %vm478_vm7, %v5235_v7 }
0x131a   :  { %4275 = vmatpush3.bf16.msra.mxu0 %v2093_v6  ;;  %4276 = vmatprep.mubr.msk.bf16.mxu0 %vm4729_vm0, %v4728_v2 }
0x131b   :  { %4286 = vmatprep.subr.bf16.mxu0 %v4728_v2 }
0x131d   :  { %4271 = vmatmul.mubr.msk.bf16.vlgmr.msra.gmra.mxu1 %vm478_vm7, %v5239_v11 }
0x131e   :  { %4281 = vmatpush3.bf16.msra.mxu1 %v2139_v26  ;;  %4282 = vmatprep.mubr.msk.bf16.mxu1 %vm4729_vm0, %v4728_v2 }
0x131f   :  { %4292 = vmatprep.subr.bf16.mxu1 %v4728_v2 }
0x13d9   :  { %v2011_v60 = vpop.f32.mrf.mxu0 }
0x13da   :  { %v2065_v55 = vsel %vm573_vm9, %v2011_v60, -inf }
0x13db   :  { %2066 = vmax.xlane.f32.xlu1 %v2065_v55  ;;  %v4266_v27 = vpop.f32.mrf.mxu0 }
0x13dd   :  { %v2014_v28 = vpop.f32.mrf.mxu0  ;;  %v2059_v29 = vpop.f32.mrf.mxu1 }
0x13de   :  { %v2068_v30 = vsel %vm573_vm9, %v2059_v29, -inf }
0x13df   :  { %2069 = vmax.xlane.f32.xlu0 %v2068_v30  ;;  %v4267_v31 = vpop.f32.mrf.mxu0  ;;  %v4272_v32 = vpop.f32.mrf.mxu1 }
0x13e1   :  { %v2062_v63 = vpop.f32.mrf.mxu1 }
0x13e3   :  { %v4273_v20 = vpop.f32.mrf.mxu1 }
0x13ec   :  { %2187 = vrot.lane.b32.xlu1 %v5235_v7, %s4731_s15 }
0x1464   :  { %v2067_v33 = vpop.xlane.xlu1 %2066 }
0x1465   :  { %v2071_v34 = vsub.f32 %v2011_v60, %v2067_v33 }
0x1467   :  { %v2073_v35 = vmul.f32 1.442695, %v2071_v34 }
0x1468   :  { %v2070_v5 = vpop.xlane.xlu0 %2069  ;;  %v2188_v43 = vpop.permute.xlu1 %2187 }
0x1469   :  { %4609 = vpow2.f32 %v2073_v35  ;;  %v2072_v22 = vsub.f32 %v2059_v29, %v2070_v5  ;;  %v2193_v50 = vsel %vm478_vm7, %v2188_v43, 0 }
0x146b   :  { %v2075_v37 = vmul.f32 1.442695, %v2072_v22 }
0x146d   :  { %4611 = vpow2.f32 %v2075_v37 }
0x1476   :  { %v4610_v14 = vpop.eup %4609 }
0x1477   :  { %v2077_v38 = vsel %vm573_vm9, %v4610_v14, 0.0 }
0x1478   :  { %2078 = vadd.xlane.f32.xlu1 %v2077_v38 }
0x147a   :  { %v4612_v40 = vpop.eup %4611 }
0x147b   :  { %v2080_v42 = vsel %vm573_vm9, %v4612_v40, 0.0 }
0x147c   :  { %2081 = vadd.xlane.f32.xlu0 %v2080_v42 }
0x1489   :  { %2185 = vrot.lane.b32.xlu1 %v5235_v7, %s4732_s16 }
0x148d   :  { %2235 = vrot.lane.b32.xlu1 %v5239_v11, %s4732_s16 }
0x1492   :  { %2237 = vrot.lane.b32.xlu0 %v5239_v11, %s4731_s15 }
0x1501   :  { %v2079_v3 = vpop.xlane.xlu1 %2078 }
0x1502   :  { %4613 = vrcp.f32 %v2079_v3 }
0x1505   :  { %v2082_v44 = vpop.xlane.xlu0 %2081  ;;  %v2186_v4 = vpop.permute.xlu1 %2185 }
0x1506   :  { %4615 = vrcp.f32 %v2082_v44 }
0x1509   :  { %v2238_v61 = vpop.permute.xlu0 %2237  ;;  %v2236_v9 = vpop.permute.xlu1 %2235 }
0x150a   :  { %v2243_v0 = vsel %vm478_vm7, %v2238_v61, 0 }
0x150f   :  { %v4614_v45 = vpop.eup %4613 }
0x1510   :  { %v2085_v46 = vmul.f32 %v4614_v45, %v4610_v14 }
0x1512   :  { %v2087_v47 = vpack.c.bf16 %v2085_v46, %v2085_v46 }
0x1513   :  { %v4616_v48 = vpop.eup %4615 }
0x1514   :  { %4277 = vmatmul.mubr.msk.bf16.vlgmr.msra.gmra.mxu0 %vm573_vm9, %v2087_v47  ;;  %v2086_v56 = vmul.f32 %v4616_v48, %v4612_v40 }
0x1515   :  { %4287 = vmatpush3.bf16.xpose.msra.mxu0 %v2193_v50  ;;  %4288 = vmatprep.mubr.msk.bf16.mxu0 %vm4729_vm0, %v4728_v2 }
0x1516   :  { %v2088_v62 = vpack.c.bf16 %v2086_v56, %v2086_v56  ;;  %4298 = vmatprep.subr.bf16.mxu0 %v4728_v2  ;;  %v4493_v56 = vld [vmem:[#allocation2 + $0x20] sm:$0xff]  }
0x1518   :  { %4283 = vmatmul.mubr.msk.bf16.vlgmr.msra.gmra.mxu1 %vm573_vm9, %v2088_v62 }
0x1519   :  { %4293 = vmatpush3.bf16.xpose.msra.mxu1 %v2243_v0  ;;  %4294 = vmatprep.mubr.msk.bf16.mxu1 %vm4729_vm0, %v4728_v2 }
0x151a   :  { %4304 = vmatprep.subr.bf16.mxu1 %v4728_v2 }
0x151c   :  { %4289 = vmatmul.mubr.msk.bf16.vlgmr.msra.gmra.mxu0 %vm478_vm7, %v2186_v4 }
0x151d   :  { %4300 = vmatprep.mubr.msk.bf16.mxu0 %vm4729_vm0, %v4728_v2 }
0x1520   :  { %4295 = vmatmul.mubr.msk.bf16.vlgmr.msra.gmra.mxu1 %vm478_vm7, %v2236_v9 }
0x1521   :  { %4306 = vmatprep.mubr.msk.bf16.mxu1 %vm4729_vm0, %v4728_v2 }
0x15d4   :  { %v5297_v10 = vpop.f32.mrf.mxu0 }
0x15d6   :  { %v4278_v12 = vpop.f32.mrf.mxu0 }
0x15d7   :  { %v4494_v12 = vld [vmem:[#allocation2 + $0x28] sm:$0xff]  }
0x15d8   :  { %v2132_v13 = vpop.f32.mrf.mxu0  ;;  %v5299_v15 = vpop.f32.mrf.mxu1 }
0x15d9   :  { %v2181_v16 = vpack.c.bf16 %v5299_v15, %v5297_v10 }
0x15da   :  { %v4279_v18 = vpop.f32.mrf.mxu0  ;;  %v4284_v19 = vpop.f32.mrf.mxu1 }
0x15dc   :  { %v2178_v21 = vpop.f32.mrf.mxu1  ;;  %v2229_v24 = vpop.f32.mrf.mxu0 }
0x15dd   :  { %v2285_v25 = vsel %vm573_vm9, %v2229_v24, -inf }
0x15de   :  { %v4285_v6 = vpop.f32.mrf.mxu1  ;;  %2286 = vmax.xlane.f32.xlu0 %v2285_v25  ;;  %v4290_v26 = vpop.f32.mrf.mxu0 }
0x15e0   :  { %v2232_v60 = vpop.f32.mrf.mxu0  ;;  %v2279_v55 = vpop.f32.mrf.mxu1 }
0x15e1   :  { %v2288_v27 = vsel %vm573_vm9, %v2279_v55, -inf }
0x15e2   :  { %2289 = vmax.xlane.f32.xlu1 %v2288_v27  ;;  %v4291_v28 = vpop.f32.mrf.mxu0  ;;  %v4296_v29 = vpop.f32.mrf.mxu1 }
0x15e4   :  { %v2282_v30 = vpop.f32.mrf.mxu1 }
0x15e6   :  { %v4297_v31 = vpop.f32.mrf.mxu1 }
0x15f3   :  { %2309 = vrot.lane.b32.xlu1 %v5249_v23, %s4732_s16 }
0x15f7   :  { %2511 = vrot.lane.b32.xlu1 %v5235_v7, %s4733_s17 }
0x15fb   :  { %2561 = vrot.lane.b32.xlu1 %v5239_v11, %s4733_s17 }
0x15ff   :  { %2559 = vrot.lane.b32.xlu1 %v5239_v11, %s4734_s18 }
0x1667   :  { %v2287_v32 = vpop.xlane.xlu0 %2286 }
0x1668   :  { %v2291_v63 = vsub.f32 %v2229_v24, %v2287_v32 }
0x166a   :  { %v2293_v20 = vmul.f32 1.442695, %v2291_v63 }
0x166b   :  { %v2290_v33 = vpop.xlane.xlu1 %2289 }
0x166c   :  { %4617 = vpow2.f32 %v2293_v20  ;;  %v2292_v34 = vsub.f32 %v2279_v55, %v2290_v33 }
0x166e   :  { %v2295_v35 = vmul.f32 1.442695, %v2292_v34 }
0x166f   :  { %v2310_v5 = vpop.permute.xlu1 %2309 }
0x1670   :  { %4619 = vpow2.f32 %v2295_v35  ;;  %v2315_v22 = vsel %vm601_vm8, %v2310_v5, 0 }
0x1671   :  { %4299 = vmatpush3.bf16.msra.mxu0 %v2315_v22 }
0x1672   :  { %4310 = vmatprep.subr.bf16.mxu0 %v4728_v2 }
0x1673   :  { %v2512_v62 = vpop.permute.xlu1 %2511 }
0x1674   :  { %v2517_v24 = vsel %vm478_vm7, %v2512_v62, 0 }
0x1677   :  { %v2562_v0 = vpop.permute.xlu1 %2561 }
0x1678   :  { %v2567_v4 = vsel %vm478_vm7, %v2562_v0, 0 }
0x1679   :  { %v4618_v37 = vpop.eup %4617 }
0x167a   :  { %v2297_v14 = vsel %vm573_vm9, %v4618_v37, 0.0 }
0x167b   :  { %2298 = vadd.xlane.f32.xlu0 %v2297_v14  ;;  %v2560_v9 = vpop.permute.xlu1 %2559 }
0x167d   :  { %v4620_v38 = vpop.eup %4619 }
0x167e   :  { %v2300_v40 = vsel %vm573_vm9, %v4620_v38, 0.0 }
0x167f   :  { %2301 = vadd.xlane.f32.xlu0 %v2300_v40 }
0x1695   :  { %2357 = vrot.lane.b32.xlu0 %v5253_v54, %s4732_s16 }
0x1699   :  { %2509 = vrot.lane.b32.xlu0 %v5235_v7, %s4734_s18 }
0x1704   :  { %v2299_v42 = vpop.xlane.xlu0 %2298 }
0x1705   :  { %4621 = vrcp.f32 %v2299_v42 }
0x1708   :  { %v2302_v43 = vpop.xlane.xlu0 %2301 }
0x1709   :  { %4623 = vrcp.f32 %v2302_v43 }
0x170c   :  { %v2358_v3 = vpop.permute.xlu0 %2357 }
0x170d   :  { %v2363_v44 = vsel %vm601_vm8, %v2358_v3, 0 }
0x170e   :  { %4305 = vmatpush3.bf16.msra.mxu1 %v2363_v44 }
0x170f   :  { %4316 = vmatprep.subr.bf16.mxu1 %v4728_v2 }
0x1710   :  { %v2510_v60 = vpop.permute.xlu0 %2509 }
0x1712   :  { %v4622_v45 = vpop.eup %4621 }
0x1713   :  { %v2305_v46 = vmul.f32 %v4622_v45, %v4618_v37 }
0x1715   :  { %v2307_v47 = vpack.c.bf16 %v2305_v46, %v2305_v46 }
0x1716   :  { %v4624_v48 = vpop.eup %4623 }
0x1717   :  { %4301 = vmatmul.mubr.msk.bf16.vlgmr.msra.gmra.mxu0 %vm573_vm9, %v2307_v47  ;;  %v2306_v50 = vmul.f32 %v4624_v48, %v4620_v38 }
0x1718   :  { %4312 = vmatprep.mubr.msk.bf16.mxu0 %vm4729_vm0, %v4728_v2  ;;  %4311 = vmatpush3.bf16.msra.mxu0 %v4494_v12 }
0x1719   :  { %v2308_v61 = vpack.c.bf16 %v2306_v50, %v2306_v50  ;;  %4322 = vmatprep.subr.bf16.mxu0 %v4728_v2 }
0x171b   :  { %4307 = vmatmul.mubr.msk.bf16.vlgmr.msra.gmra.mxu1 %vm573_vm9, %v2308_v61 }
0x171c   :  { %4317 = vmatpush3.bf16.msra.mxu1 %v4493_v56  ;;  %4318 = vmatprep.mubr.msk.bf16.mxu1 %vm4729_vm0, %v4728_v2 }
0x171d   :  { %4328 = vmatprep.subr.bf16.mxu1 %v4728_v2 }
0x1723   :  { %4319 = vmatmul.mubr.msk.bf16.vlgmr.msra.gmra.mxu1 %vm478_vm7, %v2181_v16 }
0x1724   :  { %4329 = vmatpush3.bf16.xpose.msra.mxu1 %v2567_v4  ;;  %4330 = vmatprep.mubr.msk.bf16.mxu1 %vm4729_vm0, %v4728_v2 }
0x1725   :  { %4340 = vmatprep.subr.bf16.mxu1 %v4728_v2 }
0x172b   :  { %4331 = vmatmul.mubr.msk.bf16.vlgmr.msra.gmra.mxu1 %vm478_vm7, %v2560_v9 }
0x172c   :  { %4342 = vmatprep.mubr.msk.bf16.mxu1 %vm4729_vm0, %v4728_v2 }
0x17d7   :  { %v2351_v13 = vpop.f32.mrf.mxu0 }
0x17d9   :  { %v4302_v10 = vpop.f32.mrf.mxu0 }
0x17db   :  { %v2354_v15 = vpop.f32.mrf.mxu0  ;;  %v2399_v16 = vpop.f32.mrf.mxu1 }
0x17dc   :  { %v2405_v18 = vpack.c.bf16 %v2399_v16, %v2351_v13 }
0x17dd   :  { %v4303_v19 = vpop.f32.mrf.mxu0  ;;  %v4308_v21 = vpop.f32.mrf.mxu1 }
0x17de   :  { %4313 = vmatmul.mubr.msk.bf16.vlgmr.msra.gmra.mxu0 %vm478_vm7, %v2405_v18  ;;  %v4495_v21 = vld [vmem:[#allocation2 + $0x30] sm:$0xff]  }
0x17df   :  { %4323 = vmatpush3.bf16.xpose.msra.mxu0 %v2517_v24  ;;  %v2402_v25 = vpop.f32.mrf.mxu1  ;;  %4324 = vmatprep.mubr.msk.bf16.mxu0 %vm4729_vm0, %v4728_v2 }
0x17e0   :  { %4334 = vmatprep.subr.bf16.mxu0 %v4728_v2 }
0x17e1   :  { %v4309_v6 = vpop.f32.mrf.mxu1 }
0x17e3   :  { %v5347_v26 = vpop.f32.mrf.mxu1 }
0x17e5   :  { %v4320_v55 = vpop.f32.mrf.mxu1 }
0x17e6   :  { %4325 = vmatmul.mubr.msk.bf16.vlgmr.msra.gmra.mxu0 %vm478_vm7, %v2510_v60 }
0x17e7   :  { %v5350_v27 = vpop.f32.mrf.mxu1  ;;  %4336 = vmatprep.mubr.msk.bf16.mxu0 %vm4729_vm0, %v4728_v2 }
0x17e9   :  { %v4321_v28 = vpop.f32.mrf.mxu1 }
0x17eb   :  { %v2603_v29 = vpop.f32.mrf.mxu1 }
0x17ec   :  { %v2612_v30 = vsel %vm573_vm9, %v2603_v29, -inf }
0x17ed   :  { %2613 = vmax.xlane.f32.xlu1 %v2612_v30  ;;  %v4332_v31 = vpop.f32.mrf.mxu1 }
0x17ef   :  { %v2606_v32 = vpop.f32.mrf.mxu1 }
0x17f1   :  { %v4333_v63 = vpop.f32.mrf.mxu1 }
0x17fe   :  { %2633 = vrot.lane.b32.xlu1 %v5249_v23, %s4734_s18 }
0x1802   :  { %2787 = vrot.lane.b32.xlu1 %v5235_v7, %s4735_s19 }
0x1806   :  { %2837 = vrot.lane.b32.xlu1 %v5239_v11, %s4735_s19 }
0x180a   :  { %2835 = vrot.lane.b32.xlu1 %v5239_v11, %s4736_s20 }
0x1876   :  { %v2614_v20 = vpop.xlane.xlu1 %2613 }
0x1877   :  { %v2616_v35 = vsub.f32 %v2603_v29, %v2614_v20 }
0x1879   :  { %v2619_v5 = vmul.f32 1.442695, %v2616_v35 }
0x187a   :  { %v2634_v33 = vpop.permute.xlu1 %2633 }
0x187b   :  { %v2639_v34 = vsel %vm601_vm8, %v2634_v33, 0  ;;  %4625 = vpow2.f32 %v2619_v5 }
0x187c   :  { %4335 = vmatpush3.bf16.msra.mxu0 %v2639_v34 }
0x187d   :  { %4346 = vmatprep.subr.bf16.mxu0 %v4728_v2 }
0x187e   :  { %v2788_v13 = vpop.permute.xlu1 %2787 }
0x187f   :  { %v2793_v15 = vsel %vm478_vm7, %v2788_v13, 0 }
0x1882   :  { %v2838_v28 = vpop.permute.xlu1 %2837 }
0x1883   :  { %v2843_v33 = vsel %vm478_vm7, %v2838_v28, 0 }
0x1888   :  { %v4626_v11 = vpop.eup %4625 }
0x1889   :  { %v2624_v44 = vsel %vm573_vm9, %v4626_v11, 0.0 }
0x189e   :  { %v5365_v22 = vpop.f32.mrf.mxu0 }
0x18a0   :  { %v4314_v37 = vpop.f32.mrf.mxu0 }
0x18a1   :  { %v2836_v37 = vpop.permute.xlu1 %2835 }
0x18a2   :  { %v5367_v14 = vpop.f32.mrf.mxu0 }
0x18a4   :  { %v4315_v38 = vpop.f32.mrf.mxu0 }
0x18a6   :  { %v2553_v40 = vpop.f32.mrf.mxu0 }
0x18a7   :  { %v2609_v42 = vsel %vm573_vm9, %v2553_v40, -inf }
0x18a8   :  { %2610 = vmax.xlane.f32.xlu0 %v2609_v42  ;;  %v4326_v43 = vpop.f32.mrf.mxu0 }
0x18aa   :  { %v2556_v3 = vpop.f32.mrf.mxu0 }
0x18ab   :  { %v2503_v3 = vadd.f32 %v5347_v26, %v5365_v22 }
0x18ac   :  { %2625 = vadd.xlane.f32.xlu0 %v2624_v44  ;;  %v4327_v45 = vpop.f32.mrf.mxu0 }
0x1931   :  { %v2611_v46 = vpop.xlane.xlu0 %2610 }
0x1932   :  { %v2615_v47 = vsub.f32 %v2553_v40, %v2611_v46 }
0x1934   :  { %v2617_v48 = vmul.f32 1.442695, %v2615_v47  ;;  %v2506_v47 = vadd.f32 %v5350_v27, %v5367_v14 }
0x1935   :  { %v2626_v61 = vpop.xlane.xlu0 %2625 }
0x1936   :  { %4627 = vpow2.f32 %v2617_v48 }
0x1937   :  { %4629 = vrcp.f32 %v2626_v61 }
0x1943   :  { %v4628_v50 = vpop.eup %4627 }
0x1944   :  { %v2621_v56 = vsel %vm573_vm9, %v4628_v50, 0.0  ;;  %v4630_v62 = vpop.eup %4629 }
0x1945   :  { %2622 = vadd.xlane.f32.xlu0 %v2621_v56  ;;  %v2630_v4 = vmul.f32 %v4630_v62, %v4626_v11 }
0x1947   :  { %v2632_v10 = vpack.c.bf16 %v2630_v4, %v2630_v4 }
0x195b   :  { %2681 = vrot.lane.b32.xlu0 %v5253_v54, %s4734_s18 }
0x195f   :  { %2785 = vrot.lane.b32.xlu0 %v5235_v7, %s4736_s20 }
0x19ce   :  { %v2623_v0 = vpop.xlane.xlu0 %2622 }
0x19cf   :  { %4631 = vrcp.f32 %v2623_v0 }
0x19d2   :  { %v2682_v9 = vpop.permute.xlu0 %2681 }
0x19d3   :  { %v2687_v12 = vsel %vm601_vm8, %v2682_v9, 0 }
0x19d4   :  { %4341 = vmatpush3.bf16.msra.mxu1 %v2687_v12 }
0x19d5   :  { %4352 = vmatprep.subr.bf16.mxu1 %v4728_v2 }
0x19d6   :  { %v2786_v18 = vpop.permute.xlu0 %2785 }
0x19d7   :  { %4343 = vmatmul.mubr.msk.bf16.vlgmr.msra.gmra.mxu1 %vm573_vm9, %v2632_v10 }
0x19d8   :  { %4353 = vmatpush3.bf16.xpose.msra.mxu1 %v2793_v15  ;;  %4354 = vmatprep.mubr.msk.bf16.mxu1 %vm4729_vm0, %v4728_v2 }
0x19d9   :  { %4364 = vmatprep.subr.bf16.mxu1 %v4728_v2 }
0x19dc   :  { %v4632_v7 = vpop.eup %4631 }
0x19dd   :  { %v2629_v16 = vmul.f32 %v4632_v7, %v4628_v50 }
0x19df   :  { %4355 = vmatmul.mubr.msk.bf16.vlgmr.msra.gmra.mxu1 %vm478_vm7, %v2786_v18  ;;  %v2631_v19 = vpack.c.bf16 %v2629_v16, %v2629_v16  ;;  %v4496_v18 = vld [vmem:[#allocation2 + $0x38] sm:$0xff]  }
0x19e0   :  { %4366 = vmatprep.mubr.msk.bf16.mxu1 %vm4729_vm0, %v4728_v2 }
0x19e1   :  { %4337 = vmatmul.mubr.msk.bf16.vlgmr.msra.gmra.mxu0 %vm573_vm9, %v2631_v19 }
0x19e2   :  { %4348 = vmatprep.mubr.msk.bf16.mxu0 %vm4729_vm0, %v4728_v2  ;;  %4347 = vmatpush3.bf16.msra.mxu0 %v4495_v21 }
0x19e3   :  { %4358 = vmatprep.subr.bf16.mxu0 %v4728_v2 }
0x1a97   :  { %v2723_v24 = vpop.f32.mrf.mxu1 }
0x1a99   :  { %v4344_v25 = vpop.f32.mrf.mxu1 }
0x1a9b   :  { %v2726_v6 = vpop.f32.mrf.mxu1 }
0x1a9d   :  { %v4345_v60 = vpop.f32.mrf.mxu1 }
0x1a9f   :  { %v2829_v55 = vpop.f32.mrf.mxu1 }
0x1aa0   :  { %v2885_v29 = vsel %vm573_vm9, %v2829_v55, -inf }
0x1aa1   :  { %2886 = vmax.xlane.f32.xlu0 %v2885_v29  ;;  %v2675_v30 = vpop.f32.mrf.mxu0  ;;  %v4356_v31 = vpop.f32.mrf.mxu1 }
0x1aa2   :  { %v2729_v32 = vpack.c.bf16 %v2723_v24, %v2675_v30 }
0x1aa3   :  { %v4338_v63 = vpop.f32.mrf.mxu0  ;;  %v2832_v20 = vpop.f32.mrf.mxu1 }
0x1aa4   :  { %4349 = vmatmul.mubr.msk.bf16.vlgmr.msra.gmra.mxu0 %vm478_vm7, %v2729_v32 }
0x1aa5   :  { %4359 = vmatpush3.bf16.xpose.msra.mxu0 %v2843_v33  ;;  %v2678_v34 = vpop.f32.mrf.mxu0  ;;  %v4357_v35 = vpop.f32.mrf.mxu1  ;;  %4360 = vmatprep.mubr.msk.bf16.mxu0 %vm4729_vm0, %v4728_v2  ;;  %v3064_v33 = vrot.slane %v5231_v57, %v5116_v53 }
0x1aa6   :  { %4370 = vmatprep.subr.bf16.mxu0 %v4728_v2 }
0x1aa7   :  { %v4339_v5 = vpop.f32.mrf.mxu0 }
0x1aac   :  { %4361 = vmatmul.mubr.msk.bf16.vlgmr.msra.gmra.mxu0 %vm478_vm7, %v2836_v37 }
0x1aad   :  { %4372 = vmatprep.mubr.msk.bf16.mxu0 %vm4729_vm0, %v4728_v2 }
0x1b2a   :  { %v2887_v38 = vpop.xlane.xlu0 %2886 }
0x1b2b   :  { %v2891_v40 = vsub.f32 %v2829_v55, %v2887_v38 }
0x1b2d   :  { %v2893_v42 = vmul.f32 1.442695, %v2891_v40 }
0x1b2f   :  { %4633 = vpow2.f32 %v2893_v42 }
0x1b3c   :  { %v4634_v11 = vpop.eup %4633 }
0x1b3d   :  { %v2897_v43 = vsel %vm573_vm9, %v4634_v11, 0.0 }
0x1b3e   :  { %2898 = vadd.xlane.f32.xlu0 %v2897_v43 }
0x1b64   :  { %v2776_v44 = vpop.f32.mrf.mxu0 }
0x1b65   :  { %v2783_v45 = vadd.f32 %v2776_v44, %v2503_v3 }
0x1b66   :  { %v4350_v46 = vpop.f32.mrf.mxu0 }
0x1b68   :  { %v2779_v48 = vpop.f32.mrf.mxu0 }
0x1b69   :  { %v2784_v50 = vadd.f32 %v2779_v48, %v2506_v47 }
0x1b6a   :  { %v4351_v56 = vpop.f32.mrf.mxu0 }
0x1b6c   :  { %v2879_v61 = vpop.f32.mrf.mxu0 }
0x1b6d   :  { %v2888_v62 = vsel %vm573_vm9, %v2879_v61, -inf }
0x1b6e   :  { %2889 = vmax.xlane.f32.xlu1 %v2888_v62  ;;  %v4362_v0 = vpop.f32.mrf.mxu0 }
0x1b70   :  { %v2882_v4 = vpop.f32.mrf.mxu0 }
0x1b72   :  { %v4363_v9 = vpop.f32.mrf.mxu0 }
0x1b73   :  { %v4497_v9 = vld [vmem:[#allocation5 + $0x38] sm:$0xff]  }
0x1b7f   :  { %2909 = vrot.lane.b32.xlu1 %v5249_v23, %s4736_s20 }
0x1bc7   :  { %v2899_v26 = vpop.xlane.xlu0 %2898 }
0x1bc8   :  { %4635 = vrcp.f32 %v2899_v26  ;;  %v4499_v26 = vld [vmem:[#allocation5 + $0x28] sm:$0xff]  }
0x1bd5   :  { %v4636_v22 = vpop.eup %4635 }
0x1bd6   :  { %v2905_v27 = vmul.f32 %v4636_v22, %v4634_v11  ;;  %v4500_v22 = vld [vmem:[#allocation5 + $0x20] sm:$0xff]  }
0x1bd8   :  { %v2907_v7 = vpack.c.bf16 %v2905_v27, %v2905_v27  ;;  %v4504_v27 = vld [vmem:[%s5633_s5 + $0x60] sm:$0xff]  }
0x1bf7   :  { %v2890_v12 = vpop.xlane.xlu1 %2889 }
0x1bf8   :  { %v2892_v13 = vsub.f32 %v2879_v61, %v2890_v12  ;;  %v4501_v12 = vld [vmem:[%s5633_s5 + $0x78] sm:$0xff]  }
0x1bfa   :  { %v2895_v10 = vmul.f32 1.442695, %v2892_v13  ;;  %v4502_v13 = vld [vmem:[%s5633_s5 + $0x70] sm:$0xff]  }
0x1bfb   :  { %v2910_v14 = vpop.permute.xlu1 %2909 }
0x1bfc   :  { %4637 = vpow2.f32 %v2895_v10  ;;  %v2915_v15 = vsel %vm601_vm8, %v2910_v14, 0  ;;  %v4503_v10 = vld [vmem:[%s5633_s5 + $0x68] sm:$0xff]   ;;  %v4505_v14 = vld [vmem:[%s5633_s5 + $0x58] sm:$0xff]  }
0x1bfd   :  { %4365 = vmatpush3.bf16.msra.mxu1 %v2915_v15 }
0x1bfe   :  { %4376 = vmatprep.subr.bf16.mxu1 %v4728_v2 }
0x1c00   :  { %4367 = vmatmul.mubr.msk.bf16.vlgmr.msra.gmra.mxu1 %vm573_vm9, %v2907_v7 }
0x1c01   :  { %4378 = vmatprep.mubr.msk.bf16.mxu1 %vm4729_vm0, %v4728_v2  ;;  %4377 = vmatpush3.bf16.msra.mxu1 %v4496_v18 }
0x1c02   :  { %4394 = vmatprep.subr.bf16.mxu1 %v4728_v2 }
0x1c09   :  { %v4638_v23 = vpop.eup %4637 }
0x1c0a   :  { %v2900_v16 = vsel %vm573_vm9, %v4638_v23, 0.0 }
0x1c0b   :  { %2901 = vadd.xlane.f32.xlu0 %v2900_v16 }
0x1c21   :  { %2957 = vrot.lane.b32.xlu0 %v5253_v54, %s4736_s20 }
0x1c94   :  { %v2902_v19 = vpop.xlane.xlu0 %2901 }
0x1c95   :  { %4639 = vrcp.f32 %v2902_v19 }
0x1c98   :  { %v2958_v21 = vpop.permute.xlu0 %2957 }
0x1c99   :  { %v2963_v24 = vsel %vm601_vm8, %v2958_v21, 0 }
0x1c9a   :  { %4371 = vmatpush3.bf16.msra.mxu0 %v2963_v24 }
0x1c9b   :  { %4382 = vmatprep.subr.bf16.mxu0 %v4728_v2 }
0x1ca2   :  { %v4640_v25 = vpop.eup %4639 }
0x1ca3   :  { %v2906_v6 = vmul.f32 %v4640_v25, %v4638_v23  ;;  %v3098_v25 = vrot.slane %v5231_v57, %v1607_v36  ;;  %v4507_v36 = vld [vmem:[%s5633_s5 + $0x48] sm:$0xff]  }
0x1ca5   :  { %v2908_v60 = vpack.c.bf16 %v2906_v6, %v2906_v6 }
0x1ca7   :  { %4373 = vmatmul.mubr.msk.bf16.vlgmr.msra.gmra.mxu0 %vm573_vm9, %v2908_v60 }
0x1ca8   :  { %4390 = vmatprep.mubr.msk.bf16.mxu0 %vm4729_vm0, %v4728_v2  ;;  %4383 = vmatpush3.bf16.msra.mxu0 %v4497_v9 }
0x1ca9   :  { %4384 = vmatprep.subr.bf16.mxu0 %v4728_v2 }
0x1cc0   :  { %v2951_v54 = vpop.f32.mrf.mxu1 }
0x1cc2   :  { %v4368_v55 = vpop.f32.mrf.mxu1 }
0x1cc3   :  { %v3104_v55 = vrot.slane %v5231_v57, %v1613_v39  ;;  %v4508_v39 = vld [vmem:[%s5633_s5 + $0x40] sm:$0xff]  }
0x1cc4   :  { %v2954_v28 = vpop.f32.mrf.mxu1 }
0x1cc6   :  { %v4369_v29 = vpop.f32.mrf.mxu1 }
0x1d67   :  { %v2999_v30 = vpop.f32.mrf.mxu0 }
0x1d68   :  { %v3005_v31 = vpack.c.bf16 %v2999_v30, %v2951_v54 }
0x1d69   :  { %v4374_v32 = vpop.f32.mrf.mxu0 }
0x1d6a   :  { %4379 = vmatmul.mubr.msk.bf16.vlgmr.msra.gmra.mxu1 %vm478_vm7, %v3005_v31  ;;  %v4506_v32 = vld [vmem:[%s5633_s5 + $0x50] sm:$0xff]  }
0x1d6b   :  { %v3002_v63 = vpop.f32.mrf.mxu0  ;;  %4410 = vmatprep.mubr.msk.bf16.mxu1 %vm4729_vm0, %v4728_v2  ;;  %4395 = vmatpush3.bf16.msra.mxu1 %v4501_v12  ;;  %v4512_v12 = vld [vmem:[%s5635_s7 + $0x20] ss:$8 sps:$4 sm:$0xff]   ;;  %vm3402_vm0 = vcmask 1041409  }
0x1d6c   :  { %4396 = vmatprep.subr.bf16.mxu1 %v4728_v2 }
0x1d6d   :  { %v4375_v20 = vpop.f32.mrf.mxu0 }
0x1d6f   :  { %4397 = vmatpush3.bf16.msra.mxu1 %v4502_v13  ;;  %v4514_v13 = vld [vmem:[%s5635_s7 + $0x24] ss:$8 sps:$4 sm:$0xff]  }
0x1d70   :  { %4398 = vmatprep.subr.bf16.mxu1 %v4728_v2 }
0x1d73   :  { %4399 = vmatpush3.bf16.msra.mxu1 %v4503_v10  ;;  %v4517_v10 = vld [vmem:[%s5635_s7 + $0x14] ss:$8 sps:$4 sm:$0xff]  }
0x1d74   :  { %4400 = vmatprep.subr.bf16.mxu1 %v4728_v2 }
0x1d77   :  { %4401 = vmatpush3.bf16.msra.mxu1 %v4504_v27  ;;  %v4515_v27 = vld [vmem:[%s5635_s7 + $0x10] ss:$8 sps:$4 sm:$0xff]  }
0x1d78   :  { %4402 = vmatprep.subr.bf16.mxu1 %v4728_v2 }
0x1d7b   :  { %4403 = vmatpush3.bf16.msra.mxu1 %v4505_v14  ;;  %v4520_v14 = vld [vmem:[%s5635_s7 + $0x4] ss:$8 sps:$4 sm:$0xff]  }
0x1d7c   :  { %4404 = vmatprep.subr.bf16.mxu1 %v4728_v2 }
0x1d7f   :  { %4405 = vmatpush3.bf16.msra.mxu1 %v4506_v32 }
0x1d80   :  { %4406 = vmatprep.subr.bf16.mxu1 %v4728_v2 }
0x1d83   :  { %4407 = vmatpush3.bf16.msra.mxu1 %v4507_v36 }
0x1d84   :  { %4408 = vmatprep.subr.bf16.mxu1 %v4728_v2 }
0x1d87   :  { %4409 = vmatpush3.bf16.msra.mxu1 %v4508_v39 }
0x1e2a   :  { %v3052_v34 = vpop.f32.mrf.mxu1 }
0x1e2b   :  { %v3059_v35 = vadd.f32 %v3052_v34, %v2783_v45 }
0x1e2c   :  { %v4380_v5 = vpop.f32.mrf.mxu1 }
0x1e2d   :  { %v3065_v37 = vadd.f32 %v3064_v33, %v3059_v35 }
0x1e2e   :  { %v3055_v38 = vpop.f32.mrf.mxu1 }
0x1e2f   :  { %v3060_v40 = vadd.f32 %v3055_v38, %v2784_v50  ;;  %v3067_v42 = vadd.f32 %v3065_v37, %v5219_v51 }
0x1e30   :  { %v4381_v11 = vpop.f32.mrf.mxu1 }
0x1e31   :  { %v3066_v43 = vadd.f32 %v3064_v33, %v3060_v40  ;;  %v3069_v3 = vsel %vm273_vm6, %v3067_v42, 0.0 }
0x1e32   :  { %3070 = vadd.xlane.f32.xlu1 %v3069_v3 }
0x1e33   :  { %v3068_v44 = vadd.f32 %v3066_v43, %v5221_v52  ;;  %v4498_v52 = vld [vmem:[#allocation5 + $0x30] sm:$0xff]  }
0x1e34   :  { %4385 = vmatpush3.bf16.msra.mxu0 %v4498_v52 }
0x1e35   :  { %v3072_v46 = vsel %vm273_vm6, %v3068_v44, 0.0  ;;  %4386 = vmatprep.subr.bf16.mxu0 %v4728_v2 }
0x1e36   :  { %3073 = vadd.xlane.f32.xlu0 %v3072_v46 }
0x1e38   :  { %4387 = vmatpush3.bf16.msra.mxu0 %v4499_v26  ;;  %v4511_v26 = vld [vmem:[%s5635_s7 + $0x34] ss:$8 sps:$4 sm:$0xff]  }
0x1e39   :  { %4388 = vmatprep.subr.bf16.mxu0 %v4728_v2  ;;  %v3212_v2 = vrot.slane %v5231_v57, %v1719_v8 }
0x1e3c   :  { %4389 = vmatpush3.bf16.msra.mxu0 %v4500_v22  ;;  %v4509_v22 = vld [vmem:[%s5635_s7 + $0x30] ss:$8 sps:$4 sm:$0xff]  }
0x1e3d   :  { %3456 = vmatprep.subr.bf16.mxu0 %v4511_v26  ;;  %v4568_v26 = vld [vmem:[%s5635_s7 + $0xc4] ss:$8 sps:$4 sm:$0xff]  }
0x1ebb   :  { %v3071_v47 = vpop.xlane.xlu1 %3070 }
0x1ebc   :  { %v3075_v48 = vmul.f32 0.015625, %v3071_v47 }
0x1ebe   :  { %v3077_v56 = vsub.f32 %v3067_v42, %v3075_v48 }
0x1ebf   :  { %v3074_v45 = vpop.xlane.xlu0 %3073 }
0x1ec0   :  { %v3076_v61 = vmul.f32 0.015625, %v3074_v45  ;;  %v3079_v62 = vmul.f32 %v3077_v56, %v3077_v56 }
0x1ec2   :  { %v3078_v0 = vsub.f32 %v3068_v44, %v3076_v61  ;;  %v3081_v50 = vsel %vm273_vm6, %v3079_v62, 0.0 }
0x1ec3   :  { %3082 = vadd.xlane.f32.xlu1 %v3081_v50 }
0x1ec4   :  { %v3080_v51 = vmul.f32 %v3078_v0, %v3078_v0 }
0x1ec6   :  { %v3084_v4 = vsel %vm273_vm6, %v3080_v51, 0.0 }
0x1ec7   :  { %3085 = vadd.xlane.f32.xlu0 %v3084_v4 }
0x1f4c   :  { %v3083_v15 = vpop.xlane.xlu1 %3082 }
0x1f4d   :  { %v3087_v7 = vmul.f32 0.015625, %v3083_v15  ;;  %v4518_v15 = vld [vmem:[%s5635_s7] ss:$8 sps:$4 sm:$0xff]  }
0x1f4f   :  { %v3089_v23 = vadd.f32 1e-05, %v3087_v7  ;;  %v4523_v7 = vld [vmem:[%s5635_s7 + $0xb4] ss:$8 sps:$4 sm:$0xff]  }
0x1f50   :  { %v3086_v16 = vpop.xlane.xlu0 %3085 }
0x1f51   :  { %4641 = vrsqrt.f32 %v3089_v23  ;;  %v3088_v18 = vmul.f32 0.015625, %v3086_v16 }
0x1f53   :  { %v3090_v19 = vadd.f32 1e-05, %v3088_v18 }
0x1f55   :  { %4643 = vrsqrt.f32 %v3090_v19 }
0x1f5e   :  { %v4642_v21 = vpop.eup %4641 }
0x1f5f   :  { %v3093_v24 = vmul.f32 %v4642_v21, %v3077_v56 }
0x1f61   :  { %v3099_v54 = vmul.f32 %v3098_v25, %v3093_v24 }
0x1f62   :  { %v4644_v6 = vpop.eup %4643 }
0x1f63   :  { %v3094_v60 = vmul.f32 %v4644_v6, %v3078_v0  ;;  %v3105_v29 = vadd.f32 %v3104_v55, %v3099_v54  ;;  %v3339_v54 = vrot.slane %v5231_v57, %v1846_v17  ;;  %v4526_v17 = vld [vmem:[%s5635_s7 + $0xa4] ss:$8 sps:$4 sm:$0xff]  }
0x1f65   :  { %v3100_v28 = vmul.f32 %v3098_v25, %v3094_v60  ;;  %v3333_v25 = vrot.slane %v5231_v57, %v1840_v41 }
0x1f67   :  { %v3106_v30 = vadd.f32 %v3104_v55, %v3100_v28 }
0x1f69   :  { %v3107_v31 = vpack.c.bf16 %v3106_v30, %v3105_v29 }
0x1f6b   :  { %4391 = vmatmul.mubr.msk.bf16.vlgmr.msra.gmra.mxu0 %vm273_vm6, %v3107_v31 }
0x1f6c   :  { %3480 = vmatprep.mubr.bf16.mxu0 %v4727_v1  ;;  %v3120_v1 = vrot.slane %v5231_v57, %v1628_v49  ;;  %3457 = vmatpush1.bf16.msra.mxu0 %v4509_v22  ;;  %v4524_v57 = vld [vmem:[%s5635_s7 + $0xa0] ss:$8 sps:$4 sm:$0xff]  }
0x1f6d   :  { %3458 = vmatprep.subr.bf16.mxu0 %v4514_v13  ;;  %v4566_v22 = vld [vmem:[%s5635_s7 + $0xc0] ss:$8 sps:$4 sm:$0xff]  }
0x1f70   :  { %3459 = vmatpush1.bf16.msra.mxu0 %v4512_v12  ;;  %v3384_v12 = vld [vmem:[%s5636_s8] ss:$2 sm:$0x3] }
0x1f71   :  { %3460 = vmatprep.subr.bf16.mxu0 %v4517_v10  ;;  %v3389_v13 = vrot.slane %v3384_v12, %v4917_v59  ;;  %v3393_v10 = vrot.slane %v3384_v12, %v5116_v53 }
0x1f74   :  { %3461 = vmatpush1.bf16.msra.mxu0 %v4515_v27 }
0x1f75   :  { %3462 = vmatprep.subr.bf16.mxu0 %v4520_v14 }
0x1f78   :  { %3463 = vmatpush1.bf16.msra.mxu0 %v4518_v15 }
0x1f79   :  { %3666 = vmatprep.subr.bf16.mxu0 %v4523_v7 }
0x202b   :  { %v3182_v63 = vpop.f32.mrf.mxu0 }
0x202c   :  { %v3183_v33 = vadd.f32 %v3182_v63, %v3120_v1 }
0x202d   :  { %v4392_v20 = vpop.f32.mrf.mxu0 }
0x202e   :  { %v3189_v37 = vmax.f32 %v3183_v33, 0.0 }
0x202f   :  { %v3185_v34 = vpop.f32.mrf.mxu0 }
0x2030   :  { %v3186_v35 = vadd.f32 %v3185_v34, %v3120_v1 }
0x2031   :  { %v4393_v5 = vpop.f32.mrf.mxu0 }
0x2032   :  { %v3190_v38 = vmax.f32 %v3186_v35, 0.0  ;;  %v4529_v35 = vld [vmem:[%s5635_s7 + $0x94] ss:$8 sps:$4 sm:$0xff]   ;;  %v4527_v5 = vld [vmem:[%s5635_s7 + $0x90] ss:$8 sps:$4 sm:$0xff]  }
0x2034   :  { %v3191_v40 = vpack.c.bf16 %v3190_v38, %v3189_v37  ;;  %v4532_v37 = vld [vmem:[%s5635_s7 + $0x84] ss:$8 sps:$4 sm:$0xff]   ;;  %v4530_v38 = vld [vmem:[%s5635_s7 + $0x80] ss:$8 sps:$4 sm:$0xff]  }
0x2036   :  { %4411 = vmatmul.mubr.bf16.vlgmr.msra.gmra.mxu1 %v3191_v40  ;;  %v4535_v40 = vld [vmem:[%s5635_s7 + $0x74] ss:$8 sps:$4 sm:$0xff]  }
0x20f6   :  { %v3295_v42 = vpop.f32.mrf.mxu1 }
0x20f7   :  { %v3296_v11 = vadd.f32 %v3295_v42, %v3212_v2  ;;  %v4538_v42 = vld [vmem:[%s5635_s7 + $0x64] ss:$8 sps:$4 sm:$0xff]  }
0x20f8   :  { %v4412_v43 = vpop.f32.mrf.mxu1 }
0x20f9   :  { %v3302_v3 = vadd.f32 %v3296_v11, %v3105_v29  ;;  %v4536_v11 = vld [vmem:[%s5635_s7 + $0x60] ss:$8 sps:$4 sm:$0xff]   ;;  %v4541_v43 = vld [vmem:[%s5635_s7 + $0x54] ss:$8 sps:$4 sm:$0xff]  }
0x20fa   :  { %v3298_v44 = vpop.f32.mrf.mxu1 }
0x20fb   :  { %v3299_v49 = vadd.f32 %v3298_v44, %v3212_v2  ;;  %v3304_v46 = vsel %vm273_vm6, %v3302_v3, 0.0  ;;  %v4533_v2 = vld [vmem:[%s5635_s7 + $0x70] ss:$8 sps:$4 sm:$0xff]   ;;  %v4544_v44 = vld [vmem:[%s5635_s7 + $0x44] ss:$8 sps:$4 sm:$0xff]  }
0x20fc   :  { %3305 = vadd.xlane.f32.xlu1 %v3304_v46  ;;  %v4413_v47 = vpop.f32.mrf.mxu1  ;;  %v4547_v46 = vld [vmem:[%s5635_s7 + $0x134] ss:$8 sps:$4 sm:$0xff]  }
0x20fd   :  { %v3303_v48 = vadd.f32 %v3299_v49, %v3106_v30  ;;  %v4542_v49 = vld [vmem:[%s5635_s7 + $0x40] ss:$8 sps:$4 sm:$0xff]   ;;  %v4545_v47 = vld [vmem:[%s5635_s7 + $0x130] ss:$8 sps:$4 sm:$0xff]  }
0x20ff   :  { %v3307_v56 = vsel %vm273_vm6, %v3303_v48, 0.0 }
0x2100   :  { %3308 = vadd.xlane.f32.xlu0 %v3307_v56  ;;  %v4548_v56 = vld [vmem:[%s5635_s7 + $0x120] ss:$8 sps:$4 sm:$0xff]  }
0x2185   :  { %v3306_v45 = vpop.xlane.xlu1 %3305 }
0x2186   :  { %v3310_v61 = vmul.f32 0.015625, %v3306_v45  ;;  %v4553_v45 = vld [vmem:[%s5635_s7 + $0x114] ss:$8 sps:$4 sm:$0xff]  }
0x2188   :  { %v3312_v62 = vsub.f32 %v3302_v3, %v3310_v61  ;;  %v4539_v3 = vld [vmem:[%s5635_s7 + $0x50] ss:$8 sps:$4 sm:$0xff]  }
0x2189   :  { %v3309_v0 = vpop.xlane.xlu0 %3308  ;;  %v4551_v61 = vld [vmem:[%s5635_s7 + $0x110] ss:$8 sps:$4 sm:$0xff]  }
0x218a   :  { %v3311_v50 = vmul.f32 0.015625, %v3309_v0  ;;  %v3314_v8 = vmul.f32 %v3312_v62, %v3312_v62  ;;  %v4554_v0 = vld [vmem:[%s5635_s7 + $0x100] ss:$8 sps:$4 sm:$0xff]  }
0x218c   :  { %v3313_v51 = vsub.f32 %v3303_v48, %v3311_v50  ;;  %v3316_v4 = vsel %vm273_vm6, %v3314_v8, 0.0  ;;  %v4550_v48 = vld [vmem:[%s5635_s7 + $0x124] ss:$8 sps:$4 sm:$0xff]   ;;  %v4559_v50 = vld [vmem:[%s5635_s7 + $0xf4] ss:$8 sps:$4 sm:$0xff]  }
0x218d   :  { %3317 = vadd.xlane.f32.xlu1 %v3316_v4  ;;  %v4557_v8 = vld [vmem:[%s5635_s7 + $0xf0] ss:$8 sps:$4 sm:$0xff]   ;;  %v4560_v4 = vld [vmem:[%s5635_s7 + $0xe0] ss:$8 sps:$4 sm:$0xff]  }
0x218e   :  { %v3315_v9 = vmul.f32 %v3313_v51, %v3313_v51 }
0x2190   :  { %v3319_v52 = vsel %vm273_vm6, %v3315_v9, 0.0  ;;  %v4565_v9 = vld [vmem:[%s5635_s7 + $0xd4] ss:$8 sps:$4 sm:$0xff]  }
0x2191   :  { %3320 = vadd.xlane.f32.xlu0 %v3319_v52  ;;  %v4563_v52 = vld [vmem:[%s5635_s7 + $0xd0] ss:$8 sps:$4 sm:$0xff]  }
0x2216   :  { %v3318_v23 = vpop.xlane.xlu1 %3317 }
0x2217   :  { %v3322_v16 = vmul.f32 0.015625, %v3318_v23 }
0x2219   :  { %v3324_v18 = vadd.f32 1e-05, %v3322_v16 }
0x221a   :  { %v3321_v19 = vpop.xlane.xlu0 %3320 }
0x221b   :  { %4645 = vrsqrt.f32 %v3324_v18  ;;  %v3323_v21 = vmul.f32 0.015625, %v3321_v19 }
0x221d   :  { %v3325_v24 = vadd.f32 1e-05, %v3323_v21 }
0x221f   :  { %4647 = vrsqrt.f32 %v3325_v24 }
0x2228   :  { %v4646_v6 = vpop.eup %4645 }
0x2229   :  { %v3328_v60 = vmul.f32 %v4646_v6, %v3312_v62  ;;  %v4556_v62 = vld [vmem:[%s5635_s7 + $0x104] ss:$8 sps:$4 sm:$0xff]  }
0x222b   :  { %v3334_v55 = vmul.f32 %v3333_v25, %v3328_v60 }
0x222c   :  { %v4648_v28 = vpop.eup %4647 }
0x222d   :  { %v3329_v29 = vmul.f32 %v4648_v28, %v3313_v51  ;;  %v3340_v30 = vadd.f32 %v3339_v54, %v3334_v55  ;;  %v4562_v51 = vld [vmem:[%s5635_s7 + $0xe4] ss:$8 sps:$4 sm:$0xff]  }
0x222f   :  { %v3335_v31 = vmul.f32 %v3333_v25, %v3329_v29  ;;  %v3342_v32 = vpack.c.bf16 %v3340_v30, %v3340_v30  ;;  %v3921_v25 = vld [vmem:[%s5636_s8 + $0x1] ss:$2 sm:$0x3]  ;;  %s4737_s8 = smov [#allocation7]  }
0x2230   :  { %v3499_v6 = vrot.slane %v3921_v25, %v4917_v59  ;;  %v3503_v60 = vrot.slane %v3921_v25, %v5116_v53  ;;  %s3745_s26 = sshll.u32 %s4737_s8, 4  ;;  %s3746_s26 = int_to_ptr.vmem [resolvable:$true] %s3745_s26 }
0x2231   :  { %v3341_v36 = vadd.f32 %v3339_v54, %v3335_v31  ;;  %v3398_v1 = vunpack.c.l.b16 %v3342_v32  ;;  %s4696_s5 = scalar_lea.vmem %s3746_s26, 64  ;;  %p4701_p11 = scmp.lt.s32.totalorder %s3746_s26, %s3746_s26 }
0x2232   :  { %p4697_p10 = scmp.ne.s32.totalorder %s3746_s26, %s4696_s5  ;;  %p4702_p12 = scmp.lt.s32.totalorder %s4696_s5, %s4696_s5 }
0x2233   :  { %v3343_v39 = vpack.c.bf16 %v3341_v36, %v3341_v36  ;;  %v3400_v20 = vrot.slane %v3398_v1, 7 }
0x2234   :  { %p4703_p13 = por %p4702_p12, %p4701_p11 }
0x2235   :  { %v3399_v63 = vunpack.c.l.b16 %v3343_v39 }
0x2236   :  { %p4704_p0 = pnand %p4703_p13, %p4697_p10 }
0x2237   :  { %v3401_v33 = vrot.slane %v3399_v63, 6 }
0x2239   :  { %v3403_v41 = vsel %vm3402_vm0, %v3401_v33, %v3400_v20 }
0x223a   :  { %v3404_v34 = vpack.c.b16 %v3403_v41, %v3403_v41 }
0x223c   :  { %3920 = vmatmul.mubr.msk.bf16.vlgmr.msra.gmra.mxu0 %vm273_vm6, %v3404_v34 }
0x223d   :  { %3667 = vmatpush1.bf16.msra.mxu0 %v4521_v58 }
0x223e   :  { %3668 = vmatprep.subr.bf16.mxu0 %v4526_v17 }
0x2241   :  { %3669 = vmatpush1.bf16.msra.mxu0 %v4524_v57 }
0x2242   :  { %3670 = vmatprep.subr.bf16.mxu0 %v4529_v35 }
0x2245   :  { %3671 = vmatpush1.bf16.msra.mxu0 %v4527_v5 }
0x2246   :  { %3672 = vmatprep.subr.bf16.mxu0 %v4532_v37 }
0x2249   :  { %3673 = vmatpush1.bf16.msra.mxu0 %v4530_v38 }
0x224a   :  { %3674 = vmatprep.subr.bf16.mxu0 %v4535_v40 }
0x224d   :  { %3675 = vmatpush1.bf16.msra.mxu0 %v4533_v2 }
0x224e   :  { %3676 = vmatprep.subr.bf16.mxu0 %v4538_v42 }
0x2251   :  { %3677 = vmatpush1.bf16.msra.mxu0 %v4536_v11 }
0x2252   :  { %3678 = vmatprep.subr.bf16.mxu0 %v4541_v43 }
0x2255   :  { %3679 = vmatpush1.bf16.msra.mxu0 %v4539_v3 }
0x2256   :  { %3680 = vmatprep.subr.bf16.mxu0 %v4544_v44 }
0x2259   :  { %3681 = vmatpush1.bf16.msra.mxu0 %v4542_v49 }
0x225a   :  { %3682 = vmatprep.subr.bf16.mxu0 %v4547_v46 }
0x225d   :  { %3683 = vmatpush2.bf16.msra.mxu0 %v4545_v47 }
0x225e   :  { %3684 = vmatprep.subr.bf16.mxu0 %v4550_v48 }
0x2261   :  { %3685 = vmatpush2.bf16.msra.mxu0 %v4548_v56 }
0x2262   :  { %3686 = vmatprep.subr.bf16.mxu0 %v4553_v45 }
0x2265   :  { %3687 = vmatpush2.bf16.msra.mxu0 %v4551_v61 }
0x2266   :  { %3688 = vmatprep.subr.bf16.mxu0 %v4556_v62 }
0x2269   :  { %3689 = vmatpush2.bf16.msra.mxu0 %v4554_v0 }
0x226a   :  { %3690 = vmatprep.subr.bf16.mxu0 %v4559_v50 }
0x226d   :  { %3691 = vmatpush2.bf16.msra.mxu0 %v4557_v8 }
0x226e   :  { %3692 = vmatprep.subr.bf16.mxu0 %v4562_v51 }
0x2271   :  { %3693 = vmatpush2.bf16.msra.mxu0 %v4560_v4 }
0x2272   :  { %3694 = vmatprep.subr.bf16.mxu0 %v4565_v9 }
0x2275   :  { %3695 = vmatpush2.bf16.msra.mxu0 %v4563_v52 }
0x2276   :  { %3696 = vmatprep.subr.bf16.mxu0 %v4568_v26 }
0x2279   :  { %3697 = vmatpush2.bf16.msra.mxu0 %v4566_v22 }
0x22fc   :  { %v3482_v27 = vpop.f32.mrf.mxu0 }
0x22fd   :  { %v3483_v14 = vadd.f32 %v3482_v27, %v3389_v13 }
0x22fe   :  { %v3484_v15 = vpop.f32.mrf.mxu0 }
0x22ff   :  { %v3485_v7 = vadd.f32 %v3484_v15, %v3393_v10  ;;  %v3489_v23 = vmax.f32 %v3483_v14, 0.0 }
0x2300   :  { %v3486_v16 = vpop.f32.mrf.mxu0 }
0x2301   :  { %v3490_v18 = vmax.f32 %v3485_v7, 0.0  ;;  %v3491_v24 = vpack.c.bf16 %v3489_v23, %v3489_v23 }
0x2302   :  { %v3487_v19 = vpop.f32.mrf.mxu0 }
0x2303   :  { %v3492_v21 = vpack.c.bf16 %v3490_v18, %v3490_v18 }
0x2305   :  { %3698 = vmatprep.mubr.bf16.mxu0 %v3492_v21 }
0x2306   :  { %3699 = vmatmul.mubr.bf16.vlgmr.msra.gmra.mxu0 %v3491_v24 }
0x23c6   :  { %v3700_v54 = vpop.f32.mrf.mxu0 }
0x23c7   :  { %v3701_v55 = vadd.f32 %v3700_v54, %v3499_v6 }
0x23c8   :  { %v3702_v28 = vpop.f32.mrf.mxu0 }
0x23c9   :  { %v3703_v29 = vadd.f32 %v3702_v28, %v3503_v60  ;;  %v3708_v31 = vsel %vm3707_vm10, %v3701_v55, -inf }
0x23ca   :  { %v3704_v30 = vpop.f32.mrf.mxu0 }
0x23cb   :  { %v3709_v32 = vsel %vm3707_vm10, %v3703_v29, -inf }
0x23cc   :  { %v3705_v36 = vpop.f32.mrf.mxu0  ;;  %v3710_v39 = vmax.f32 %v3708_v31, %v3709_v32 }
0x23ce   :  { %3711 = vmax.xlane.f32.xlu1 %v3710_v39 }
0x2457   :  { %v3712_v1 = vpop.xlane.xlu1 %3711 }
0x2458   :  { %v3713_v63 = vsub.f32 %v3701_v55, %v3712_v1  ;;  %v3714_v20 = vsub.f32 %v3703_v29, %v3712_v1 }
0x245a   :  { %v3715_v33 = vmul.f32 1.442695, %v3713_v63  ;;  %v3717_v59 = vmul.f32 1.442695, %v3714_v20 }
0x245c   :  { %4649 = vpow2.f32 %v3715_v33 }
0x245d   :  { %4651 = vpow2.f32 %v3717_v59 }
0x2469   :  { %v4650_v53 = vpop.eup %4649 }
0x246a   :  { %v4652_v41 = vpop.eup %4651  ;;  %v3719_v58 = vsel %vm3707_vm10, %v4650_v53, 0.0 }
0x246b   :  { %v3720_v34 = vsel %vm3707_vm10, %v4652_v41, 0.0 }
0x246c   :  { %v3721_v17 = vadd.f32 %v3720_v34, %v3719_v58 }
0x246e   :  { %3722 = vadd.xlane.f32.xlu0 %v3721_v17 }
0x24f7   :  { %v3723_v57 = vpop.xlane.xlu0 %3722 }
0x24f8   :  { %4653 = vrcp.f32 %v3723_v57 }
0x2505   :  { %v4654_v35 = vpop.eup %4653 }
0x2506   :  { %v3725_v5 = vmul.f32 %v4654_v35, %v4650_v53  ;;  %v3726_v37 = vmul.f32 %v4654_v35, %v4652_v41 }
0x2508   :  { %v3729_v38 = vcombine.low %v3725_v5, %v3726_v37 }
0x250a   :  { %3954 = vst.sshfl [vmem:[#allocation7] sm:$0x33 pattern:$0x76325410] %v3729_v38 }
0x250b   :  { %4707 = shalt.err (!%p4704_p0)
}
0x250c   :  { %3748 = dma.vmem_to_hbm [thread:$0]  %s3746_s26, 64, %s5637_s9, [#allocation4]  }
0x250d   :  { %4720 = dma.done.wait [#allocation4], 64  }
0x250e   :  { %4721 = vsyncadd [#allocation4], 4294967232 }
0x250f   :  { %3752 = vsyncpa [#allocation3], 1 }
0x2510   :  { %3753 = vsyncpa [#allocation6], 1 }
0x2511   :  { %3754 = vsyncpa [#allocation4], 1 }

</bundles_post_ra>
